<compile_context>
chip_gen: v7x
topology: tpu7x:2x2x1
jax: 0.10.0
libtpu: 0.0.40
codegen_flags: <defaults>
</compile_context>

<pallas_src>
import functools

import jax
import jax.numpy as jnp
from jax.experimental import pallas as pl
from jax.experimental.pallas import tpu as pltpu


# ------------------------- value-level reflect pad ---------------------------
def _reflect_pad3(v, H, W):
    """Reflect-pad an (H, W) value by 3 on each side, entirely in registers.

    PyTorch 'reflect' (no edge repeat): left halo = [v[3], v[2], v[1]],
    right halo = [v[-2], v[-3], v[-4]]; same for rows.  2-D reflect is
    separable, so rows first then columns handles the corners correctly.
    """
    top = jnp.concatenate([v[3:4, :], v[2:3, :], v[1:2, :]], axis=0)
    bot = jnp.concatenate(
        [v[H - 2:H - 1, :], v[H - 3:H - 2, :], v[H - 4:H - 3, :]], axis=0)
    vr = jnp.concatenate([top, v, bot], axis=0)                       # (H+6, W)

    left = jnp.concatenate([vr[:, 3:4], vr[:, 2:3], vr[:, 1:2]], axis=1)
    right = jnp.concatenate(
        [vr[:, W - 2:W - 1], vr[:, W - 3:W - 2], vr[:, W - 4:W - 3]], axis=1)
    return jnp.concatenate([left, vr, right], axis=1)                 # (H+6, W+6)


# ------------------------- kw-outer 7x7 conv (2 -> 1) ------------------------
def _conv7x7_2to1(p_mean, p_max, w, bias, H, W):
    """7x7 conv over the two padded maps, kw-outermost: 7 lane shifts total."""
    padded = (p_mean, p_max)
    # 14 (c, kh) row slabs, each (H, W+6): sublane offsets only, no lane shifts.
    slabs = [padded[c][kh:kh + H, :] for c in range(2) for kh in range(7)]

    acc0 = jnp.zeros((H, W), jnp.float32)
    acc1 = jnp.zeros((H, W), jnp.float32)
    for kw in range(7):
        # Two independent per-channel partial sums expose ILP to the VALU.
        s0 = w[0 * 49 + 0 * 7 + kw] * slabs[0]
        s1 = w[1 * 49 + 0 * 7 + kw] * slabs[7]
        for kh in range(1, 7):
            s0 = s0 + w[0 * 49 + kh * 7 + kw] * slabs[kh]
            s1 = s1 + w[1 * 49 + kh * 7 + kw] * slabs[7 + kh]
        contrib = (s0 + s1)[:, kw:kw + W]        # the one lane shift for this kw
        if kw % 2 == 0:
            acc0 = acc0 + contrib
        else:
            acc1 = acc1 + contrib
    return acc0 + acc1 + bias


# ----------------------------- fused kernel ----------------------------------
def _sattn_kernel(w_ref, b_ref, x_ref, out_ref, sum_ref, max_ref, *, C):
    # w_ref  (SMEM): (98,)  flattened OIHW weights of Conv2d(2, 1, 7)
    # b_ref  (SMEM): (1,)   bias
    # x_ref  (VMEM): (Bt, Tc, H, W) batch-tile x channel-tile slab
    # out_ref(VMEM): (Bt, 1, H, W)
    # sum_ref/max_ref (VMEM scratch): (Bt, H, W) f32 running channel reduction
    Bt, Tc, H, W = x_ref.shape
    ci = pl.program_id(1)

    @pl.when(ci == 0)
    def _():
        sum_ref[...] = jnp.zeros_like(sum_ref)
        max_ref[...] = jnp.full_like(max_ref, -jnp.inf)

    # ---- stage 1: streaming channel mean/max (f32 accumulation) --------------
    # Only two (H, W) accumulators live per batch element; cast per channel.
    for b in range(Bt):
        s = sum_ref[b]
        m = max_ref[b]
        for c in range(Tc):
            v = x_ref[b, c].astype(jnp.float32)
            s = s + v
            m = jnp.maximum(m, v)
        sum_ref[b] = s
        max_ref[b] = m

    # ---- stage 2+3: reflect pad (value level) + conv, on the last C step -----
    @pl.when(ci == pl.num_programs(1) - 1)
    def _():
        # Hoist every SMEM scalar read out of the accumulation chains.
        w = [w_ref[i] for i in range(2 * 7 * 7)]
        bias = b_ref[0]
        inv_c = jnp.float32(1.0 / C)
        for b in range(Bt):
            p_mean = _reflect_pad3(sum_ref[b] * inv_c, H, W)
            p_max = _reflect_pad3(max_ref[b], H, W)
            out = _conv7x7_2to1(p_mean, p_max, w, bias, H, W)
            out_ref[b, 0] = out.astype(out_ref.dtype)


# ----------------------------- wrapper ----------------------------------------
def _largest_divisor_leq(n, cap):
    cap = max(1, min(n, cap))
    for d in range(cap, 0, -1):
        if n % d == 0:
            return d
    return 1


def spatial_attention(x, weight, bias):
    """x: (B, C, H, W); weight: (1, 2, 7, 7) OIHW; bias: (1,). Returns (B, 1, H, W)."""
    B, C, H, W = x.shape
    assert H >= 4 and W >= 4, "reflect padding of 3 requires H, W >= 4"

    w_flat = weight.astype(jnp.float32).reshape(-1)        # (98,)
    b_flat = bias.astype(jnp.float32).reshape(-1)          # (1,)

    # ---- tile selection: keep the per-step working set small on every chip ---
    itemsize = jnp.dtype(x.dtype).itemsize
    hw_in = H * W * itemsize
    hw_f32 = H * W * 4
    budget = 12 * 1024 * 1024                               # per-step target

    # Channel tile: double-buffered (1, Tc, H, W) input block within budget.
    Tc = _largest_divisor_leq(C, budget // max(2 * hw_in, 1))
    # Batch fold: amortize per-grid-step overhead while staying within budget.
    per_batch = 2 * Tc * hw_in + 2 * hw_in + 2 * hw_f32     # in + out + scratch
    Bt = _largest_divisor_leq(B, min(8, budget // max(per_batch, 1)))

    grid = (B // Bt, C // Tc)
    kernel = functools.partial(_sattn_kernel, C=C)

    return pl.pallas_call(
        kernel,
        out_shape=jax.ShapeDtypeStruct((B, 1, H, W), x.dtype),
        grid=grid,
        in_specs=[
            pl.BlockSpec(memory_space=pltpu.MemorySpace.SMEM),          # weights
            pl.BlockSpec(memory_space=pltpu.MemorySpace.SMEM),          # bias
            pl.BlockSpec((Bt, Tc, H, W), lambda bi, ci: (bi, ci, 0, 0)),  # x slab
        ],
        out_specs=pl.BlockSpec((Bt, 1, H, W), lambda bi, ci: (bi, 0, 0, 0)),
        scratch_shapes=[
            pltpu.VMEM((Bt, H, W), jnp.float32),   # running channel sum
            pltpu.VMEM((Bt, H, W), jnp.float32),   # running channel max
        ],
        compiler_params=pltpu.CompilerParams(
            dimension_semantics=("parallel", "arbitrary"),
            vmem_limit_bytes=32 * 1024 * 1024,
        ),
    )(w_flat, b_flat, x)


# ----------------------------- reference (plain JAX) for sanity --------------
def spatial_attention_ref(x, weight, bias):
    x_avg = jnp.mean(x, axis=1, keepdims=True)
    x_max = jnp.max(x, axis=1, keepdims=True)
    x2 = jnp.concatenate([x_avg, x_max], axis=1)
    x2p = jnp.pad(x2, ((0, 0), (0, 0), (3, 3), (3, 3)), mode="reflect")
    out = jax.lax.conv_general_dilated(
        x2p, weight, window_strides=(1, 1), padding="VALID",
        dimension_numbers=("NCHW", "OIHW", "NCHW"))
    return out + bias.reshape(1, 1, 1, 1)


if __name__ == "__main__":
    key = jax.random.PRNGKey(0)
    kx, kw, kb = jax.random.split(key, 3)

    B, C, H, W = 2, 4, 16, 16
    x = jax.random.normal(kx, (B, C, H, W), dtype=jnp.float32)

    # Deterministic synthetic parameters (Conv2d(2, 1, 7) -> weight (1,2,7,7), bias (1,)).
    weight = 0.05 * jax.random.normal(kw, (1, 2, 7, 7), dtype=jnp.float32)
    bias = 0.1 * jax.random.normal(kb, (1,), dtype=jnp.float32)

    out = jax.block_until_ready(spatial_attention(x, weight, bias))
    ref = jax.block_until_ready(spatial_attention_ref(x, weight, bias))

    assert out.shape == (B, 1, H, W), out.shape
    assert jnp.allclose(out, ref, atol=1e-4, rtol=1e-4), \
        f"max abs diff = {jnp.max(jnp.abs(out - ref))}"
    print("KERNEL_OK")
</pallas_src>

<mosaic_0001>
module attributes {stable_mosaic.version = 11 : i64} {
  func.func @_sattn_kernel(%arg0: i32, %arg1: i32, %arg2: memref<98xf32, #tpu.memory_space<smem>>, %arg3: memref<1xf32, #tpu.memory_space<smem>>, %arg4: memref<2x4x16x16xf32, #tpu.memory_space<vmem>>, %arg5: memref<2x1x16x16xf32, #tpu.memory_space<vmem>>, %arg6: memref<2x16x16xf32, #tpu.memory_space<vmem>>, %arg7: memref<2x16x16xf32, #tpu.memory_space<vmem>>) attributes {dimension_semantics = [#tpu.dimension_semantics<parallel>, #tpu.dimension_semantics<arbitrary>], iteration_bounds = array<i64: 1, 1>, scalar_prefetch = 0 : i64, scratch_operands = 2 : i64, tpu.core_type = #tpu.core_type<tc>, window_params = [{transform_indices = @transform_0, window_bounds = array<i64: 98>}, {transform_indices = @transform_1, window_bounds = array<i64: 1>}, {transform_indices = @transform_2, window_bounds = array<i64: 2, 4, 16, 16>}, {transform_indices = @transform_3, window_bounds = array<i64: 2, 1, 16, 16>}]} {
    %c0_i32 = arith.constant 0 : i32
    %0 = arith.cmpi eq, %arg1, %c0_i32 : i32
    %1 = arith.extui %0 : i1 to i32
    %c0_i32_0 = arith.constant 0 : i32
    %2 = arith.cmpi ne, %1, %c0_i32_0 : i32
    scf.if %2 {
      %cst = arith.constant 0.000000e+00 : f32
      %58 = vector.broadcast %cst : f32 to vector<2x16x16xf32>
      %c0_55 = arith.constant 0 : index
      %c0_56 = arith.constant 0 : index
      %c0_57 = arith.constant 0 : index
      %59 = vector.load %arg6[%c0_55, %c0_56, %c0_57] : memref<2x16x16xf32, #tpu.memory_space<vmem>>, vector<2x16x16xf32>
      tpu.vector_store %arg6[%c0_55, %c0_56, %c0_57], %58 {strides = array<i32>} : memref<2x16x16xf32, #tpu.memory_space<vmem>>, vector<2x16x16xf32>,
      %cst_58 = arith.constant 0xFF800000 : f32
      %60 = vector.broadcast %cst_58 : f32 to vector<2x16x16xf32>
      %c0_59 = arith.constant 0 : index
      %c0_60 = arith.constant 0 : index
      %c0_61 = arith.constant 0 : index
      %61 = vector.load %arg7[%c0_59, %c0_60, %c0_61] : memref<2x16x16xf32, #tpu.memory_space<vmem>>, vector<2x16x16xf32>
      tpu.vector_store %arg7[%c0_59, %c0_60, %c0_61], %60 {strides = array<i32>} : memref<2x16x16xf32, #tpu.memory_space<vmem>>, vector<2x16x16xf32>,
    } else {
    }
    %c0 = arith.constant 0 : index
    %c0_1 = arith.constant 0 : index
    %c0_2 = arith.constant 0 : index
    %3 = vector.load %arg6[%c0, %c0_1, %c0_2] : memref<2x16x16xf32, #tpu.memory_space<vmem>>, vector<1x16x16xf32>
    %4 = vector.shape_cast %3 : vector<1x16x16xf32> to vector<16x16xf32>
    %c0_3 = arith.constant 0 : index
    %c0_4 = arith.constant 0 : index
    %c0_5 = arith.constant 0 : index
    %5 = vector.load %arg7[%c0_3, %c0_4, %c0_5] : memref<2x16x16xf32, #tpu.memory_space<vmem>>, vector<1x16x16xf32>
    %6 = vector.shape_cast %5 : vector<1x16x16xf32> to vector<16x16xf32>
    %c0_6 = arith.constant 0 : index
    %c0_7 = arith.constant 0 : index
    %c0_8 = arith.constant 0 : index
    %c0_9 = arith.constant 0 : index
    %7 = vector.load %arg4[%c0_6, %c0_7, %c0_8, %c0_9] : memref<2x4x16x16xf32, #tpu.memory_space<vmem>>, vector<1x1x16x16xf32>
    %8 = vector.shape_cast %7 : vector<1x1x16x16xf32> to vector<16x16xf32>
    %9 = arith.addf %4, %8 : vector<16x16xf32>
    %10 = arith.maximumf %6, %8 : vector<16x16xf32>
    %c0_10 = arith.constant 0 : index
    %c1 = arith.constant 1 : index
    %c0_11 = arith.constant 0 : index
    %c0_12 = arith.constant 0 : index
    %11 = vector.load %arg4[%c0_10, %c1, %c0_11, %c0_12] : memref<2x4x16x16xf32, #tpu.memory_space<vmem>>, vector<1x1x16x16xf32>
    %12 = vector.shape_cast %11 : vector<1x1x16x16xf32> to vector<16x16xf32>
    %13 = arith.addf %9, %12 : vector<16x16xf32>
    %14 = arith.maximumf %10, %12 : vector<16x16xf32>
    %c0_13 = arith.constant 0 : index
    %c2 = arith.constant 2 : index
    %c0_14 = arith.constant 0 : index
    %c0_15 = arith.constant 0 : index
    %15 = vector.load %arg4[%c0_13, %c2, %c0_14, %c0_15] : memref<2x4x16x16xf32, #tpu.memory_space<vmem>>, vector<1x1x16x16xf32>
    %16 = vector.shape_cast %15 : vector<1x1x16x16xf32> to vector<16x16xf32>
    %17 = arith.addf %13, %16 : vector<16x16xf32>
    %18 = arith.maximumf %14, %16 : vector<16x16xf32>
    %c0_16 = arith.constant 0 : index
    %c3 = arith.constant 3 : index
    %c0_17 = arith.constant 0 : index
    %c0_18 = arith.constant 0 : index
    %19 = vector.load %arg4[%c0_16, %c3, %c0_17, %c0_18] : memref<2x4x16x16xf32, #tpu.memory_space<vmem>>, vector<1x1x16x16xf32>
    %20 = vector.shape_cast %19 : vector<1x1x16x16xf32> to vector<16x16xf32>
    %21 = arith.addf %17, %20 : vector<16x16xf32>
    %22 = arith.maximumf %18, %20 : vector<16x16xf32>
    %c0_19 = arith.constant 0 : index
    %c0_20 = arith.constant 0 : index
    %c0_21 = arith.constant 0 : index
    %23 = vector.load %arg6[%c0_19, %c0_20, %c0_21] : memref<2x16x16xf32, #tpu.memory_space<vmem>>, vector<1x16x16xf32>
    %24 = vector.shape_cast %23 : vector<1x16x16xf32> to vector<16x16xf32>
    %25 = vector.shape_cast %21 : vector<16x16xf32> to vector<1x16x16xf32>
    tpu.vector_store %arg6[%c0_19, %c0_20, %c0_21], %25 {strides = array<i32>} : memref<2x16x16xf32, #tpu.memory_space<vmem>>, vector<1x16x16xf32>,
    %c0_22 = arith.constant 0 : index
    %c0_23 = arith.constant 0 : index
    %c0_24 = arith.constant 0 : index
    %26 = vector.load %arg7[%c0_22, %c0_23, %c0_24] : memref<2x16x16xf32, #tpu.memory_space<vmem>>, vector<1x16x16xf32>
    %27 = vector.shape_cast %26 : vector<1x16x16xf32> to vector<16x16xf32>
    %28 = vector.shape_cast %22 : vector<16x16xf32> to vector<1x16x16xf32>
    tpu.vector_store %arg7[%c0_22, %c0_23, %c0_24], %28 {strides = array<i32>} : memref<2x16x16xf32, #tpu.memory_space<vmem>>, vector<1x16x16xf32>,
    %c1_25 = arith.constant 1 : index
    %c0_26 = arith.constant 0 : index
    %c0_27 = arith.constant 0 : index
    %29 = vector.load %arg6[%c1_25, %c0_26, %c0_27] : memref<2x16x16xf32, #tpu.memory_space<vmem>>, vector<1x16x16xf32>
    %30 = vector.shape_cast %29 : vector<1x16x16xf32> to vector<16x16xf32>
    %c1_28 = arith.constant 1 : index
    %c0_29 = arith.constant 0 : index
    %c0_30 = arith.constant 0 : index
    %31 = vector.load %arg7[%c1_28, %c0_29, %c0_30] : memref<2x16x16xf32, #tpu.memory_space<vmem>>, vector<1x16x16xf32>
    %32 = vector.shape_cast %31 : vector<1x16x16xf32> to vector<16x16xf32>
    %c1_31 = arith.constant 1 : index
    %c0_32 = arith.constant 0 : index
    %c0_33 = arith.constant 0 : index
    %c0_34 = arith.constant 0 : index
    %33 = vector.load %arg4[%c1_31, %c0_32, %c0_33, %c0_34] : memref<2x4x16x16xf32, #tpu.memory_space<vmem>>, vector<1x1x16x16xf32>
    %34 = vector.shape_cast %33 : vector<1x1x16x16xf32> to vector<16x16xf32>
    %35 = arith.addf %30, %34 : vector<16x16xf32>
    %36 = arith.maximumf %32, %34 : vector<16x16xf32>
    %c1_35 = arith.constant 1 : index
    %c1_36 = arith.constant 1 : index
    %c0_37 = arith.constant 0 : index
    %c0_38 = arith.constant 0 : index
    %37 = vector.load %arg4[%c1_35, %c1_36, %c0_37, %c0_38] : memref<2x4x16x16xf32, #tpu.memory_space<vmem>>, vector<1x1x16x16xf32>
    %38 = vector.shape_cast %37 : vector<1x1x16x16xf32> to vector<16x16xf32>
    %39 = arith.addf %35, %38 : vector<16x16xf32>
    %40 = arith.maximumf %36, %38 : vector<16x16xf32>
    %c1_39 = arith.constant 1 : index
    %c2_40 = arith.constant 2 : index
    %c0_41 = arith.constant 0 : index
    %c0_42 = arith.constant 0 : index
    %41 = vector.load %arg4[%c1_39, %c2_40, %c0_41, %c0_42] : memref<2x4x16x16xf32, #tpu.memory_space<vmem>>, vector<1x1x16x16xf32>
    %42 = vector.shape_cast %41 : vector<1x1x16x16xf32> to vector<16x16xf32>
    %43 = arith.addf %39, %42 : vector<16x16xf32>
    %44 = arith.maximumf %40, %42 : vector<16x16xf32>
    %c1_43 = arith.constant 1 : index
    %c3_44 = arith.constant 3 : index
    %c0_45 = arith.constant 0 : index
    %c0_46 = arith.constant 0 : index
    %45 = vector.load %arg4[%c1_43, %c3_44, %c0_45, %c0_46] : memref<2x4x16x16xf32, #tpu.memory_space<vmem>>, vector<1x1x16x16xf32>
    %46 = vector.shape_cast %45 : vector<1x1x16x16xf32> to vector<16x16xf32>
    %47 = arith.addf %43, %46 : vector<16x16xf32>
    %48 = arith.maximumf %44, %46 : vector<16x16xf32>
    %c1_47 = arith.constant 1 : index
    %c0_48 = arith.constant 0 : index
    %c0_49 = arith.constant 0 : index
    %49 = vector.load %arg6[%c1_47, %c0_48, %c0_49] : memref<2x16x16xf32, #tpu.memory_space<vmem>>, vector<1x16x16xf32>
    %50 = vector.shape_cast %49 : vector<1x16x16xf32> to vector<16x16xf32>
    %51 = vector.shape_cast %47 : vector<16x16xf32> to vector<1x16x16xf32>
    tpu.vector_store %arg6[%c1_47, %c0_48, %c0_49], %51 {strides = array<i32>} : memref<2x16x16xf32, #tpu.memory_space<vmem>>, vector<1x16x16xf32>,
    %c1_50 = arith.constant 1 : index
    %c0_51 = arith.constant 0 : index
    %c0_52 = arith.constant 0 : index
    %52 = vector.load %arg7[%c1_50, %c0_51, %c0_52] : memref<2x16x16xf32, #tpu.memory_space<vmem>>, vector<1x16x16xf32>
    %53 = vector.shape_cast %52 : vector<1x16x16xf32> to vector<16x16xf32>
    %54 = vector.shape_cast %48 : vector<16x16xf32> to vector<1x16x16xf32>
    tpu.vector_store %arg7[%c1_50, %c0_51, %c0_52], %54 {strides = array<i32>} : memref<2x16x16xf32, #tpu.memory_space<vmem>>, vector<1x16x16xf32>,
    %c0_i32_53 = arith.constant 0 : i32
    %55 = arith.cmpi eq, %arg1, %c0_i32_53 : i32
    %56 = arith.extui %55 : i1 to i32
    %c0_i32_54 = arith.constant 0 : i32
    %57 = arith.cmpi ne, %56, %c0_i32_54 : i32
    scf.if %57 {
      %c0_55 = arith.constant 0 : index
      %58 = memref.load %arg2[%c0_55] : memref<98xf32, #tpu.memory_space<smem>>
      %c1_56 = arith.constant 1 : index
      %59 = memref.load %arg2[%c1_56] : memref<98xf32, #tpu.memory_space<smem>>
      %c2_57 = arith.constant 2 : index
      %60 = memref.load %arg2[%c2_57] : memref<98xf32, #tpu.memory_space<smem>>
      %c3_58 = arith.constant 3 : index
      %61 = memref.load %arg2[%c3_58] : memref<98xf32, #tpu.memory_space<smem>>
      %c4 = arith.constant 4 : index
      %62 = memref.load %arg2[%c4] : memref<98xf32, #tpu.memory_space<smem>>
      %c5 = arith.constant 5 : index
      %63 = memref.load %arg2[%c5] : memref<98xf32, #tpu.memory_space<smem>>
      %c6 = arith.constant 6 : index
      %64 = memref.load %arg2[%c6] : memref<98xf32, #tpu.memory_space<smem>>
      %c7 = arith.constant 7 : index
      %65 = memref.load %arg2[%c7] : memref<98xf32, #tpu.memory_space<smem>>
      %c8 = arith.constant 8 : index
      %66 = memref.load %arg2[%c8] : memref<98xf32, #tpu.memory_space<smem>>
      %c9 = arith.constant 9 : index
      %67 = memref.load %arg2[%c9] : memref<98xf32, #tpu.memory_space<smem>>
      %c10 = arith.constant 10 : index
      %68 = memref.load %arg2[%c10] : memref<98xf32, #tpu.memory_space<smem>>
      %c11 = arith.constant 11 : index
      %69 = memref.load %arg2[%c11] : memref<98xf32, #tpu.memory_space<smem>>
      %c12 = arith.constant 12 : index
      %70 = memref.load %arg2[%c12] : memref<98xf32, #tpu.memory_space<smem>>
      %c13 = arith.constant 13 : index
      %71 = memref.load %arg2[%c13] : memref<98xf32, #tpu.memory_space<smem>>
      %c14 = arith.constant 14 : index
      %72 = memref.load %arg2[%c14] : memref<98xf32, #tpu.memory_space<smem>>
      %c15 = arith.constant 15 : index
      %73 = memref.load %arg2[%c15] : memref<98xf32, #tpu.memory_space<smem>>
      %c16 = arith.constant 16 : index
      %74 = memref.load %arg2[%c16] : memref<98xf32, #tpu.memory_space<smem>>
      %c17 = arith.constant 17 : index
      %75 = memref.load %arg2[%c17] : memref<98xf32, #tpu.memory_space<smem>>
      %c18 = arith.constant 18 : index
      %76 = memref.load %arg2[%c18] : memref<98xf32, #tpu.memory_space<smem>>
      %c19 = arith.constant 19 : index
      %77 = memref.load %arg2[%c19] : memref<98xf32, #tpu.memory_space<smem>>
      %c20 = arith.constant 20 : index
      %78 = memref.load %arg2[%c20] : memref<98xf32, #tpu.memory_space<smem>>
      %c21 = arith.constant 21 : index
      %79 = memref.load %arg2[%c21] : memref<98xf32, #tpu.memory_space<smem>>
      %c22 = arith.constant 22 : index
      %80 = memref.load %arg2[%c22] : memref<98xf32, #tpu.memory_space<smem>>
      %c23 = arith.constant 23 : index
      %81 = memref.load %arg2[%c23] : memref<98xf32, #tpu.memory_space<smem>>
      %c24 = arith.constant 24 : index
      %82 = memref.load %arg2[%c24] : memref<98xf32, #tpu.memory_space<smem>>
      %c25 = arith.constant 25 : index
      %83 = memref.load %arg2[%c25] : memref<98xf32, #tpu.memory_space<smem>>
      %c26 = arith.constant 26 : index
      %84 = memref.load %arg2[%c26] : memref<98xf32, #tpu.memory_space<smem>>
      %c27 = arith.constant 27 : index
      %85 = memref.load %arg2[%c27] : memref<98xf32, #tpu.memory_space<smem>>
      %c28 = arith.constant 28 : index
      %86 = memref.load %arg2[%c28] : memref<98xf32, #tpu.memory_space<smem>>
      %c29 = arith.constant 29 : index
      %87 = memref.load %arg2[%c29] : memref<98xf32, #tpu.memory_space<smem>>
      %c30 = arith.constant 30 : index
      %88 = memref.load %arg2[%c30] : memref<98xf32, #tpu.memory_space<smem>>
      %c31 = arith.constant 31 : index
      %89 = memref.load %arg2[%c31] : memref<98xf32, #tpu.memory_space<smem>>
      %c32 = arith.constant 32 : index
      %90 = memref.load %arg2[%c32] : memref<98xf32, #tpu.memory_space<smem>>
      %c33 = arith.constant 33 : index
      %91 = memref.load %arg2[%c33] : memref<98xf32, #tpu.memory_space<smem>>
      %c34 = arith.constant 34 : index
      %92 = memref.load %arg2[%c34] : memref<98xf32, #tpu.memory_space<smem>>
      %c35 = arith.constant 35 : index
      %93 = memref.load %arg2[%c35] : memref<98xf32, #tpu.memory_space<smem>>
      %c36 = arith.constant 36 : index
      %94 = memref.load %arg2[%c36] : memref<98xf32, #tpu.memory_space<smem>>
      %c37 = arith.constant 37 : index
      %95 = memref.load %arg2[%c37] : memref<98xf32, #tpu.memory_space<smem>>
      %c38 = arith.constant 38 : index
      %96 = memref.load %arg2[%c38] : memref<98xf32, #tpu.memory_space<smem>>
      %c39 = arith.constant 39 : index
      %97 = memref.load %arg2[%c39] : memref<98xf32, #tpu.memory_space<smem>>
      %c40 = arith.constant 40 : index
      %98 = memref.load %arg2[%c40] : memref<98xf32, #tpu.memory_space<smem>>
      %c41 = arith.constant 41 : index
      %99 = memref.load %arg2[%c41] : memref<98xf32, #tpu.memory_space<smem>>
      %c42 = arith.constant 42 : index
      %100 = memref.load %arg2[%c42] : memref<98xf32, #tpu.memory_space<smem>>
      %c43 = arith.constant 43 : index
      %101 = memref.load %arg2[%c43] : memref<98xf32, #tpu.memory_space<smem>>
      %c44 = arith.constant 44 : index
      %102 = memref.load %arg2[%c44] : memref<98xf32, #tpu.memory_space<smem>>
      %c45 = arith.constant 45 : index
      %103 = memref.load %arg2[%c45] : memref<98xf32, #tpu.memory_space<smem>>
      %c46 = arith.constant 46 : index
      %104 = memref.load %arg2[%c46] : memref<98xf32, #tpu.memory_space<smem>>
      %c47 = arith.constant 47 : index
      %105 = memref.load %arg2[%c47] : memref<98xf32, #tpu.memory_space<smem>>
      %c48 = arith.constant 48 : index
      %106 = memref.load %arg2[%c48] : memref<98xf32, #tpu.memory_space<smem>>
      %c49 = arith.constant 49 : index
      %107 = memref.load %arg2[%c49] : memref<98xf32, #tpu.memory_space<smem>>
      %c50 = arith.constant 50 : index
      %108 = memref.load %arg2[%c50] : memref<98xf32, #tpu.memory_space<smem>>
      %c51 = arith.constant 51 : index
      %109 = memref.load %arg2[%c51] : memref<98xf32, #tpu.memory_space<smem>>
      %c52 = arith.constant 52 : index
      %110 = memref.load %arg2[%c52] : memref<98xf32, #tpu.memory_space<smem>>
      %c53 = arith.constant 53 : index
      %111 = memref.load %arg2[%c53] : memref<98xf32, #tpu.memory_space<smem>>
      %c54 = arith.constant 54 : index
      %112 = memref.load %arg2[%c54] : memref<98xf32, #tpu.memory_space<smem>>
      %c55 = arith.constant 55 : index
      %113 = memref.load %arg2[%c55] : memref<98xf32, #tpu.memory_space<smem>>
      %c56 = arith.constant 56 : index
      %114 = memref.load %arg2[%c56] : memref<98xf32, #tpu.memory_space<smem>>
      %c57 = arith.constant 57 : index
      %115 = memref.load %arg2[%c57] : memref<98xf32, #tpu.memory_space<smem>>
      %c58 = arith.constant 58 : index
      %116 = memref.load %arg2[%c58] : memref<98xf32, #tpu.memory_space<smem>>
      %c59 = arith.constant 59 : index
      %117 = memref.load %arg2[%c59] : memref<98xf32, #tpu.memory_space<smem>>
      %c60 = arith.constant 60 : index
      %118 = memref.load %arg2[%c60] : memref<98xf32, #tpu.memory_space<smem>>
      %c61 = arith.constant 61 : index
      %119 = memref.load %arg2[%c61] : memref<98xf32, #tpu.memory_space<smem>>
      %c62 = arith.constant 62 : index
      %120 = memref.load %arg2[%c62] : memref<98xf32, #tpu.memory_space<smem>>
      %c63 = arith.constant 63 : index
      %121 = memref.load %arg2[%c63] : memref<98xf32, #tpu.memory_space<smem>>
      %c64 = arith.constant 64 : index
      %122 = memref.load %arg2[%c64] : memref<98xf32, #tpu.memory_space<smem>>
      %c65 = arith.constant 65 : index
      %123 = memref.load %arg2[%c65] : memref<98xf32, #tpu.memory_space<smem>>
      %c66 = arith.constant 66 : index
      %124 = memref.load %arg2[%c66] : memref<98xf32, #tpu.memory_space<smem>>
      %c67 = arith.constant 67 : index
      %125 = memref.load %arg2[%c67] : memref<98xf32, #tpu.memory_space<smem>>
      %c68 = arith.constant 68 : index
      %126 = memref.load %arg2[%c68] : memref<98xf32, #tpu.memory_space<smem>>
      %c69 = arith.constant 69 : index
      %127 = memref.load %arg2[%c69] : memref<98xf32, #tpu.memory_space<smem>>
      %c70 = arith.constant 70 : index
      %128 = memref.load %arg2[%c70] : memref<98xf32, #tpu.memory_space<smem>>
      %c71 = arith.constant 71 : index
      %129 = memref.load %arg2[%c71] : memref<98xf32, #tpu.memory_space<smem>>
      %c72 = arith.constant 72 : index
      %130 = memref.load %arg2[%c72] : memref<98xf32, #tpu.memory_space<smem>>
      %c73 = arith.constant 73 : index
      %131 = memref.load %arg2[%c73] : memref<98xf32, #tpu.memory_space<smem>>
      %c74 = arith.constant 74 : index
      %132 = memref.load %arg2[%c74] : memref<98xf32, #tpu.memory_space<smem>>
      %c75 = arith.constant 75 : index
      %133 = memref.load %arg2[%c75] : memref<98xf32, #tpu.memory_space<smem>>
      %c76 = arith.constant 76 : index
      %134 = memref.load %arg2[%c76] : memref<98xf32, #tpu.memory_space<smem>>
      %c77 = arith.constant 77 : index
      %135 = memref.load %arg2[%c77] : memref<98xf32, #tpu.memory_space<smem>>
      %c78 = arith.constant 78 : index
      %136 = memref.load %arg2[%c78] : memref<98xf32, #tpu.memory_space<smem>>
      %c79 = arith.constant 79 : index
      %137 = memref.load %arg2[%c79] : memref<98xf32, #tpu.memory_space<smem>>
      %c80 = arith.constant 80 : index
      %138 = memref.load %arg2[%c80] : memref<98xf32, #tpu.memory_space<smem>>
      %c81 = arith.constant 81 : index
      %139 = memref.load %arg2[%c81] : memref<98xf32, #tpu.memory_space<smem>>
      %c82 = arith.constant 82 : index
      %140 = memref.load %arg2[%c82] : memref<98xf32, #tpu.memory_space<smem>>
      %c83 = arith.constant 83 : index
      %141 = memref.load %arg2[%c83] : memref<98xf32, #tpu.memory_space<smem>>
      %c84 = arith.constant 84 : index
      %142 = memref.load %arg2[%c84] : memref<98xf32, #tpu.memory_space<smem>>
      %c85 = arith.constant 85 : index
      %143 = memref.load %arg2[%c85] : memref<98xf32, #tpu.memory_space<smem>>
      %c86 = arith.constant 86 : index
      %144 = memref.load %arg2[%c86] : memref<98xf32, #tpu.memory_space<smem>>
      %c87 = arith.constant 87 : index
      %145 = memref.load %arg2[%c87] : memref<98xf32, #tpu.memory_space<smem>>
      %c88 = arith.constant 88 : index
      %146 = memref.load %arg2[%c88] : memref<98xf32, #tpu.memory_space<smem>>
      %c89 = arith.constant 89 : index
      %147 = memref.load %arg2[%c89] : memref<98xf32, #tpu.memory_space<smem>>
      %c90 = arith.constant 90 : index
      %148 = memref.load %arg2[%c90] : memref<98xf32, #tpu.memory_space<smem>>
      %c91 = arith.constant 91 : index
      %149 = memref.load %arg2[%c91] : memref<98xf32, #tpu.memory_space<smem>>
      %c92 = arith.constant 92 : index
      %150 = memref.load %arg2[%c92] : memref<98xf32, #tpu.memory_space<smem>>
      %c93 = arith.constant 93 : index
      %151 = memref.load %arg2[%c93] : memref<98xf32, #tpu.memory_space<smem>>
      %c94 = arith.constant 94 : index
      %152 = memref.load %arg2[%c94] : memref<98xf32, #tpu.memory_space<smem>>
      %c95 = arith.constant 95 : index
      %153 = memref.load %arg2[%c95] : memref<98xf32, #tpu.memory_space<smem>>
      %c96 = arith.constant 96 : index
      %154 = memref.load %arg2[%c96] : memref<98xf32, #tpu.memory_space<smem>>
      %c97 = arith.constant 97 : index
      %155 = memref.load %arg2[%c97] : memref<98xf32, #tpu.memory_space<smem>>
      %c0_59 = arith.constant 0 : index
      %156 = memref.load %arg3[%c0_59] : memref<1xf32, #tpu.memory_space<smem>>
      %c0_60 = arith.constant 0 : index
      %c0_61 = arith.constant 0 : index
      %c0_62 = arith.constant 0 : index
      %157 = vector.load %arg6[%c0_60, %c0_61, %c0_62] : memref<2x16x16xf32, #tpu.memory_space<vmem>>, vector<1x16x16xf32>
      %158 = vector.shape_cast %157 : vector<1x16x16xf32> to vector<16x16xf32>
      %cst = arith.constant 2.500000e-01 : f32
      %159 = vector.broadcast %cst : f32 to vector<16x16xf32>
      %160 = arith.mulf %158, %159 : vector<16x16xf32>
      %161 = vector.extract_strided_slice %160 {offsets = [3, 0], sizes = [1, 16], strides = [1, 1]} : vector<16x16xf32> to vector<1x16xf32>
      %162 = vector.extract_strided_slice %160 {offsets = [2, 0], sizes = [1, 16], strides = [1, 1]} : vector<16x16xf32> to vector<1x16xf32>
      %163 = vector.extract_strided_slice %160 {offsets = [1, 0], sizes = [1, 16], strides = [1, 1]} : vector<16x16xf32> to vector<1x16xf32>
      %164 = tpu.concatenate %161, %162, %163 in 0 : vector<1x16xf32>, vector<1x16xf32>, vector<1x16xf32> -> vector<3x16xf32>
      %165 = vector.extract_strided_slice %160 {offsets = [14, 0], sizes = [1, 16], strides = [1, 1]} : vector<16x16xf32> to vector<1x16xf32>
      %166 = vector.extract_strided_slice %160 {offsets = [13, 0], sizes = [1, 16], strides = [1, 1]} : vector<16x16xf32> to vector<1x16xf32>
      %167 = vector.extract_strided_slice %160 {offsets = [12, 0], sizes = [1, 16], strides = [1, 1]} : vector<16x16xf32> to vector<1x16xf32>
      %168 = tpu.concatenate %165, %166, %167 in 0 : vector<1x16xf32>, vector<1x16xf32>, vector<1x16xf32> -> vector<3x16xf32>
      %169 = tpu.concatenate %164, %160, %168 in 0 : vector<3x16xf32>, vector<16x16xf32>, vector<3x16xf32> -> vector<22x16xf32>
      %170 = vector.extract_strided_slice %169 {offsets = [0, 3], sizes = [22, 1], strides = [1, 1]} : vector<22x16xf32> to vector<22x1xf32>
      %171 = vector.extract_strided_slice %169 {offsets = [0, 2], sizes = [22, 1], strides = [1, 1]} : vector<22x16xf32> to vector<22x1xf32>
      %172 = vector.extract_strided_slice %169 {offsets = [0, 1], sizes = [22, 1], strides = [1, 1]} : vector<22x16xf32> to vector<22x1xf32>
      %173 = tpu.concatenate %170, %171, %172 in 1 : vector<22x1xf32>, vector<22x1xf32>, vector<22x1xf32> -> vector<22x3xf32>
      %174 = vector.extract_strided_slice %169 {offsets = [0, 14], sizes = [22, 1], strides = [1, 1]} : vector<22x16xf32> to vector<22x1xf32>
      %175 = vector.extract_strided_slice %169 {offsets = [0, 13], sizes = [22, 1], strides = [1, 1]} : vector<22x16xf32> to vector<22x1xf32>
      %176 = vector.extract_strided_slice %169 {offsets = [0, 12], sizes = [22, 1], strides = [1, 1]} : vector<22x16xf32> to vector<22x1xf32>
      %177 = tpu.concatenate %174, %175, %176 in 1 : vector<22x1xf32>, vector<22x1xf32>, vector<22x1xf32> -> vector<22x3xf32>
      %178 = tpu.concatenate %173, %169, %177 in 1 : vector<22x3xf32>, vector<22x16xf32>, vector<22x3xf32> -> vector<22x22xf32>
      %c0_63 = arith.constant 0 : index
      %c0_64 = arith.constant 0 : index
      %c0_65 = arith.constant 0 : index
      %179 = vector.load %arg7[%c0_63, %c0_64, %c0_65] : memref<2x16x16xf32, #tpu.memory_space<vmem>>, vector<1x16x16xf32>
      %180 = vector.shape_cast %179 : vector<1x16x16xf32> to vector<16x16xf32>
      %181 = vector.extract_strided_slice %180 {offsets = [3, 0], sizes = [1, 16], strides = [1, 1]} : vector<16x16xf32> to vector<1x16xf32>
      %182 = vector.extract_strided_slice %180 {offsets = [2, 0], sizes = [1, 16], strides = [1, 1]} : vector<16x16xf32> to vector<1x16xf32>
      %183 = vector.extract_strided_slice %180 {offsets = [1, 0], sizes = [1, 16], strides = [1, 1]} : vector<16x16xf32> to vector<1x16xf32>
      %184 = tpu.concatenate %181, %182, %183 in 0 : vector<1x16xf32>, vector<1x16xf32>, vector<1x16xf32> -> vector<3x16xf32>
      %185 = vector.extract_strided_slice %180 {offsets = [14, 0], sizes = [1, 16], strides = [1, 1]} : vector<16x16xf32> to vector<1x16xf32>
      %186 = vector.extract_strided_slice %180 {offsets = [13, 0], sizes = [1, 16], strides = [1, 1]} : vector<16x16xf32> to vector<1x16xf32>
      %187 = vector.extract_strided_slice %180 {offsets = [12, 0], sizes = [1, 16], strides = [1, 1]} : vector<16x16xf32> to vector<1x16xf32>
      %188 = tpu.concatenate %185, %186, %187 in 0 : vector<1x16xf32>, vector<1x16xf32>, vector<1x16xf32> -> vector<3x16xf32>
      %189 = tpu.concatenate %184, %180, %188 in 0 : vector<3x16xf32>, vector<16x16xf32>, vector<3x16xf32> -> vector<22x16xf32>
      %190 = vector.extract_strided_slice %189 {offsets = [0, 3], sizes = [22, 1], strides = [1, 1]} : vector<22x16xf32> to vector<22x1xf32>
      %191 = vector.extract_strided_slice %189 {offsets = [0, 2], sizes = [22, 1], strides = [1, 1]} : vector<22x16xf32> to vector<22x1xf32>
      %192 = vector.extract_strided_slice %189 {offsets = [0, 1], sizes = [22, 1], strides = [1, 1]} : vector<22x16xf32> to vector<22x1xf32>
      %193 = tpu.concatenate %190, %191, %192 in 1 : vector<22x1xf32>, vector<22x1xf32>, vector<22x1xf32> -> vector<22x3xf32>
      %194 = vector.extract_strided_slice %189 {offsets = [0, 14], sizes = [22, 1], strides = [1, 1]} : vector<22x16xf32> to vector<22x1xf32>
      %195 = vector.extract_strided_slice %189 {offsets = [0, 13], sizes = [22, 1], strides = [1, 1]} : vector<22x16xf32> to vector<22x1xf32>
      %196 = vector.extract_strided_slice %189 {offsets = [0, 12], sizes = [22, 1], strides = [1, 1]} : vector<22x16xf32> to vector<22x1xf32>
      %197 = tpu.concatenate %194, %195, %196 in 1 : vector<22x1xf32>, vector<22x1xf32>, vector<22x1xf32> -> vector<22x3xf32>
      %198 = tpu.concatenate %193, %189, %197 in 1 : vector<22x3xf32>, vector<22x16xf32>, vector<22x3xf32> -> vector<22x22xf32>
      %199 = vector.extract_strided_slice %178 {offsets = [0, 0], sizes = [16, 22], strides = [1, 1]} : vector<22x22xf32> to vector<16x22xf32>
      %200 = vector.extract_strided_slice %178 {offsets = [1, 0], sizes = [16, 22], strides = [1, 1]} : vector<22x22xf32> to vector<16x22xf32>
      %201 = vector.extract_strided_slice %178 {offsets = [2, 0], sizes = [16, 22], strides = [1, 1]} : vector<22x22xf32> to vector<16x22xf32>
      %202 = vector.extract_strided_slice %178 {offsets = [3, 0], sizes = [16, 22], strides = [1, 1]} : vector<22x22xf32> to vector<16x22xf32>
      %203 = vector.extract_strided_slice %178 {offsets = [4, 0], sizes = [16, 22], strides = [1, 1]} : vector<22x22xf32> to vector<16x22xf32>
      %204 = vector.extract_strided_slice %178 {offsets = [5, 0], sizes = [16, 22], strides = [1, 1]} : vector<22x22xf32> to vector<16x22xf32>
      %205 = vector.extract_strided_slice %178 {offsets = [6, 0], sizes = [16, 22], strides = [1, 1]} : vector<22x22xf32> to vector<16x22xf32>
      %206 = vector.extract_strided_slice %198 {offsets = [0, 0], sizes = [16, 22], strides = [1, 1]} : vector<22x22xf32> to vector<16x22xf32>
      %207 = vector.extract_strided_slice %198 {offsets = [1, 0], sizes = [16, 22], strides = [1, 1]} : vector<22x22xf32> to vector<16x22xf32>
      %208 = vector.extract_strided_slice %198 {offsets = [2, 0], sizes = [16, 22], strides = [1, 1]} : vector<22x22xf32> to vector<16x22xf32>
      %209 = vector.extract_strided_slice %198 {offsets = [3, 0], sizes = [16, 22], strides = [1, 1]} : vector<22x22xf32> to vector<16x22xf32>
      %210 = vector.extract_strided_slice %198 {offsets = [4, 0], sizes = [16, 22], strides = [1, 1]} : vector<22x22xf32> to vector<16x22xf32>
      %211 = vector.extract_strided_slice %198 {offsets = [5, 0], sizes = [16, 22], strides = [1, 1]} : vector<22x22xf32> to vector<16x22xf32>
      %212 = vector.extract_strided_slice %198 {offsets = [6, 0], sizes = [16, 22], strides = [1, 1]} : vector<22x22xf32> to vector<16x22xf32>
      %cst_66 = arith.constant 0.000000e+00 : f32
      %213 = vector.broadcast %cst_66 : f32 to vector<16x16xf32>
      %cst_67 = arith.constant 0.000000e+00 : f32
      %214 = vector.broadcast %cst_67 : f32 to vector<16x16xf32>
      %215 = vector.broadcast %58 : f32 to vector<16x22xf32>
      %216 = arith.mulf %215, %199 : vector<16x22xf32>
      %217 = vector.broadcast %107 : f32 to vector<16x22xf32>
      %218 = arith.mulf %217, %206 : vector<16x22xf32>
      %219 = vector.broadcast %65 : f32 to vector<16x22xf32>
      %220 = arith.mulf %219, %200 : vector<16x22xf32>
      %221 = arith.addf %216, %220 : vector<16x22xf32>
      %222 = vector.broadcast %114 : f32 to vector<16x22xf32>
      %223 = arith.mulf %222, %207 : vector<16x22xf32>
      %224 = arith.addf %218, %223 : vector<16x22xf32>
      %225 = vector.broadcast %72 : f32 to vector<16x22xf32>
      %226 = arith.mulf %225, %201 : vector<16x22xf32>
      %227 = arith.addf %221, %226 : vector<16x22xf32>
      %228 = vector.broadcast %121 : f32 to vector<16x22xf32>
      %229 = arith.mulf %228, %208 : vector<16x22xf32>
      %230 = arith.addf %224, %229 : vector<16x22xf32>
      %231 = vector.broadcast %79 : f32 to vector<16x22xf32>
      %232 = arith.mulf %231, %202 : vector<16x22xf32>
      %233 = arith.addf %227, %232 : vector<16x22xf32>
      %234 = vector.broadcast %128 : f32 to vector<16x22xf32>
      %235 = arith.mulf %234, %209 : vector<16x22xf32>
      %236 = arith.addf %230, %235 : vector<16x22xf32>
      %237 = vector.broadcast %86 : f32 to vector<16x22xf32>
      %238 = arith.mulf %237, %203 : vector<16x22xf32>
      %239 = arith.addf %233, %238 : vector<16x22xf32>
      %240 = vector.broadcast %135 : f32 to vector<16x22xf32>
      %241 = arith.mulf %240, %210 : vector<16x22xf32>
      %242 = arith.addf %236, %241 : vector<16x22xf32>
      %243 = vector.broadcast %93 : f32 to vector<16x22xf32>
      %244 = arith.mulf %243, %204 : vector<16x22xf32>
      %245 = arith.addf %239, %244 : vector<16x22xf32>
      %246 = vector.broadcast %142 : f32 to vector<16x22xf32>
      %247 = arith.mulf %246, %211 : vector<16x22xf32>
      %248 = arith.addf %242, %247 : vector<16x22xf32>
      %249 = vector.broadcast %100 : f32 to vector<16x22xf32>
      %250 = arith.mulf %249, %205 : vector<16x22xf32>
      %251 = arith.addf %245, %250 : vector<16x22xf32>
      %252 = vector.broadcast %149 : f32 to vector<16x22xf32>
      %253 = arith.mulf %252, %212 : vector<16x22xf32>
      %254 = arith.addf %248, %253 : vector<16x22xf32>
      %255 = arith.addf %251, %254 : vector<16x22xf32>
      %256 = vector.extract_strided_slice %255 {offsets = [0, 0], sizes = [16, 16], strides = [1, 1]} : vector<16x22xf32> to vector<16x16xf32>
      %257 = arith.addf %213, %256 : vector<16x16xf32>
      %258 = vector.broadcast %59 : f32 to vector<16x22xf32>
      %259 = arith.mulf %258, %199 : vector<16x22xf32>
      %260 = vector.broadcast %108 : f32 to vector<16x22xf32>
      %261 = arith.mulf %260, %206 : vector<16x22xf32>
      %262 = vector.broadcast %66 : f32 to vector<16x22xf32>
      %263 = arith.mulf %262, %200 : vector<16x22xf32>
      %264 = arith.addf %259, %263 : vector<16x22xf32>
      %265 = vector.broadcast %115 : f32 to vector<16x22xf32>
      %266 = arith.mulf %265, %207 : vector<16x22xf32>
      %267 = arith.addf %261, %266 : vector<16x22xf32>
      %268 = vector.broadcast %73 : f32 to vector<16x22xf32>
      %269 = arith.mulf %268, %201 : vector<16x22xf32>
      %270 = arith.addf %264, %269 : vector<16x22xf32>
      %271 = vector.broadcast %122 : f32 to vector<16x22xf32>
      %272 = arith.mulf %271, %208 : vector<16x22xf32>
      %273 = arith.addf %267, %272 : vector<16x22xf32>
      %274 = vector.broadcast %80 : f32 to vector<16x22xf32>
      %275 = arith.mulf %274, %202 : vector<16x22xf32>
      %276 = arith.addf %270, %275 : vector<16x22xf32>
      %277 = vector.broadcast %129 : f32 to vector<16x22xf32>
      %278 = arith.mulf %277, %209 : vector<16x22xf32>
      %279 = arith.addf %273, %278 : vector<16x22xf32>
      %280 = vector.broadcast %87 : f32 to vector<16x22xf32>
      %281 = arith.mulf %280, %203 : vector<16x22xf32>
      %282 = arith.addf %276, %281 : vector<16x22xf32>
      %283 = vector.broadcast %136 : f32 to vector<16x22xf32>
      %284 = arith.mulf %283, %210 : vector<16x22xf32>
      %285 = arith.addf %279, %284 : vector<16x22xf32>
      %286 = vector.broadcast %94 : f32 to vector<16x22xf32>
      %287 = arith.mulf %286, %204 : vector<16x22xf32>
      %288 = arith.addf %282, %287 : vector<16x22xf32>
      %289 = vector.broadcast %143 : f32 to vector<16x22xf32>
      %290 = arith.mulf %289, %211 : vector<16x22xf32>
      %291 = arith.addf %285, %290 : vector<16x22xf32>
      %292 = vector.broadcast %101 : f32 to vector<16x22xf32>
      %293 = arith.mulf %292, %205 : vector<16x22xf32>
      %294 = arith.addf %288, %293 : vector<16x22xf32>
      %295 = vector.broadcast %150 : f32 to vector<16x22xf32>
      %296 = arith.mulf %295, %212 : vector<16x22xf32>
      %297 = arith.addf %291, %296 : vector<16x22xf32>
      %298 = arith.addf %294, %297 : vector<16x22xf32>
      %299 = vector.extract_strided_slice %298 {offsets = [0, 1], sizes = [16, 16], strides = [1, 1]} : vector<16x22xf32> to vector<16x16xf32>
      %300 = arith.addf %214, %299 : vector<16x16xf32>
      %301 = vector.broadcast %60 : f32 to vector<16x22xf32>
      %302 = arith.mulf %301, %199 : vector<16x22xf32>
      %303 = vector.broadcast %109 : f32 to vector<16x22xf32>
      %304 = arith.mulf %303, %206 : vector<16x22xf32>
      %305 = vector.broadcast %67 : f32 to vector<16x22xf32>
      %306 = arith.mulf %305, %200 : vector<16x22xf32>
      %307 = arith.addf %302, %306 : vector<16x22xf32>
      %308 = vector.broadcast %116 : f32 to vector<16x22xf32>
      %309 = arith.mulf %308, %207 : vector<16x22xf32>
      %310 = arith.addf %304, %309 : vector<16x22xf32>
      %311 = vector.broadcast %74 : f32 to vector<16x22xf32>
      %312 = arith.mulf %311, %201 : vector<16x22xf32>
      %313 = arith.addf %307, %312 : vector<16x22xf32>
      %314 = vector.broadcast %123 : f32 to vector<16x22xf32>
      %315 = arith.mulf %314, %208 : vector<16x22xf32>
      %316 = arith.addf %310, %315 : vector<16x22xf32>
      %317 = vector.broadcast %81 : f32 to vector<16x22xf32>
      %318 = arith.mulf %317, %202 : vector<16x22xf32>
      %319 = arith.addf %313, %318 : vector<16x22xf32>
      %320 = vector.broadcast %130 : f32 to vector<16x22xf32>
      %321 = arith.mulf %320, %209 : vector<16x22xf32>
      %322 = arith.addf %316, %321 : vector<16x22xf32>
      %323 = vector.broadcast %88 : f32 to vector<16x22xf32>
      %324 = arith.mulf %323, %203 : vector<16x22xf32>
      %325 = arith.addf %319, %324 : vector<16x22xf32>
      %326 = vector.broadcast %137 : f32 to vector<16x22xf32>
      %327 = arith.mulf %326, %210 : vector<16x22xf32>
      %328 = arith.addf %322, %327 : vector<16x22xf32>
      %329 = vector.broadcast %95 : f32 to vector<16x22xf32>
      %330 = arith.mulf %329, %204 : vector<16x22xf32>
      %331 = arith.addf %325, %330 : vector<16x22xf32>
      %332 = vector.broadcast %144 : f32 to vector<16x22xf32>
      %333 = arith.mulf %332, %211 : vector<16x22xf32>
      %334 = arith.addf %328, %333 : vector<16x22xf32>
      %335 = vector.broadcast %102 : f32 to vector<16x22xf32>
      %336 = arith.mulf %335, %205 : vector<16x22xf32>
      %337 = arith.addf %331, %336 : vector<16x22xf32>
      %338 = vector.broadcast %151 : f32 to vector<16x22xf32>
      %339 = arith.mulf %338, %212 : vector<16x22xf32>
      %340 = arith.addf %334, %339 : vector<16x22xf32>
      %341 = arith.addf %337, %340 : vector<16x22xf32>
      %342 = vector.extract_strided_slice %341 {offsets = [0, 2], sizes = [16, 16], strides = [1, 1]} : vector<16x22xf32> to vector<16x16xf32>
      %343 = arith.addf %257, %342 : vector<16x16xf32>
      %344 = vector.broadcast %61 : f32 to vector<16x22xf32>
      %345 = arith.mulf %344, %199 : vector<16x22xf32>
      %346 = vector.broadcast %110 : f32 to vector<16x22xf32>
      %347 = arith.mulf %346, %206 : vector<16x22xf32>
      %348 = vector.broadcast %68 : f32 to vector<16x22xf32>
      %349 = arith.mulf %348, %200 : vector<16x22xf32>
      %350 = arith.addf %345, %349 : vector<16x22xf32>
      %351 = vector.broadcast %117 : f32 to vector<16x22xf32>
      %352 = arith.mulf %351, %207 : vector<16x22xf32>
      %353 = arith.addf %347, %352 : vector<16x22xf32>
      %354 = vector.broadcast %75 : f32 to vector<16x22xf32>
      %355 = arith.mulf %354, %201 : vector<16x22xf32>
      %356 = arith.addf %350, %355 : vector<16x22xf32>
      %357 = vector.broadcast %124 : f32 to vector<16x22xf32>
      %358 = arith.mulf %357, %208 : vector<16x22xf32>
      %359 = arith.addf %353, %358 : vector<16x22xf32>
      %360 = vector.broadcast %82 : f32 to vector<16x22xf32>
      %361 = arith.mulf %360, %202 : vector<16x22xf32>
      %362 = arith.addf %356, %361 : vector<16x22xf32>
      %363 = vector.broadcast %131 : f32 to vector<16x22xf32>
      %364 = arith.mulf %363, %209 : vector<16x22xf32>
      %365 = arith.addf %359, %364 : vector<16x22xf32>
      %366 = vector.broadcast %89 : f32 to vector<16x22xf32>
      %367 = arith.mulf %366, %203 : vector<16x22xf32>
      %368 = arith.addf %362, %367 : vector<16x22xf32>
      %369 = vector.broadcast %138 : f32 to vector<16x22xf32>
      %370 = arith.mulf %369, %210 : vector<16x22xf32>
      %371 = arith.addf %365, %370 : vector<16x22xf32>
      %372 = vector.broadcast %96 : f32 to vector<16x22xf32>
      %373 = arith.mulf %372, %204 : vector<16x22xf32>
      %374 = arith.addf %368, %373 : vector<16x22xf32>
      %375 = vector.broadcast %145 : f32 to vector<16x22xf32>
      %376 = arith.mulf %375, %211 : vector<16x22xf32>
      %377 = arith.addf %371, %376 : vector<16x22xf32>
      %378 = vector.broadcast %103 : f32 to vector<16x22xf32>
      %379 = arith.mulf %378, %205 : vector<16x22xf32>
      %380 = arith.addf %374, %379 : vector<16x22xf32>
      %381 = vector.broadcast %152 : f32 to vector<16x22xf32>
      %382 = arith.mulf %381, %212 : vector<16x22xf32>
      %383 = arith.addf %377, %382 : vector<16x22xf32>
      %384 = arith.addf %380, %383 : vector<16x22xf32>
      %385 = vector.extract_strided_slice %384 {offsets = [0, 3], sizes = [16, 16], strides = [1, 1]} : vector<16x22xf32> to vector<16x16xf32>
      %386 = arith.addf %300, %385 : vector<16x16xf32>
      %387 = vector.broadcast %62 : f32 to vector<16x22xf32>
      %388 = arith.mulf %387, %199 : vector<16x22xf32>
      %389 = vector.broadcast %111 : f32 to vector<16x22xf32>
      %390 = arith.mulf %389, %206 : vector<16x22xf32>
      %391 = vector.broadcast %69 : f32 to vector<16x22xf32>
      %392 = arith.mulf %391, %200 : vector<16x22xf32>
      %393 = arith.addf %388, %392 : vector<16x22xf32>
      %394 = vector.broadcast %118 : f32 to vector<16x22xf32>
      %395 = arith.mulf %394, %207 : vector<16x22xf32>
      %396 = arith.addf %390, %395 : vector<16x22xf32>
      %397 = vector.broadcast %76 : f32 to vector<16x22xf32>
      %398 = arith.mulf %397, %201 : vector<16x22xf32>
      %399 = arith.addf %393, %398 : vector<16x22xf32>
      %400 = vector.broadcast %125 : f32 to vector<16x22xf32>
      %401 = arith.mulf %400, %208 : vector<16x22xf32>
      %402 = arith.addf %396, %401 : vector<16x22xf32>
      %403 = vector.broadcast %83 : f32 to vector<16x22xf32>
      %404 = arith.mulf %403, %202 : vector<16x22xf32>
      %405 = arith.addf %399, %404 : vector<16x22xf32>
      %406 = vector.broadcast %132 : f32 to vector<16x22xf32>
      %407 = arith.mulf %406, %209 : vector<16x22xf32>
      %408 = arith.addf %402, %407 : vector<16x22xf32>
      %409 = vector.broadcast %90 : f32 to vector<16x22xf32>
      %410 = arith.mulf %409, %203 : vector<16x22xf32>
      %411 = arith.addf %405, %410 : vector<16x22xf32>
      %412 = vector.broadcast %139 : f32 to vector<16x22xf32>
      %413 = arith.mulf %412, %210 : vector<16x22xf32>
      %414 = arith.addf %408, %413 : vector<16x22xf32>
      %415 = vector.broadcast %97 : f32 to vector<16x22xf32>
      %416 = arith.mulf %415, %204 : vector<16x22xf32>
      %417 = arith.addf %411, %416 : vector<16x22xf32>
      %418 = vector.broadcast %146 : f32 to vector<16x22xf32>
      %419 = arith.mulf %418, %211 : vector<16x22xf32>
      %420 = arith.addf %414, %419 : vector<16x22xf32>
      %421 = vector.broadcast %104 : f32 to vector<16x22xf32>
      %422 = arith.mulf %421, %205 : vector<16x22xf32>
      %423 = arith.addf %417, %422 : vector<16x22xf32>
      %424 = vector.broadcast %153 : f32 to vector<16x22xf32>
      %425 = arith.mulf %424, %212 : vector<16x22xf32>
      %426 = arith.addf %420, %425 : vector<16x22xf32>
      %427 = arith.addf %423, %426 : vector<16x22xf32>
      %428 = vector.extract_strided_slice %427 {offsets = [0, 4], sizes = [16, 16], strides = [1, 1]} : vector<16x22xf32> to vector<16x16xf32>
      %429 = arith.addf %343, %428 : vector<16x16xf32>
      %430 = vector.broadcast %63 : f32 to vector<16x22xf32>
      %431 = arith.mulf %430, %199 : vector<16x22xf32>
      %432 = vector.broadcast %112 : f32 to vector<16x22xf32>
      %433 = arith.mulf %432, %206 : vector<16x22xf32>
      %434 = vector.broadcast %70 : f32 to vector<16x22xf32>
      %435 = arith.mulf %434, %200 : vector<16x22xf32>
      %436 = arith.addf %431, %435 : vector<16x22xf32>
      %437 = vector.broadcast %119 : f32 to vector<16x22xf32>
      %438 = arith.mulf %437, %207 : vector<16x22xf32>
      %439 = arith.addf %433, %438 : vector<16x22xf32>
      %440 = vector.broadcast %77 : f32 to vector<16x22xf32>
      %441 = arith.mulf %440, %201 : vector<16x22xf32>
      %442 = arith.addf %436, %441 : vector<16x22xf32>
      %443 = vector.broadcast %126 : f32 to vector<16x22xf32>
      %444 = arith.mulf %443, %208 : vector<16x22xf32>
      %445 = arith.addf %439, %444 : vector<16x22xf32>
      %446 = vector.broadcast %84 : f32 to vector<16x22xf32>
      %447 = arith.mulf %446, %202 : vector<16x22xf32>
      %448 = arith.addf %442, %447 : vector<16x22xf32>
      %449 = vector.broadcast %133 : f32 to vector<16x22xf32>
      %450 = arith.mulf %449, %209 : vector<16x22xf32>
      %451 = arith.addf %445, %450 : vector<16x22xf32>
      %452 = vector.broadcast %91 : f32 to vector<16x22xf32>
      %453 = arith.mulf %452, %203 : vector<16x22xf32>
      %454 = arith.addf %448, %453 : vector<16x22xf32>
      %455 = vector.broadcast %140 : f32 to vector<16x22xf32>
      %456 = arith.mulf %455, %210 : vector<16x22xf32>
      %457 = arith.addf %451, %456 : vector<16x22xf32>
      %458 = vector.broadcast %98 : f32 to vector<16x22xf32>
      %459 = arith.mulf %458, %204 : vector<16x22xf32>
      %460 = arith.addf %454, %459 : vector<16x22xf32>
      %461 = vector.broadcast %147 : f32 to vector<16x22xf32>
      %462 = arith.mulf %461, %211 : vector<16x22xf32>
      %463 = arith.addf %457, %462 : vector<16x22xf32>
      %464 = vector.broadcast %105 : f32 to vector<16x22xf32>
      %465 = arith.mulf %464, %205 : vector<16x22xf32>
      %466 = arith.addf %460, %465 : vector<16x22xf32>
      %467 = vector.broadcast %154 : f32 to vector<16x22xf32>
      %468 = arith.mulf %467, %212 : vector<16x22xf32>
      %469 = arith.addf %463, %468 : vector<16x22xf32>
      %470 = arith.addf %466, %469 : vector<16x22xf32>
      %471 = vector.extract_strided_slice %470 {offsets = [0, 5], sizes = [16, 16], strides = [1, 1]} : vector<16x22xf32> to vector<16x16xf32>
      %472 = arith.addf %386, %471 : vector<16x16xf32>
      %473 = vector.broadcast %64 : f32 to vector<16x22xf32>
      %474 = arith.mulf %473, %199 : vector<16x22xf32>
      %475 = vector.broadcast %113 : f32 to vector<16x22xf32>
      %476 = arith.mulf %475, %206 : vector<16x22xf32>
      %477 = vector.broadcast %71 : f32 to vector<16x22xf32>
      %478 = arith.mulf %477, %200 : vector<16x22xf32>
      %479 = arith.addf %474, %478 : vector<16x22xf32>
      %480 = vector.broadcast %120 : f32 to vector<16x22xf32>
      %481 = arith.mulf %480, %207 : vector<16x22xf32>
      %482 = arith.addf %476, %481 : vector<16x22xf32>
      %483 = vector.broadcast %78 : f32 to vector<16x22xf32>
      %484 = arith.mulf %483, %201 : vector<16x22xf32>
      %485 = arith.addf %479, %484 : vector<16x22xf32>
      %486 = vector.broadcast %127 : f32 to vector<16x22xf32>
      %487 = arith.mulf %486, %208 : vector<16x22xf32>
      %488 = arith.addf %482, %487 : vector<16x22xf32>
      %489 = vector.broadcast %85 : f32 to vector<16x22xf32>
      %490 = arith.mulf %489, %202 : vector<16x22xf32>
      %491 = arith.addf %485, %490 : vector<16x22xf32>
      %492 = vector.broadcast %134 : f32 to vector<16x22xf32>
      %493 = arith.mulf %492, %209 : vector<16x22xf32>
      %494 = arith.addf %488, %493 : vector<16x22xf32>
      %495 = vector.broadcast %92 : f32 to vector<16x22xf32>
      %496 = arith.mulf %495, %203 : vector<16x22xf32>
      %497 = arith.addf %491, %496 : vector<16x22xf32>
      %498 = vector.broadcast %141 : f32 to vector<16x22xf32>
      %499 = arith.mulf %498, %210 : vector<16x22xf32>
      %500 = arith.addf %494, %499 : vector<16x22xf32>
      %501 = vector.broadcast %99 : f32 to vector<16x22xf32>
      %502 = arith.mulf %501, %204 : vector<16x22xf32>
      %503 = arith.addf %497, %502 : vector<16x22xf32>
      %504 = vector.broadcast %148 : f32 to vector<16x22xf32>
      %505 = arith.mulf %504, %211 : vector<16x22xf32>
      %506 = arith.addf %500, %505 : vector<16x22xf32>
      %507 = vector.broadcast %106 : f32 to vector<16x22xf32>
      %508 = arith.mulf %507, %205 : vector<16x22xf32>
      %509 = arith.addf %503, %508 : vector<16x22xf32>
      %510 = vector.broadcast %155 : f32 to vector<16x22xf32>
      %511 = arith.mulf %510, %212 : vector<16x22xf32>
      %512 = arith.addf %506, %511 : vector<16x22xf32>
      %513 = arith.addf %509, %512 : vector<16x22xf32>
      %514 = vector.extract_strided_slice %513 {offsets = [0, 6], sizes = [16, 16], strides = [1, 1]} : vector<16x22xf32> to vector<16x16xf32>
      %515 = arith.addf %429, %514 : vector<16x16xf32>
      %516 = arith.addf %515, %472 : vector<16x16xf32>
      %517 = vector.broadcast %156 : f32 to vector<16x16xf32>
      %518 = arith.addf %516, %517 : vector<16x16xf32>
      %c0_68 = arith.constant 0 : index
      %c0_69 = arith.constant 0 : index
      %c0_70 = arith.constant 0 : index
      %c0_71 = arith.constant 0 : index
      %519 = vector.load %arg5[%c0_68, %c0_69, %c0_70, %c0_71] : memref<2x1x16x16xf32, #tpu.memory_space<vmem>>, vector<1x1x16x16xf32>
      %520 = vector.shape_cast %519 : vector<1x1x16x16xf32> to vector<16x16xf32>
      %521 = vector.shape_cast %518 : vector<16x16xf32> to vector<1x1x16x16xf32>
      tpu.vector_store %arg5[%c0_68, %c0_69, %c0_70, %c0_71], %521 {strides = array<i32>} : memref<2x1x16x16xf32, #tpu.memory_space<vmem>>, vector<1x1x16x16xf32>,
      %c1_72 = arith.constant 1 : index
      %c0_73 = arith.constant 0 : index
      %c0_74 = arith.constant 0 : index
      %522 = vector.load %arg6[%c1_72, %c0_73, %c0_74] : memref<2x16x16xf32, #tpu.memory_space<vmem>>, vector<1x16x16xf32>
      %523 = vector.shape_cast %522 : vector<1x16x16xf32> to vector<16x16xf32>
      %cst_75 = arith.constant 2.500000e-01 : f32
      %524 = vector.broadcast %cst_75 : f32 to vector<16x16xf32>
      %525 = arith.mulf %523, %524 : vector<16x16xf32>
      %526 = vector.extract_strided_slice %525 {offsets = [3, 0], sizes = [1, 16], strides = [1, 1]} : vector<16x16xf32> to vector<1x16xf32>
      %527 = vector.extract_strided_slice %525 {offsets = [2, 0], sizes = [1, 16], strides = [1, 1]} : vector<16x16xf32> to vector<1x16xf32>
      %528 = vector.extract_strided_slice %525 {offsets = [1, 0], sizes = [1, 16], strides = [1, 1]} : vector<16x16xf32> to vector<1x16xf32>
      %529 = tpu.concatenate %526, %527, %528 in 0 : vector<1x16xf32>, vector<1x16xf32>, vector<1x16xf32> -> vector<3x16xf32>
      %530 = vector.extract_strided_slice %525 {offsets = [14, 0], sizes = [1, 16], strides = [1, 1]} : vector<16x16xf32> to vector<1x16xf32>
      %531 = vector.extract_strided_slice %525 {offsets = [13, 0], sizes = [1, 16], strides = [1, 1]} : vector<16x16xf32> to vector<1x16xf32>
      %532 = vector.extract_strided_slice %525 {offsets = [12, 0], sizes = [1, 16], strides = [1, 1]} : vector<16x16xf32> to vector<1x16xf32>
      %533 = tpu.concatenate %530, %531, %532 in 0 : vector<1x16xf32>, vector<1x16xf32>, vector<1x16xf32> -> vector<3x16xf32>
      %534 = tpu.concatenate %529, %525, %533 in 0 : vector<3x16xf32>, vector<16x16xf32>, vector<3x16xf32> -> vector<22x16xf32>
      %535 = vector.extract_strided_slice %534 {offsets = [0, 3], sizes = [22, 1], strides = [1, 1]} : vector<22x16xf32> to vector<22x1xf32>
      %536 = vector.extract_strided_slice %534 {offsets = [0, 2], sizes = [22, 1], strides = [1, 1]} : vector<22x16xf32> to vector<22x1xf32>
      %537 = vector.extract_strided_slice %534 {offsets = [0, 1], sizes = [22, 1], strides = [1, 1]} : vector<22x16xf32> to vector<22x1xf32>
      %538 = tpu.concatenate %535, %536, %537 in 1 : vector<22x1xf32>, vector<22x1xf32>, vector<22x1xf32> -> vector<22x3xf32>
      %539 = vector.extract_strided_slice %534 {offsets = [0, 14], sizes = [22, 1], strides = [1, 1]} : vector<22x16xf32> to vector<22x1xf32>
      %540 = vector.extract_strided_slice %534 {offsets = [0, 13], sizes = [22, 1], strides = [1, 1]} : vector<22x16xf32> to vector<22x1xf32>
      %541 = vector.extract_strided_slice %534 {offsets = [0, 12], sizes = [22, 1], strides = [1, 1]} : vector<22x16xf32> to vector<22x1xf32>
      %542 = tpu.concatenate %539, %540, %541 in 1 : vector<22x1xf32>, vector<22x1xf32>, vector<22x1xf32> -> vector<22x3xf32>
      %543 = tpu.concatenate %538, %534, %542 in 1 : vector<22x3xf32>, vector<22x16xf32>, vector<22x3xf32> -> vector<22x22xf32>
      %c1_76 = arith.constant 1 : index
      %c0_77 = arith.constant 0 : index
      %c0_78 = arith.constant 0 : index
      %544 = vector.load %arg7[%c1_76, %c0_77, %c0_78] : memref<2x16x16xf32, #tpu.memory_space<vmem>>, vector<1x16x16xf32>
      %545 = vector.shape_cast %544 : vector<1x16x16xf32> to vector<16x16xf32>
      %546 = vector.extract_strided_slice %545 {offsets = [3, 0], sizes = [1, 16], strides = [1, 1]} : vector<16x16xf32> to vector<1x16xf32>
      %547 = vector.extract_strided_slice %545 {offsets = [2, 0], sizes = [1, 16], strides = [1, 1]} : vector<16x16xf32> to vector<1x16xf32>
      %548 = vector.extract_strided_slice %545 {offsets = [1, 0], sizes = [1, 16], strides = [1, 1]} : vector<16x16xf32> to vector<1x16xf32>
      %549 = tpu.concatenate %546, %547, %548 in 0 : vector<1x16xf32>, vector<1x16xf32>, vector<1x16xf32> -> vector<3x16xf32>
      %550 = vector.extract_strided_slice %545 {offsets = [14, 0], sizes = [1, 16], strides = [1, 1]} : vector<16x16xf32> to vector<1x16xf32>
      %551 = vector.extract_strided_slice %545 {offsets = [13, 0], sizes = [1, 16], strides = [1, 1]} : vector<16x16xf32> to vector<1x16xf32>
      %552 = vector.extract_strided_slice %545 {offsets = [12, 0], sizes = [1, 16], strides = [1, 1]} : vector<16x16xf32> to vector<1x16xf32>
      %553 = tpu.concatenate %550, %551, %552 in 0 : vector<1x16xf32>, vector<1x16xf32>, vector<1x16xf32> -> vector<3x16xf32>
      %554 = tpu.concatenate %549, %545, %553 in 0 : vector<3x16xf32>, vector<16x16xf32>, vector<3x16xf32> -> vector<22x16xf32>
      %555 = vector.extract_strided_slice %554 {offsets = [0, 3], sizes = [22, 1], strides = [1, 1]} : vector<22x16xf32> to vector<22x1xf32>
      %556 = vector.extract_strided_slice %554 {offsets = [0, 2], sizes = [22, 1], strides = [1, 1]} : vector<22x16xf32> to vector<22x1xf32>
      %557 = vector.extract_strided_slice %554 {offsets = [0, 1], sizes = [22, 1], strides = [1, 1]} : vector<22x16xf32> to vector<22x1xf32>
      %558 = tpu.concatenate %555, %556, %557 in 1 : vector<22x1xf32>, vector<22x1xf32>, vector<22x1xf32> -> vector<22x3xf32>
      %559 = vector.extract_strided_slice %554 {offsets = [0, 14], sizes = [22, 1], strides = [1, 1]} : vector<22x16xf32> to vector<22x1xf32>
      %560 = vector.extract_strided_slice %554 {offsets = [0, 13], sizes = [22, 1], strides = [1, 1]} : vector<22x16xf32> to vector<22x1xf32>
      %561 = vector.extract_strided_slice %554 {offsets = [0, 12], sizes = [22, 1], strides = [1, 1]} : vector<22x16xf32> to vector<22x1xf32>
      %562 = tpu.concatenate %559, %560, %561 in 1 : vector<22x1xf32>, vector<22x1xf32>, vector<22x1xf32> -> vector<22x3xf32>
      %563 = tpu.concatenate %558, %554, %562 in 1 : vector<22x3xf32>, vector<22x16xf32>, vector<22x3xf32> -> vector<22x22xf32>
      %564 = vector.extract_strided_slice %543 {offsets = [0, 0], sizes = [16, 22], strides = [1, 1]} : vector<22x22xf32> to vector<16x22xf32>
      %565 = vector.extract_strided_slice %543 {offsets = [1, 0], sizes = [16, 22], strides = [1, 1]} : vector<22x22xf32> to vector<16x22xf32>
      %566 = vector.extract_strided_slice %543 {offsets = [2, 0], sizes = [16, 22], strides = [1, 1]} : vector<22x22xf32> to vector<16x22xf32>
      %567 = vector.extract_strided_slice %543 {offsets = [3, 0], sizes = [16, 22], strides = [1, 1]} : vector<22x22xf32> to vector<16x22xf32>
      %568 = vector.extract_strided_slice %543 {offsets = [4, 0], sizes = [16, 22], strides = [1, 1]} : vector<22x22xf32> to vector<16x22xf32>
      %569 = vector.extract_strided_slice %543 {offsets = [5, 0], sizes = [16, 22], strides = [1, 1]} : vector<22x22xf32> to vector<16x22xf32>
      %570 = vector.extract_strided_slice %543 {offsets = [6, 0], sizes = [16, 22], strides = [1, 1]} : vector<22x22xf32> to vector<16x22xf32>
      %571 = vector.extract_strided_slice %563 {offsets = [0, 0], sizes = [16, 22], strides = [1, 1]} : vector<22x22xf32> to vector<16x22xf32>
      %572 = vector.extract_strided_slice %563 {offsets = [1, 0], sizes = [16, 22], strides = [1, 1]} : vector<22x22xf32> to vector<16x22xf32>
      %573 = vector.extract_strided_slice %563 {offsets = [2, 0], sizes = [16, 22], strides = [1, 1]} : vector<22x22xf32> to vector<16x22xf32>
      %574 = vector.extract_strided_slice %563 {offsets = [3, 0], sizes = [16, 22], strides = [1, 1]} : vector<22x22xf32> to vector<16x22xf32>
      %575 = vector.extract_strided_slice %563 {offsets = [4, 0], sizes = [16, 22], strides = [1, 1]} : vector<22x22xf32> to vector<16x22xf32>
      %576 = vector.extract_strided_slice %563 {offsets = [5, 0], sizes = [16, 22], strides = [1, 1]} : vector<22x22xf32> to vector<16x22xf32>
      %577 = vector.extract_strided_slice %563 {offsets = [6, 0], sizes = [16, 22], strides = [1, 1]} : vector<22x22xf32> to vector<16x22xf32>
      %cst_79 = arith.constant 0.000000e+00 : f32
      %578 = vector.broadcast %cst_79 : f32 to vector<16x16xf32>
      %cst_80 = arith.constant 0.000000e+00 : f32
      %579 = vector.broadcast %cst_80 : f32 to vector<16x16xf32>
      %580 = vector.broadcast %58 : f32 to vector<16x22xf32>
      %581 = arith.mulf %580, %564 : vector<16x22xf32>
      %582 = vector.broadcast %107 : f32 to vector<16x22xf32>
      %583 = arith.mulf %582, %571 : vector<16x22xf32>
      %584 = vector.broadcast %65 : f32 to vector<16x22xf32>
      %585 = arith.mulf %584, %565 : vector<16x22xf32>
      %586 = arith.addf %581, %585 : vector<16x22xf32>
      %587 = vector.broadcast %114 : f32 to vector<16x22xf32>
      %588 = arith.mulf %587, %572 : vector<16x22xf32>
      %589 = arith.addf %583, %588 : vector<16x22xf32>
      %590 = vector.broadcast %72 : f32 to vector<16x22xf32>
      %591 = arith.mulf %590, %566 : vector<16x22xf32>
      %592 = arith.addf %586, %591 : vector<16x22xf32>
      %593 = vector.broadcast %121 : f32 to vector<16x22xf32>
      %594 = arith.mulf %593, %573 : vector<16x22xf32>
      %595 = arith.addf %589, %594 : vector<16x22xf32>
      %596 = vector.broadcast %79 : f32 to vector<16x22xf32>
      %597 = arith.mulf %596, %567 : vector<16x22xf32>
      %598 = arith.addf %592, %597 : vector<16x22xf32>
      %599 = vector.broadcast %128 : f32 to vector<16x22xf32>
      %600 = arith.mulf %599, %574 : vector<16x22xf32>
      %601 = arith.addf %595, %600 : vector<16x22xf32>
      %602 = vector.broadcast %86 : f32 to vector<16x22xf32>
      %603 = arith.mulf %602, %568 : vector<16x22xf32>
      %604 = arith.addf %598, %603 : vector<16x22xf32>
      %605 = vector.broadcast %135 : f32 to vector<16x22xf32>
      %606 = arith.mulf %605, %575 : vector<16x22xf32>
      %607 = arith.addf %601, %606 : vector<16x22xf32>
      %608 = vector.broadcast %93 : f32 to vector<16x22xf32>
      %609 = arith.mulf %608, %569 : vector<16x22xf32>
      %610 = arith.addf %604, %609 : vector<16x22xf32>
      %611 = vector.broadcast %142 : f32 to vector<16x22xf32>
      %612 = arith.mulf %611, %576 : vector<16x22xf32>
      %613 = arith.addf %607, %612 : vector<16x22xf32>
      %614 = vector.broadcast %100 : f32 to vector<16x22xf32>
      %615 = arith.mulf %614, %570 : vector<16x22xf32>
      %616 = arith.addf %610, %615 : vector<16x22xf32>
      %617 = vector.broadcast %149 : f32 to vector<16x22xf32>
      %618 = arith.mulf %617, %577 : vector<16x22xf32>
      %619 = arith.addf %613, %618 : vector<16x22xf32>
      %620 = arith.addf %616, %619 : vector<16x22xf32>
      %621 = vector.extract_strided_slice %620 {offsets = [0, 0], sizes = [16, 16], strides = [1, 1]} : vector<16x22xf32> to vector<16x16xf32>
      %622 = arith.addf %578, %621 : vector<16x16xf32>
      %623 = vector.broadcast %59 : f32 to vector<16x22xf32>
      %624 = arith.mulf %623, %564 : vector<16x22xf32>
      %625 = vector.broadcast %108 : f32 to vector<16x22xf32>
      %626 = arith.mulf %625, %571 : vector<16x22xf32>
      %627 = vector.broadcast %66 : f32 to vector<16x22xf32>
      %628 = arith.mulf %627, %565 : vector<16x22xf32>
      %629 = arith.addf %624, %628 : vector<16x22xf32>
      %630 = vector.broadcast %115 : f32 to vector<16x22xf32>
      %631 = arith.mulf %630, %572 : vector<16x22xf32>
      %632 = arith.addf %626, %631 : vector<16x22xf32>
      %633 = vector.broadcast %73 : f32 to vector<16x22xf32>
      %634 = arith.mulf %633, %566 : vector<16x22xf32>
      %635 = arith.addf %629, %634 : vector<16x22xf32>
      %636 = vector.broadcast %122 : f32 to vector<16x22xf32>
      %637 = arith.mulf %636, %573 : vector<16x22xf32>
      %638 = arith.addf %632, %637 : vector<16x22xf32>
      %639 = vector.broadcast %80 : f32 to vector<16x22xf32>
      %640 = arith.mulf %639, %567 : vector<16x22xf32>
      %641 = arith.addf %635, %640 : vector<16x22xf32>
      %642 = vector.broadcast %129 : f32 to vector<16x22xf32>
      %643 = arith.mulf %642, %574 : vector<16x22xf32>
      %644 = arith.addf %638, %643 : vector<16x22xf32>
      %645 = vector.broadcast %87 : f32 to vector<16x22xf32>
      %646 = arith.mulf %645, %568 : vector<16x22xf32>
      %647 = arith.addf %641, %646 : vector<16x22xf32>
      %648 = vector.broadcast %136 : f32 to vector<16x22xf32>
      %649 = arith.mulf %648, %575 : vector<16x22xf32>
      %650 = arith.addf %644, %649 : vector<16x22xf32>
      %651 = vector.broadcast %94 : f32 to vector<16x22xf32>
      %652 = arith.mulf %651, %569 : vector<16x22xf32>
      %653 = arith.addf %647, %652 : vector<16x22xf32>
      %654 = vector.broadcast %143 : f32 to vector<16x22xf32>
      %655 = arith.mulf %654, %576 : vector<16x22xf32>
      %656 = arith.addf %650, %655 : vector<16x22xf32>
      %657 = vector.broadcast %101 : f32 to vector<16x22xf32>
      %658 = arith.mulf %657, %570 : vector<16x22xf32>
      %659 = arith.addf %653, %658 : vector<16x22xf32>
      %660 = vector.broadcast %150 : f32 to vector<16x22xf32>
      %661 = arith.mulf %660, %577 : vector<16x22xf32>
      %662 = arith.addf %656, %661 : vector<16x22xf32>
      %663 = arith.addf %659, %662 : vector<16x22xf32>
      %664 = vector.extract_strided_slice %663 {offsets = [0, 1], sizes = [16, 16], strides = [1, 1]} : vector<16x22xf32> to vector<16x16xf32>
      %665 = arith.addf %579, %664 : vector<16x16xf32>
      %666 = vector.broadcast %60 : f32 to vector<16x22xf32>
      %667 = arith.mulf %666, %564 : vector<16x22xf32>
      %668 = vector.broadcast %109 : f32 to vector<16x22xf32>
      %669 = arith.mulf %668, %571 : vector<16x22xf32>
      %670 = vector.broadcast %67 : f32 to vector<16x22xf32>
      %671 = arith.mulf %670, %565 : vector<16x22xf32>
      %672 = arith.addf %667, %671 : vector<16x22xf32>
      %673 = vector.broadcast %116 : f32 to vector<16x22xf32>
      %674 = arith.mulf %673, %572 : vector<16x22xf32>
      %675 = arith.addf %669, %674 : vector<16x22xf32>
      %676 = vector.broadcast %74 : f32 to vector<16x22xf32>
      %677 = arith.mulf %676, %566 : vector<16x22xf32>
      %678 = arith.addf %672, %677 : vector<16x22xf32>
      %679 = vector.broadcast %123 : f32 to vector<16x22xf32>
      %680 = arith.mulf %679, %573 : vector<16x22xf32>
      %681 = arith.addf %675, %680 : vector<16x22xf32>
      %682 = vector.broadcast %81 : f32 to vector<16x22xf32>
      %683 = arith.mulf %682, %567 : vector<16x22xf32>
      %684 = arith.addf %678, %683 : vector<16x22xf32>
      %685 = vector.broadcast %130 : f32 to vector<16x22xf32>
      %686 = arith.mulf %685, %574 : vector<16x22xf32>
      %687 = arith.addf %681, %686 : vector<16x22xf32>
      %688 = vector.broadcast %88 : f32 to vector<16x22xf32>
      %689 = arith.mulf %688, %568 : vector<16x22xf32>
      %690 = arith.addf %684, %689 : vector<16x22xf32>
      %691 = vector.broadcast %137 : f32 to vector<16x22xf32>
      %692 = arith.mulf %691, %575 : vector<16x22xf32>
      %693 = arith.addf %687, %692 : vector<16x22xf32>
      %694 = vector.broadcast %95 : f32 to vector<16x22xf32>
      %695 = arith.mulf %694, %569 : vector<16x22xf32>
      %696 = arith.addf %690, %695 : vector<16x22xf32>
      %697 = vector.broadcast %144 : f32 to vector<16x22xf32>
      %698 = arith.mulf %697, %576 : vector<16x22xf32>
      %699 = arith.addf %693, %698 : vector<16x22xf32>
      %700 = vector.broadcast %102 : f32 to vector<16x22xf32>
      %701 = arith.mulf %700, %570 : vector<16x22xf32>
      %702 = arith.addf %696, %701 : vector<16x22xf32>
      %703 = vector.broadcast %151 : f32 to vector<16x22xf32>
      %704 = arith.mulf %703, %577 : vector<16x22xf32>
      %705 = arith.addf %699, %704 : vector<16x22xf32>
      %706 = arith.addf %702, %705 : vector<16x22xf32>
      %707 = vector.extract_strided_slice %706 {offsets = [0, 2], sizes = [16, 16], strides = [1, 1]} : vector<16x22xf32> to vector<16x16xf32>
      %708 = arith.addf %622, %707 : vector<16x16xf32>
      %709 = vector.broadcast %61 : f32 to vector<16x22xf32>
      %710 = arith.mulf %709, %564 : vector<16x22xf32>
      %711 = vector.broadcast %110 : f32 to vector<16x22xf32>
      %712 = arith.mulf %711, %571 : vector<16x22xf32>
      %713 = vector.broadcast %68 : f32 to vector<16x22xf32>
      %714 = arith.mulf %713, %565 : vector<16x22xf32>
      %715 = arith.addf %710, %714 : vector<16x22xf32>
      %716 = vector.broadcast %117 : f32 to vector<16x22xf32>
      %717 = arith.mulf %716, %572 : vector<16x22xf32>
      %718 = arith.addf %712, %717 : vector<16x22xf32>
      %719 = vector.broadcast %75 : f32 to vector<16x22xf32>
      %720 = arith.mulf %719, %566 : vector<16x22xf32>
      %721 = arith.addf %715, %720 : vector<16x22xf32>
      %722 = vector.broadcast %124 : f32 to vector<16x22xf32>
      %723 = arith.mulf %722, %573 : vector<16x22xf32>
      %724 = arith.addf %718, %723 : vector<16x22xf32>
      %725 = vector.broadcast %82 : f32 to vector<16x22xf32>
      %726 = arith.mulf %725, %567 : vector<16x22xf32>
      %727 = arith.addf %721, %726 : vector<16x22xf32>
      %728 = vector.broadcast %131 : f32 to vector<16x22xf32>
      %729 = arith.mulf %728, %574 : vector<16x22xf32>
      %730 = arith.addf %724, %729 : vector<16x22xf32>
      %731 = vector.broadcast %89 : f32 to vector<16x22xf32>
      %732 = arith.mulf %731, %568 : vector<16x22xf32>
      %733 = arith.addf %727, %732 : vector<16x22xf32>
      %734 = vector.broadcast %138 : f32 to vector<16x22xf32>
      %735 = arith.mulf %734, %575 : vector<16x22xf32>
      %736 = arith.addf %730, %735 : vector<16x22xf32>
      %737 = vector.broadcast %96 : f32 to vector<16x22xf32>
      %738 = arith.mulf %737, %569 : vector<16x22xf32>
      %739 = arith.addf %733, %738 : vector<16x22xf32>
      %740 = vector.broadcast %145 : f32 to vector<16x22xf32>
      %741 = arith.mulf %740, %576 : vector<16x22xf32>
      %742 = arith.addf %736, %741 : vector<16x22xf32>
      %743 = vector.broadcast %103 : f32 to vector<16x22xf32>
      %744 = arith.mulf %743, %570 : vector<16x22xf32>
      %745 = arith.addf %739, %744 : vector<16x22xf32>
      %746 = vector.broadcast %152 : f32 to vector<16x22xf32>
      %747 = arith.mulf %746, %577 : vector<16x22xf32>
      %748 = arith.addf %742, %747 : vector<16x22xf32>
      %749 = arith.addf %745, %748 : vector<16x22xf32>
      %750 = vector.extract_strided_slice %749 {offsets = [0, 3], sizes = [16, 16], strides = [1, 1]} : vector<16x22xf32> to vector<16x16xf32>
      %751 = arith.addf %665, %750 : vector<16x16xf32>
      %752 = vector.broadcast %62 : f32 to vector<16x22xf32>
      %753 = arith.mulf %752, %564 : vector<16x22xf32>
      %754 = vector.broadcast %111 : f32 to vector<16x22xf32>
      %755 = arith.mulf %754, %571 : vector<16x22xf32>
      %756 = vector.broadcast %69 : f32 to vector<16x22xf32>
      %757 = arith.mulf %756, %565 : vector<16x22xf32>
      %758 = arith.addf %753, %757 : vector<16x22xf32>
      %759 = vector.broadcast %118 : f32 to vector<16x22xf32>
      %760 = arith.mulf %759, %572 : vector<16x22xf32>
      %761 = arith.addf %755, %760 : vector<16x22xf32>
      %762 = vector.broadcast %76 : f32 to vector<16x22xf32>
      %763 = arith.mulf %762, %566 : vector<16x22xf32>
      %764 = arith.addf %758, %763 : vector<16x22xf32>
      %765 = vector.broadcast %125 : f32 to vector<16x22xf32>
      %766 = arith.mulf %765, %573 : vector<16x22xf32>
      %767 = arith.addf %761, %766 : vector<16x22xf32>
      %768 = vector.broadcast %83 : f32 to vector<16x22xf32>
      %769 = arith.mulf %768, %567 : vector<16x22xf32>
      %770 = arith.addf %764, %769 : vector<16x22xf32>
      %771 = vector.broadcast %132 : f32 to vector<16x22xf32>
      %772 = arith.mulf %771, %574 : vector<16x22xf32>
      %773 = arith.addf %767, %772 : vector<16x22xf32>
      %774 = vector.broadcast %90 : f32 to vector<16x22xf32>
      %775 = arith.mulf %774, %568 : vector<16x22xf32>
      %776 = arith.addf %770, %775 : vector<16x22xf32>
      %777 = vector.broadcast %139 : f32 to vector<16x22xf32>
      %778 = arith.mulf %777, %575 : vector<16x22xf32>
      %779 = arith.addf %773, %778 : vector<16x22xf32>
      %780 = vector.broadcast %97 : f32 to vector<16x22xf32>
      %781 = arith.mulf %780, %569 : vector<16x22xf32>
      %782 = arith.addf %776, %781 : vector<16x22xf32>
      %783 = vector.broadcast %146 : f32 to vector<16x22xf32>
      %784 = arith.mulf %783, %576 : vector<16x22xf32>
      %785 = arith.addf %779, %784 : vector<16x22xf32>
      %786 = vector.broadcast %104 : f32 to vector<16x22xf32>
      %787 = arith.mulf %786, %570 : vector<16x22xf32>
      %788 = arith.addf %782, %787 : vector<16x22xf32>
      %789 = vector.broadcast %153 : f32 to vector<16x22xf32>
      %790 = arith.mulf %789, %577 : vector<16x22xf32>
      %791 = arith.addf %785, %790 : vector<16x22xf32>
      %792 = arith.addf %788, %791 : vector<16x22xf32>
      %793 = vector.extract_strided_slice %792 {offsets = [0, 4], sizes = [16, 16], strides = [1, 1]} : vector<16x22xf32> to vector<16x16xf32>
      %794 = arith.addf %708, %793 : vector<16x16xf32>
      %795 = vector.broadcast %63 : f32 to vector<16x22xf32>
      %796 = arith.mulf %795, %564 : vector<16x22xf32>
      %797 = vector.broadcast %112 : f32 to vector<16x22xf32>
      %798 = arith.mulf %797, %571 : vector<16x22xf32>
      %799 = vector.broadcast %70 : f32 to vector<16x22xf32>
      %800 = arith.mulf %799, %565 : vector<16x22xf32>
      %801 = arith.addf %796, %800 : vector<16x22xf32>
      %802 = vector.broadcast %119 : f32 to vector<16x22xf32>
      %803 = arith.mulf %802, %572 : vector<16x22xf32>
      %804 = arith.addf %798, %803 : vector<16x22xf32>
      %805 = vector.broadcast %77 : f32 to vector<16x22xf32>
      %806 = arith.mulf %805, %566 : vector<16x22xf32>
      %807 = arith.addf %801, %806 : vector<16x22xf32>
      %808 = vector.broadcast %126 : f32 to vector<16x22xf32>
      %809 = arith.mulf %808, %573 : vector<16x22xf32>
      %810 = arith.addf %804, %809 : vector<16x22xf32>
      %811 = vector.broadcast %84 : f32 to vector<16x22xf32>
      %812 = arith.mulf %811, %567 : vector<16x22xf32>
      %813 = arith.addf %807, %812 : vector<16x22xf32>
      %814 = vector.broadcast %133 : f32 to vector<16x22xf32>
      %815 = arith.mulf %814, %574 : vector<16x22xf32>
      %816 = arith.addf %810, %815 : vector<16x22xf32>
      %817 = vector.broadcast %91 : f32 to vector<16x22xf32>
      %818 = arith.mulf %817, %568 : vector<16x22xf32>
      %819 = arith.addf %813, %818 : vector<16x22xf32>
      %820 = vector.broadcast %140 : f32 to vector<16x22xf32>
      %821 = arith.mulf %820, %575 : vector<16x22xf32>
      %822 = arith.addf %816, %821 : vector<16x22xf32>
      %823 = vector.broadcast %98 : f32 to vector<16x22xf32>
      %824 = arith.mulf %823, %569 : vector<16x22xf32>
      %825 = arith.addf %819, %824 : vector<16x22xf32>
      %826 = vector.broadcast %147 : f32 to vector<16x22xf32>
      %827 = arith.mulf %826, %576 : vector<16x22xf32>
      %828 = arith.addf %822, %827 : vector<16x22xf32>
      %829 = vector.broadcast %105 : f32 to vector<16x22xf32>
      %830 = arith.mulf %829, %570 : vector<16x22xf32>
      %831 = arith.addf %825, %830 : vector<16x22xf32>
      %832 = vector.broadcast %154 : f32 to vector<16x22xf32>
      %833 = arith.mulf %832, %577 : vector<16x22xf32>
      %834 = arith.addf %828, %833 : vector<16x22xf32>
      %835 = arith.addf %831, %834 : vector<16x22xf32>
      %836 = vector.extract_strided_slice %835 {offsets = [0, 5], sizes = [16, 16], strides = [1, 1]} : vector<16x22xf32> to vector<16x16xf32>
      %837 = arith.addf %751, %836 : vector<16x16xf32>
      %838 = vector.broadcast %64 : f32 to vector<16x22xf32>
      %839 = arith.mulf %838, %564 : vector<16x22xf32>
      %840 = vector.broadcast %113 : f32 to vector<16x22xf32>
      %841 = arith.mulf %840, %571 : vector<16x22xf32>
      %842 = vector.broadcast %71 : f32 to vector<16x22xf32>
      %843 = arith.mulf %842, %565 : vector<16x22xf32>
      %844 = arith.addf %839, %843 : vector<16x22xf32>
      %845 = vector.broadcast %120 : f32 to vector<16x22xf32>
      %846 = arith.mulf %845, %572 : vector<16x22xf32>
      %847 = arith.addf %841, %846 : vector<16x22xf32>
      %848 = vector.broadcast %78 : f32 to vector<16x22xf32>
      %849 = arith.mulf %848, %566 : vector<16x22xf32>
      %850 = arith.addf %844, %849 : vector<16x22xf32>
      %851 = vector.broadcast %127 : f32 to vector<16x22xf32>
      %852 = arith.mulf %851, %573 : vector<16x22xf32>
      %853 = arith.addf %847, %852 : vector<16x22xf32>
      %854 = vector.broadcast %85 : f32 to vector<16x22xf32>
      %855 = arith.mulf %854, %567 : vector<16x22xf32>
      %856 = arith.addf %850, %855 : vector<16x22xf32>
      %857 = vector.broadcast %134 : f32 to vector<16x22xf32>
      %858 = arith.mulf %857, %574 : vector<16x22xf32>
      %859 = arith.addf %853, %858 : vector<16x22xf32>
      %860 = vector.broadcast %92 : f32 to vector<16x22xf32>
      %861 = arith.mulf %860, %568 : vector<16x22xf32>
      %862 = arith.addf %856, %861 : vector<16x22xf32>
      %863 = vector.broadcast %141 : f32 to vector<16x22xf32>
      %864 = arith.mulf %863, %575 : vector<16x22xf32>
      %865 = arith.addf %859, %864 : vector<16x22xf32>
      %866 = vector.broadcast %99 : f32 to vector<16x22xf32>
      %867 = arith.mulf %866, %569 : vector<16x22xf32>
      %868 = arith.addf %862, %867 : vector<16x22xf32>
      %869 = vector.broadcast %148 : f32 to vector<16x22xf32>
      %870 = arith.mulf %869, %576 : vector<16x22xf32>
      %871 = arith.addf %865, %870 : vector<16x22xf32>
      %872 = vector.broadcast %106 : f32 to vector<16x22xf32>
      %873 = arith.mulf %872, %570 : vector<16x22xf32>
      %874 = arith.addf %868, %873 : vector<16x22xf32>
      %875 = vector.broadcast %155 : f32 to vector<16x22xf32>
      %876 = arith.mulf %875, %577 : vector<16x22xf32>
      %877 = arith.addf %871, %876 : vector<16x22xf32>
      %878 = arith.addf %874, %877 : vector<16x22xf32>
      %879 = vector.extract_strided_slice %878 {offsets = [0, 6], sizes = [16, 16], strides = [1, 1]} : vector<16x22xf32> to vector<16x16xf32>
      %880 = arith.addf %794, %879 : vector<16x16xf32>
      %881 = arith.addf %880, %837 : vector<16x16xf32>
      %882 = vector.broadcast %156 : f32 to vector<16x16xf32>
      %883 = arith.addf %881, %882 : vector<16x16xf32>
      %c1_81 = arith.constant 1 : index
      %c0_82 = arith.constant 0 : index
      %c0_83 = arith.constant 0 : index
      %c0_84 = arith.constant 0 : index
      %884 = vector.load %arg5[%c1_81, %c0_82, %c0_83, %c0_84] : memref<2x1x16x16xf32, #tpu.memory_space<vmem>>, vector<1x1x16x16xf32>
      %885 = vector.shape_cast %884 : vector<1x1x16x16xf32> to vector<16x16xf32>
      %886 = vector.shape_cast %883 : vector<16x16xf32> to vector<1x1x16x16xf32>
      tpu.vector_store %arg5[%c1_81, %c0_82, %c0_83, %c0_84], %886 {strides = array<i32>} : memref<2x1x16x16xf32, #tpu.memory_space<vmem>>, vector<1x1x16x16xf32>,
    } else {
    }
    return
  }
  func.func @transform_0(%arg0: i32, %arg1: i32) -> i32 {
    %c0_i32 = arith.constant 0 : i32
    %c0_i32_0 = arith.constant 0 : i32
    return %c0_i32 : i32
  }
  func.func @transform_1(%arg0: i32, %arg1: i32) -> i32 {
    %c0_i32 = arith.constant 0 : i32
    %c0_i32_0 = arith.constant 0 : i32
    return %c0_i32 : i32
  }
  func.func @transform_2(%arg0: i32, %arg1: i32) -> (i32, i32, i32, i32) {
    %c0_i32 = arith.constant 0 : i32
    %c0_i32_0 = arith.constant 0 : i32
    %c0_i32_1 = arith.constant 0 : i32
    return %arg0, %arg1, %c0_i32, %c0_i32_0 : i32, i32, i32, i32
  }
  func.func @transform_3(%arg0: i32, %arg1: i32) -> (i32, i32, i32, i32) {
    %c0_i32 = arith.constant 0 : i32
    %c0_i32_0 = arith.constant 0 : i32
    %c0_i32_1 = arith.constant 0 : i32
    %c0_i32_2 = arith.constant 0 : i32
    return %arg0, %c0_i32, %c0_i32_0, %c0_i32_1 : i32, i32, i32, i32
  }
}

</mosaic_0001>

<bundles_post_ra>
// kernel: tpu_custom_call.1
= control target key start
LH: loop header
LB: loop body
LE: loop exit
PB: predicated region body
PF: predicated region fallthrough
CT: control target
= control target key end

     0   :  { %9 = vsyncpa [#allocation8], 0  ;;  %s7233_s0 = inlined_call_operand.vmem [shape: f32[98], index: 0, kind: input, shape index: {}]   ;;  %s7234_s1 = inlined_call_operand.<no memory space> [shape: f32[1], index: 1, kind: input, shape index: {}]   ;;  %s7235_s2 = inlined_call_operand.hbm [shape: f32[2,4,16,16], index: 2, kind: input, shape index: {}]   ;;  %s7236_s3 = inlined_call_operand.hbm [shape: f32[2,1,16,16], index: 3, kind: output, shape index: {}]  }
   0x1   :  { %10 = vsyncpa [#allocation6], 0 }
   0x2   :  { %11 = vsyncpa [#allocation7], 0  ;;  %s18_s14 = sshll.u32 %s7233_s0, 4  ;;  %s19_s14 = int_to_ptr.vmem [resolvable:$true] %s18_s14 }
   0x3   :  { %s3720_s15 = scalar_lea.vmem %s19_s14, 16  ;;  %p3725_p1 = scmp.lt.s32.totalorder %s19_s14, %s19_s14 }
   0x4   :  { %p3721_p0 = scmp.ne.s32.totalorder %s19_s14, %s3720_s15  ;;  %p3726_p2 = scmp.lt.s32.totalorder %s3720_s15, %s3720_s15 }
   0x6   :  { %p3727_p3 = por %p3726_p2, %p3725_p1 }
   0x8   :  { %p3728_p4 = pnand %p3727_p3, %p3721_p0 }
   0xa   :  { %3731 = shalt.err (!%p3728_p4)
}
   0xb   :  { %s3782_s16 = smov [#allocation5]   ;;  %s3783_s17 = smov [#allocation9]  }
   0xc   :  { %21 = dma.vmem_to_smem %s19_s14, 16, %s3782_s16, [#allocation8]  }
   0xd   :  { %s29_s18 = sshll.u32 %s3783_s17, 4  ;;  %s3732_s21 = scalar_lea.hbm %s7235_s2, 2048  ;;  %s30_s18 = int_to_ptr.vmem [resolvable:$true] %s29_s18 }
   0xe   :  { %p3733_p5 = scmp.ne.s32.totalorder %s7235_s2, %s3732_s21  ;;  %p3736_p6 = scmp.lt.u32.totalorder %s3732_s21, %s7235_s2 }
  0x10   :  { %p3738_p7 = pnand %p3736_p6, %p3733_p5 }
  0x12   :  { %3741 = shalt.err (!%p3738_p7)
}
  0x13   :  { %s3742_s25 = scalar_lea.vmem %s30_s18, 2048  ;;  %p3747_p9 = scmp.lt.s32.totalorder %s30_s18, %s30_s18 }
  0x14   :  { %p3743_p8 = scmp.ne.s32.totalorder %s30_s18, %s3742_s25  ;;  %p3748_p10 = scmp.lt.s32.totalorder %s3742_s25, %s3742_s25 }
  0x16   :  { %p3749_p11 = por %p3748_p10, %p3747_p9 }
  0x18   :  { %p3750_p12 = pnand %p3749_p11, %p3743_p8 }
  0x1a   :  { %3753 = shalt.err (!%p3750_p12)
}
  0x1b   :  { %s7237_s26 = smov 128   ;;  %s7238_s27 = smov 8  }
  0x1c   :  { %35 = dma.hbm_to_vmem [thread:$0]  %s7235_s2, 2048, %s30_s18, [#allocation6], %s7237_s26, %s7237_s26, %s7238_s27  }
  0x1d   :  { %3776 = dma.done.wait [#allocation8], 16  }
  0x1e   :  { %3777 = vsyncadd [#allocation8], 4294967280 }
  0x1f   :  { %3778 = dma.done.wait [#allocation6], 2048  }
  0x20   :  { %3779 = vsyncadd [#allocation6], 4294965248 }
  0x21   :  { %42 = sfence }
  0x22   :  { %vm47_vm0 = vcmask 130048   ;;  %v3786_v0 = vmov -inf   ;;  %v3787_v1 = vmov 0.0   ;;  %v60_v2 = vld [vmem:[#allocation9] sm:$0xff]  ;;  %v61_v3 = vld [vmem:[#allocation9 + $0x8] sm:$0xff]  ;;  %v67_v4 = vld [vmem:[#allocation9 + $0x10] sm:$0xff] }
  0x23   :  { %52 = vst.msk [vmem:[#allocation3] sm:$0xff] %vm47_vm0, %v3786_v0  ;;  %53 = vst.msk [vmem:[#allocation3 + $0x8] sm:$0xff] %vm47_vm0, %v3786_v0  ;;  %v68_v5 = vld [vmem:[#allocation9 + $0x18] sm:$0xff]  ;;  %v99_v6 = vld [vmem:[#allocation9 + $0x40] sm:$0xff]  ;;  %vm256_vm1 = vcmask 1042432   ;;  %vm243_vm2 = vcmask 1040384  }
  0x24   :  { %48 = vst.msk [vmem:[#allocation2] sm:$0xff] %vm47_vm0, %v3787_v1  ;;  %49 = vst.msk [vmem:[#allocation2 + $0x8] sm:$0xff] %vm47_vm0, %v3787_v1  ;;  %v100_v7 = vld [vmem:[#allocation9 + $0x48] sm:$0xff]  ;;  %v106_v8 = vld [vmem:[#allocation9 + $0x50] sm:$0xff]  ;;  %vm245_vm3 = vcmask 1041408   ;;  %s3788_s2 = smov 116  }
  0x25   :  { %50 = vst.msk [vmem:[#allocation2 + $0x10] sm:$0xff] %vm47_vm0, %v3787_v1  ;;  %51 = vst.msk [vmem:[#allocation2 + $0x18] sm:$0xff] %vm47_vm0, %v3787_v1  ;;  %v107_v9 = vld [vmem:[#allocation9 + $0x58] sm:$0xff]  ;;  %v74_v12 = vld [vmem:[#allocation9 + $0x20] sm:$0xff]  ;;  %s3789_s30 = smov 114   ;;  %s3790_s4 = smov 118  }
  0x26   :  { %54 = vst.msk [vmem:[#allocation3 + $0x10] sm:$0xff] %vm47_vm0, %v3786_v0  ;;  %55 = vst.msk [vmem:[#allocation3 + $0x18] sm:$0xff] %vm47_vm0, %v3786_v0  ;;  %v75_v20 = vld [vmem:[#allocation9 + $0x28] sm:$0xff]  ;;  %v113_v29 = vld [vmem:[#allocation9 + $0x60] sm:$0xff]  ;;  %s3791_s5 = smov 125   ;;  %s3792_s6 = smov 127  }
  0x27   :  { %v114_v30 = vld [vmem:[#allocation9 + $0x68] sm:$0xff]  ;;  %v81_v32 = vld [vmem:[#allocation9 + $0x30] sm:$0xff]  ;;  %v82_v33 = vld [vmem:[#allocation9 + $0x38] sm:$0xff]  ;;  %s3793_s7 = smov 1   ;;  %s3794_s8 = smov 3   ;;  %vm300_vm4 = vcmask 15360  }
  0x28   :  { %v120_v41 = vld [vmem:[#allocation9 + $0x70] sm:$0xff]  ;;  %v121_v42 = vld [vmem:[#allocation9 + $0x78] sm:$0xff]  ;;  %vm296_vm5 = vcmask 7168   ;;  %s3795_s9 = smov 19   ;;  %s4134_s10 = sld [smem:[#allocation5 + $0x3]]  ;;  %vm358_vm6 = vcmask 23552  }
  0x29   :  { %s4136_s11 = sld [smem:[#allocation5 + $0xa]]  ;;  %s4142_s12 = sld [smem:[#allocation5 + $0x11]]  ;;  %vm362_vm7 = vcmask 154624   ;;  %vm504_vm8 = vcmask 1046528   ;;  %vm537_vm9 = vcmask 1045504   ;;  %vm570_vm10 = vcmask 1044480  }
  0x2a   :  { %v58_v10 = vld [vmem:[#allocation3] sm:$0xff]  ;;  %v59_v11 = vld [vmem:[#allocation3 + $0x8] sm:$0xff]  ;;  %s4144_s13 = sld [smem:[#allocation5 + $0x18]]  ;;  %s4146_s14 = sld [smem:[#allocation5 + $0x1f]]  ;;  %vm603_vm11 = vcmask 1043456  }
  0x2b   :  { %v56_v13 = vld [vmem:[#allocation2] sm:$0xff]  ;;  %v64_v14 = vmax.f32 %v58_v10, %v60_v2  ;;  %v65_v15 = vmax.f32 %v59_v11, %v61_v3  ;;  %v57_v16 = vld [vmem:[#allocation2 + $0x8] sm:$0xff]  ;;  %s4148_s15 = sld [smem:[#allocation5 + $0x26]]  ;;  %s4150_s16 = sld [smem:[#allocation5 + $0x2d]] }
  0x2c   :  { %v62_v17 = vadd.f32 %v60_v2, %v56_v13  ;;  %v93_v18 = vld [vmem:[#allocation2 + $0x10] sm:$0xff]  ;;  %v94_v19 = vld [vmem:[#allocation2 + $0x18] sm:$0xff]  ;;  %v63_v21 = vadd.f32 %v61_v3, %v57_v16  ;;  %s4152_s17 = sld [smem:[#allocation5 + $0x34]]  ;;  %s4154_s18 = sld [smem:[#allocation5 + $0x3b]] }
  0x2d   :  { %v101_v22 = vadd.f32 %v99_v6, %v93_v18  ;;  %v102_v23 = vadd.f32 %v100_v7, %v94_v19  ;;  %v96_v24 = vld [vmem:[#allocation3 + $0x10] sm:$0xff]  ;;  %v97_v25 = vld [vmem:[#allocation3 + $0x18] sm:$0xff]  ;;  %v71_v26 = vmax.f32 %v64_v14, %v67_v4  ;;  %v72_v27 = vmax.f32 %v65_v15, %v68_v5  ;;  %s4156_s19 = sld [smem:[#allocation5 + $0x42]]  ;;  %s4162_s20 = sld [smem:[#allocation5 + $0x49]] }
  0x2e   :  { %v69_v28 = vadd.f32 %v67_v4, %v62_v17  ;;  %v103_v31 = vmax.f32 %v96_v24, %v99_v6  ;;  %v70_v34 = vadd.f32 %v68_v5, %v63_v21  ;;  %v104_v37 = vmax.f32 %v97_v25, %v100_v7  ;;  %s4164_s21 = sld [smem:[#allocation5 + $0x50]]  ;;  %s4166_s22 = sld [smem:[#allocation5 + $0x57]] }
  0x2f   :  { %v108_v35 = vadd.f32 %v106_v8, %v101_v22  ;;  %v109_v36 = vadd.f32 %v107_v9, %v102_v23  ;;  %v78_v38 = vmax.f32 %v71_v26, %v74_v12  ;;  %v79_v39 = vmax.f32 %v72_v27, %v75_v20  ;;  %s4168_s23 = sld [smem:[#allocation5 + $0x5e]]  ;;  %s4170_s0 = sld [smem:[#allocation5 + $0x5]] }
  0x30   :  { %v76_v40 = vadd.f32 %v74_v12, %v69_v28  ;;  %v110_v43 = vmax.f32 %v103_v31, %v106_v8  ;;  %v77_v44 = vadd.f32 %v75_v20, %v70_v34  ;;  %v111_v47 = vmax.f32 %v104_v37, %v107_v9  ;;  %s4172_s24 = sld [smem:[#allocation5 + $0xc]]  ;;  %s4174_s25 = sld [smem:[#allocation5 + $0x13]] }
  0x31   :  { %v115_v45 = vadd.f32 %v113_v29, %v108_v35  ;;  %v116_v46 = vadd.f32 %v114_v30, %v109_v36  ;;  %v85_v48 = vmax.f32 %v78_v38, %v81_v32  ;;  %v86_v49 = vmax.f32 %v79_v39, %v82_v33  ;;  %s4176_s28 = sld [smem:[#allocation5 + $0x1a]]  ;;  %s4182_s29 = sld [smem:[#allocation5 + $0x21]] }
  0x32   :  { %v83_v50 = vadd.f32 %v81_v32, %v76_v40  ;;  %v117_v51 = vmax.f32 %v110_v43, %v113_v29  ;;  %v84_v52 = vadd.f32 %v82_v33, %v77_v44  ;;  %v118_v55 = vmax.f32 %v111_v47, %v114_v30  ;;  %s4196_s26 = sld [smem:[#allocation5 + $0x59]]  ;;  %s4198_s27 = sld [smem:[#allocation5 + $0x60]] }
  0x33   :  { %v122_v53 = vadd.f32 %v120_v41, %v115_v45  ;;  %v123_v54 = vadd.f32 %v121_v42, %v116_v46  ;;  %90 = vst.msk [vmem:[#allocation3] sm:$0xff] %vm47_vm0, %v85_v48  ;;  %91 = vst.msk [vmem:[#allocation3 + $0x8] sm:$0xff] %vm47_vm0, %v86_v49 }
  0x34   :  { %88 = vst.msk [vmem:[#allocation2] sm:$0xff] %vm47_vm0, %v83_v50  ;;  %v124_v56 = vmax.f32 %v117_v51, %v120_v41  ;;  %89 = vst.msk [vmem:[#allocation2 + $0x8] sm:$0xff] %vm47_vm0, %v84_v52  ;;  %v125_v57 = vmax.f32 %v118_v55, %v121_v42 }
  0x35   :  { %126 = vst.msk [vmem:[#allocation2 + $0x10] sm:$0xff] %vm47_vm0, %v122_v53  ;;  %127 = vst.msk [vmem:[#allocation2 + $0x18] sm:$0xff] %vm47_vm0, %v123_v54 }
  0x36   :  { %128 = vst.msk [vmem:[#allocation3 + $0x10] sm:$0xff] %vm47_vm0, %v124_v56  ;;  %129 = vst.msk [vmem:[#allocation3 + $0x18] sm:$0xff] %vm47_vm0, %v125_v57 }
  0x3a   :  { %v366_v58 = vld [vmem:[#allocation3] sm:$0xff]  ;;  %v367_v59 = vld [vmem:[#allocation3 + $0x8] sm:$0xff] }
  0x3b   :  { %v232_v60 = vld [vmem:[#allocation2] sm:$0xff]  ;;  %v386_v61 = vrot.slane %v366_v58, 5  ;;  %v387_v62 = vrot.slane %v367_v59, 5  ;;  %v369_v63 = vrot.slane %v366_v58, 3  ;;  %v371_v0 = vrot.slane %v366_v58, 1  ;;  %v233_v1 = vld [vmem:[#allocation2 + $0x8] sm:$0xff] }
  0x3c   :  { %v1964_v2 = vld [vmem:[#allocation2 + $0x10] sm:$0xff]  ;;  %v373_v3 = vrot.slane %v366_v58, 7  ;;  %v234_v4 = vmul.f32 0.25, %v232_v60  ;;  %v235_v5 = vmul.f32 0.25, %v233_v1  ;;  %v1965_v6 = vld [vmem:[#allocation2 + $0x18] sm:$0xff]  ;;  %v378_v11 = vrot.slane %v367_v59, 6 }
  0x3d   :  { %v1966_v7 = vmul.f32 0.25, %v1964_v2  ;;  %v3855_v8 = vsel %vm256_vm1, %v386_v61, %v387_v62  ;;  %v375_v9 = vsel %vm243_vm2, %v369_v63, %v371_v0  ;;  %v3858_v10 = vmul.f32 0.25, %v1965_v6  ;;  %v2091_v48 = vld [vmem:[#allocation3 + $0x10] sm:$0xff]  ;;  %v2092_v49 = vld [vmem:[#allocation3 + $0x18] sm:$0xff] }
  0x3e   :  { %442 = vrot.lane.b32.xlu0 %v3855_v8, %s3788_s2  ;;  %433 = vrot.lane.b32.xlu1 %v3855_v8, %s3789_s30  ;;  %v376_v12 = vsel %vm245_vm3, %v375_v9, %v373_v3  ;;  %v257_v13 = vrot.slane %v234_v4, 5  ;;  %v258_v14 = vrot.slane %v235_v5, 5  ;;  %v237_v18 = vrot.slane %v234_v4, 3 }
  0x3f   :  { %v1986_v15 = vrot.slane %v1966_v7, 5  ;;  %v3866_v16 = vsel %vm256_vm1, %v376_v12, %v386_v61  ;;  %v1987_v17 = vrot.slane %v3858_v10, 5  ;;  %v239_v19 = vrot.slane %v234_v4, 1 }
  0x40   :  { %v3870_v20 = vsel %vm256_vm1, %v257_v13, %v258_v14  ;;  %v241_v21 = vrot.slane %v234_v4, 7  ;;  %v380_v22 = vrot.slane %v367_v59, 4  ;;  %v382_v23 = vrot.slane %v367_v59, 2 }
  0x41   :  { %v244_v24 = vsel %vm243_vm2, %v237_v18, %v239_v19  ;;  %v3879_v26 = vsel %vm256_vm1, %v1986_v15, %v1987_v17  ;;  %v1969_v29 = vrot.slane %v1966_v7, 3  ;;  %v1971_v30 = vrot.slane %v1966_v7, 1 }
  0x42   :  { %440 = vrot.lane.b32.xlu1 %v3866_v16, %s3788_s2  ;;  %306 = vrot.lane.b32.xlu0 %v3870_v20, %s3789_s30  ;;  %v384_v25 = vsel %vm243_vm2, %v378_v11, %v380_v22  ;;  %v246_v27 = vsel %vm245_vm3, %v244_v24, %v241_v21  ;;  %v248_v31 = vrot.slane %v235_v5, 6  ;;  %v250_v32 = vrot.slane %v235_v5, 4 }
  0x43   :  { %v385_v28 = vsel %vm245_vm3, %v384_v25, %v382_v23  ;;  %v3888_v33 = vsel %vm256_vm1, %v246_v27, %v257_v13  ;;  %v1973_v35 = vrot.slane %v1966_v7, 7  ;;  %v252_v36 = vrot.slane %v235_v5, 2 }
  0x44   :  { %v392_v34 = vrot.slane %v385_v28, 5  ;;  %v1975_v37 = vsel %vm243_vm2, %v1969_v29, %v1971_v30  ;;  %v254_v38 = vsel %vm243_vm2, %v248_v31, %v250_v32  ;;  %v1978_v42 = vrot.slane %v3858_v10, 6 }
  0x45   :  { %v1976_v40 = vsel %vm245_vm3, %v1975_v37, %v1973_v35  ;;  %v255_v41 = vsel %vm245_vm3, %v254_v38, %v252_v36  ;;  %v1980_v43 = vrot.slane %v3858_v10, 4  ;;  %v1982_v46 = vrot.slane %v3858_v10, 2 }
  0x46   :  { %2033 = vrot.lane.b32.xlu1 %v3879_v26, %s3789_s30  ;;  %315 = vrot.lane.b32.xlu0 %v3870_v20, %s3788_s2  ;;  %v3897_v39 = vsel %vm256_vm1, %v387_v62, %v392_v34  ;;  %v3908_v44 = vsel %vm256_vm1, %v1976_v40, %v1986_v15  ;;  %v263_v45 = vrot.slane %v255_v41, 5  ;;  %v2094_v52 = vrot.slane %v2091_v48, 3 }
  0x47   :  { %v1984_v47 = vsel %vm243_vm2, %v1978_v42, %v1980_v43  ;;  %v2096_v53 = vrot.slane %v2091_v48, 1  ;;  %v2103_v54 = vrot.slane %v2092_v49, 6  ;;  %v2105_v55 = vrot.slane %v2092_v49, 4 }
  0x48   :  { %v3917_v50 = vsel %vm256_vm1, %v258_v14, %v263_v45  ;;  %v1985_v51 = vsel %vm245_vm3, %v1984_v47, %v1982_v46  ;;  %v2098_v57 = vrot.slane %v2091_v48, 7  ;;  %v2107_v58 = vrot.slane %v2092_v49, 2 }
  0x49   :  { %v1992_v56 = vrot.slane %v1985_v51, 5  ;;  %v2100_v59 = vsel %vm243_vm2, %v2094_v52, %v2096_v53  ;;  %v2109_v60 = vsel %vm243_vm2, %v2103_v54, %v2105_v55  ;;  %v2111_v62 = vrot.slane %v2091_v48, 5 }
  0x4a   :  { %431 = vrot.lane.b32.xlu0 %v3866_v16, %s3789_s30  ;;  %313 = vrot.lane.b32.xlu1 %v3888_v33, %s3788_s2  ;;  %v2112_v63 = vrot.slane %v2092_v49, 5  ;;  %v2101_v0 = vsel %vm245_vm3, %v2100_v59, %v2098_v57  ;;  %v2110_v1 = vsel %vm245_vm3, %v2109_v60, %v2107_v58 }
  0x4b   :  { %v3931_v61 = vsel %vm256_vm1, %v1987_v17, %v1992_v56  ;;  %v3943_v3 = vsel %vm256_vm1, %v2101_v0, %v2111_v62  ;;  %v2117_v4 = vrot.slane %v2110_v1, 5 }
  0x4c   :  { %v3940_v2 = vsel %vm256_vm1, %v2111_v62, %v2112_v63 }
  0x4d   :  { %v3950_v5 = vsel %vm256_vm1, %v2112_v63, %v2117_v4 }
  0x4e   :  { %2042 = vrot.lane.b32.xlu0 %v3879_v26, %s3788_s2  ;;  %444 = vrot.lane.b32.xlu1 %v3897_v39, %s3788_s2 }
  0x52   :  { %2040 = vrot.lane.b32.xlu1 %v3908_v44, %s3788_s2  ;;  %304 = vrot.lane.b32.xlu0 %v3888_v33, %s3789_s30 }
  0x56   :  { %308 = vrot.lane.b32.xlu1 %v3917_v50, %s3789_s30  ;;  %435 = vrot.lane.b32.xlu0 %v3897_v39, %s3789_s30 }
  0x5a   :  { %317 = vrot.lane.b32.xlu1 %v3917_v50, %s3788_s2  ;;  %2031 = vrot.lane.b32.xlu0 %v3908_v44, %s3789_s30 }
  0x5e   :  { %2044 = vrot.lane.b32.xlu1 %v3931_v61, %s3788_s2  ;;  %2035 = vrot.lane.b32.xlu0 %v3931_v61, %s3789_s30 }
  0x62   :  { %2158 = vrot.lane.b32.xlu1 %v3940_v2, %s3789_s30  ;;  %2156 = vrot.lane.b32.xlu0 %v3943_v3, %s3789_s30 }
  0x66   :  { %2165 = vrot.lane.b32.xlu1 %v3943_v3, %s3788_s2  ;;  %2160 = vrot.lane.b32.xlu0 %v3950_v5, %s3789_s30  ;;  %s4186_s30 = sld [smem:[#allocation5 + $0x2f]] }
  0x6a   :  { %2169 = vrot.lane.b32.xlu1 %v3950_v5, %s3788_s2  ;;  %2167 = vrot.lane.b32.xlu0 %v3940_v2, %s3788_s2  ;;  %s4184_s2 = sld [smem:[#allocation5 + $0x28]] }
  0x6e   :  { %324 = vrot.lane.b32.xlu1 %v3870_v20, %s3790_s4  ;;  %322 = vrot.lane.b32.xlu0 %v3888_v33, %s3790_s4 }
  0x72   :  { %449 = vrot.lane.b32.xlu1 %v3866_v16, %s3790_s4  ;;  %326 = vrot.lane.b32.xlu0 %v3917_v50, %s3790_s4 }
  0x76   :  { %453 = vrot.lane.b32.xlu1 %v3897_v39, %s3790_s4  ;;  %451 = vrot.lane.b32.xlu0 %v3855_v8, %s3790_s4 }
  0x7a   :  { %2051 = vrot.lane.b32.xlu1 %v3879_v26, %s3790_s4  ;;  %2049 = vrot.lane.b32.xlu0 %v3908_v44, %s3790_s4 }
  0x7e   :  { %2174 = vrot.lane.b32.xlu1 %v3943_v3, %s3790_s4  ;;  %2053 = vrot.lane.b32.xlu0 %v3931_v61, %s3790_s4 }
  0x82   :  { %2178 = vrot.lane.b32.xlu1 %v3950_v5, %s3790_s4  ;;  %2176 = vrot.lane.b32.xlu0 %v3940_v2, %s3790_s4  ;;  %s3658_s4 = sld [smem:[#allocation5 + $0x36]] }
  0x86   :  { %271 = vrot.lane.b32.xlu1 %v3870_v20, %s3791_s5  ;;  %269 = vrot.lane.b32.xlu0 %v3888_v33, %s3791_s5 }
  0x8a   :  { %278 = vrot.lane.b32.xlu1 %v3888_v33, %s3792_s6  ;;  %273 = vrot.lane.b32.xlu0 %v3917_v50, %s3791_s5 }
  0x8e   :  { %282 = vrot.lane.b32.xlu1 %v3917_v50, %s3792_s6  ;;  %280 = vrot.lane.b32.xlu0 %v3870_v20, %s3792_s6 }
  0x92   :  { %400 = vrot.lane.b32.xlu1 %v3855_v8, %s3791_s5  ;;  %398 = vrot.lane.b32.xlu0 %v3866_v16, %s3791_s5 }
  0x96   :  { %407 = vrot.lane.b32.xlu1 %v3866_v16, %s3792_s6  ;;  %402 = vrot.lane.b32.xlu0 %v3897_v39, %s3791_s5 }
  0x9a   :  { %411 = vrot.lane.b32.xlu1 %v3897_v39, %s3792_s6  ;;  %409 = vrot.lane.b32.xlu0 %v3855_v8, %s3792_s6 }
  0x9e   :  { %2000 = vrot.lane.b32.xlu1 %v3879_v26, %s3791_s5  ;;  %1998 = vrot.lane.b32.xlu0 %v3908_v44, %s3791_s5 }
  0xa2   :  { %2007 = vrot.lane.b32.xlu1 %v3908_v44, %s3792_s6  ;;  %2002 = vrot.lane.b32.xlu0 %v3931_v61, %s3791_s5 }
  0xa6   :  { %2011 = vrot.lane.b32.xlu1 %v3931_v61, %s3792_s6  ;;  %2009 = vrot.lane.b32.xlu0 %v3879_v26, %s3792_s6 }
  0xaa   :  { %2125 = vrot.lane.b32.xlu1 %v3940_v2, %s3791_s5  ;;  %2123 = vrot.lane.b32.xlu0 %v3943_v3, %s3791_s5 }
  0xae   :  { %2132 = vrot.lane.b32.xlu1 %v3943_v3, %s3792_s6  ;;  %2127 = vrot.lane.b32.xlu0 %v3950_v5, %s3791_s5  ;;  %s4188_s5 = sld [smem:[#allocation5 + $0x3d]] }
  0xb0   :  { %v4004_v6 = vpop.permute.xlu0 %442  ;;  %v4006_v7 = vpop.permute.xlu1 %433 }
  0xb2   :  { %2136 = vrot.lane.b32.xlu1 %v3950_v5, %s3792_s6  ;;  %2134 = vrot.lane.b32.xlu0 %v3940_v2, %s3792_s6 }
  0xb4   :  { %v441_v9 = vpop.permute.xlu1 %440  ;;  %v307_v10 = vpop.permute.xlu0 %306 }
  0xb6   :  { %289 = vrot.lane.b32.xlu1 %v3870_v20, %s3793_s7  ;;  %287 = vrot.lane.b32.xlu0 %v3888_v33, %s3793_s7 }
  0xb8   :  { %v4014_v11 = vpop.permute.xlu1 %2033  ;;  %v316_v12 = vpop.permute.xlu0 %315 }
  0xba   :  { %416 = vrot.lane.b32.xlu1 %v3866_v16, %s3793_s7  ;;  %291 = vrot.lane.b32.xlu0 %v3917_v50, %s3793_s7 }
  0xbc   :  { %v432_v13 = vpop.permute.xlu0 %431  ;;  %v314_v14 = vpop.permute.xlu1 %313 }
  0xbd   :  { %v458_v38 = vsel %vm296_vm5, %v432_v13, %v441_v9 }
  0xbe   :  { %420 = vrot.lane.b32.xlu1 %v3897_v39, %s3793_s7  ;;  %418 = vrot.lane.b32.xlu0 %v3855_v8, %s3793_s7 }
  0xc0   :  { %v4020_v15 = vpop.permute.xlu0 %2042  ;;  %v445_v17 = vpop.permute.xlu1 %444 }
  0xc2   :  { %2018 = vrot.lane.b32.xlu1 %v3879_v26, %s3793_s7  ;;  %2016 = vrot.lane.b32.xlu0 %v3908_v44, %s3793_s7 }
  0xc4   :  { %v2041_v18 = vpop.permute.xlu1 %2040  ;;  %v305_v19 = vpop.permute.xlu0 %304 }
  0xc6   :  { %2141 = vrot.lane.b32.xlu1 %v3943_v3, %s3793_s7  ;;  %2020 = vrot.lane.b32.xlu0 %v3931_v61, %s3793_s7 }
  0xc8   :  { %v309_v21 = vpop.permute.xlu1 %308  ;;  %v436_v22 = vpop.permute.xlu0 %435 }
  0xc9   :  { %v460_v45 = vsel %vm296_vm5, %v436_v22, %v445_v17 }
  0xca   :  { %2145 = vrot.lane.b32.xlu1 %v3950_v5, %s3793_s7  ;;  %2143 = vrot.lane.b32.xlu0 %v3940_v2, %s3793_s7  ;;  %s4190_s7 = sld [smem:[#allocation5 + $0x44]] }
  0xcc   :  { %v318_v23 = vpop.permute.xlu1 %317  ;;  %v2032_v24 = vpop.permute.xlu0 %2031 }
  0xcd   :  { %v2058_v51 = vsel %vm296_vm5, %v2032_v24, %v2041_v18 }
  0xce   :  { %339 = vrot.lane.b32.xlu1 %v3870_v20, %s3794_s8  ;;  %337 = vrot.lane.b32.xlu0 %v3888_v33, %s3794_s8 }
  0xd0   :  { %v2045_v25 = vpop.permute.xlu1 %2044  ;;  %v2036_v27 = vpop.permute.xlu0 %2035 }
  0xd1   :  { %v2060_v56 = vsel %vm296_vm5, %v2036_v27, %v2045_v25 }
  0xd2   :  { %464 = vrot.lane.b32.xlu1 %v3866_v16, %s3794_s8  ;;  %341 = vrot.lane.b32.xlu0 %v3917_v50, %s3794_s8  ;;  %v2059_v50 = vsel %vm296_vm5, %v4014_v11, %v4020_v15 }
  0xd4   :  { %v2159_v28 = vpop.permute.xlu1 %2158  ;;  %v2157_v29 = vpop.permute.xlu0 %2156 }
  0xd6   :  { %468 = vrot.lane.b32.xlu1 %v3897_v39, %s3794_s8  ;;  %466 = vrot.lane.b32.xlu0 %v3855_v8, %s3794_s8  ;;  %v332_v8 = vsel %vm296_vm5, %v307_v10, %v316_v12  ;;  %v333_v39 = vsel %vm296_vm5, %v309_v21, %v318_v23 }
  0xd8   :  { %v2166_v30 = vpop.permute.xlu1 %2165  ;;  %v2161_v31 = vpop.permute.xlu0 %2160 }
  0xd9   :  { %v2183_v57 = vsel %vm296_vm5, %v2157_v29, %v2166_v30 }
  0xda   :  { %2066 = vrot.lane.b32.xlu1 %v3879_v26, %s3794_s8  ;;  %2064 = vrot.lane.b32.xlu0 %v3908_v44, %s3794_s8  ;;  %v331_v26 = vsel %vm296_vm5, %v305_v19, %v314_v14  ;;  %v459_v44 = vsel %vm296_vm5, %v4006_v7, %v4004_v6 }
  0xdc   :  { %v2170_v20 = vpop.permute.xlu1 %2169  ;;  %v2168_v32 = vpop.permute.xlu0 %2167 }
  0xdd   :  { %v2185_v62 = vsel %vm296_vm5, %v2161_v31, %v2170_v20  ;;  %v2184_v63 = vsel %vm296_vm5, %v2159_v28, %v2168_v32 }
  0xde   :  { %2189 = vrot.lane.b32.xlu1 %v3943_v3, %s3794_s8  ;;  %2068 = vrot.lane.b32.xlu0 %v3931_v61, %s3794_s8 }
  0xe0   :  { %v325_v16 = vpop.permute.xlu1 %324  ;;  %v323_v33 = vpop.permute.xlu0 %322 }
  0xe1   :  { %v335_v36 = vsel %vm300_vm4, %v332_v8, %v325_v16  ;;  %v334_v37 = vsel %vm300_vm4, %v331_v26, %v323_v33 }
  0xe2   :  { %2193 = vrot.lane.b32.xlu1 %v3950_v5, %s3794_s8  ;;  %2191 = vrot.lane.b32.xlu0 %v3940_v2, %s3794_s8  ;;  %s4192_s8 = sld [smem:[#allocation5 + $0x4b]] }
  0xe4   :  { %v450_v34 = vpop.permute.xlu1 %449  ;;  %v327_v35 = vpop.permute.xlu0 %326 }
  0xe5   :  { %v461_v42 = vsel %vm300_vm4, %v458_v38, %v450_v34  ;;  %v336_v43 = vsel %vm300_vm4, %v333_v39, %v327_v35 }
  0xe6   :  { %351 = vrot.lane.b32.xlu1 %v335_v36, %s3795_s9  ;;  %349 = vrot.lane.b32.xlu0 %v334_v37, %s3795_s9 }
  0xe8   :  { %v454_v40 = vpop.permute.xlu1 %453  ;;  %v452_v41 = vpop.permute.xlu0 %451 }
  0xe9   :  { %v463_v48 = vsel %vm300_vm4, %v460_v45, %v454_v40  ;;  %v462_v49 = vsel %vm300_vm4, %v459_v44, %v452_v41 }
  0xea   :  { %476 = vrot.lane.b32.xlu1 %v461_v42, %s3795_s9  ;;  %353 = vrot.lane.b32.xlu0 %v336_v43, %s3795_s9 }
  0xec   :  { %v2052_v46 = vpop.permute.xlu1 %2051  ;;  %v2050_v47 = vpop.permute.xlu0 %2049 }
  0xed   :  { %v2062_v54 = vsel %vm300_vm4, %v2059_v50, %v2052_v46  ;;  %v2061_v55 = vsel %vm300_vm4, %v2058_v51, %v2050_v47 }
  0xee   :  { %480 = vrot.lane.b32.xlu1 %v463_v48, %s3795_s9  ;;  %478 = vrot.lane.b32.xlu0 %v462_v49, %s3795_s9 }
  0xf0   :  { %v2175_v52 = vpop.permute.xlu1 %2174  ;;  %v2054_v53 = vpop.permute.xlu0 %2053 }
  0xf1   :  { %v2186_v60 = vsel %vm300_vm4, %v2183_v57, %v2175_v52  ;;  %v2063_v61 = vsel %vm300_vm4, %v2060_v56, %v2054_v53 }
  0xf2   :  { %2078 = vrot.lane.b32.xlu1 %v2062_v54, %s3795_s9  ;;  %2076 = vrot.lane.b32.xlu0 %v2061_v55, %s3795_s9 }
  0xf4   :  { %v2179_v58 = vpop.permute.xlu1 %2178  ;;  %v2177_v59 = vpop.permute.xlu0 %2176 }
  0xf5   :  { %v2188_v2 = vsel %vm300_vm4, %v2185_v62, %v2179_v58  ;;  %v2187_v3 = vsel %vm300_vm4, %v2184_v63, %v2177_v59 }
  0xf6   :  { %2201 = vrot.lane.b32.xlu1 %v2186_v60, %s3795_s9  ;;  %2080 = vrot.lane.b32.xlu0 %v2063_v61, %s3795_s9 }
  0xf8   :  { %v272_v0 = vpop.permute.xlu1 %271  ;;  %v270_v1 = vpop.permute.xlu0 %269 }
  0xfa   :  { %2205 = vrot.lane.b32.xlu1 %v2188_v2, %s3795_s9  ;;  %2203 = vrot.lane.b32.xlu0 %v2187_v3, %s3795_s9  ;;  %s4194_s9 = sld [smem:[#allocation5 + $0x52]]  ;;  %v4207_v2 = vstv %s4142_s12  ;;  %v4210_v3 = vstv %s4152_s17  ;;  %s4260_s12 = sld [smem:[#allocation5 + $0x10]] }
  0xfb   :  { %s5131_s17 = sld [smem:[#allocation5 + $0x48]] }
  0xfc   :  { %v279_v4 = vpop.permute.xlu1 %278  ;;  %v274_v5 = vpop.permute.xlu0 %273 }
  0xfd   :  { %v4081_v6 = vsel %vm296_vm5, %v270_v1, %v279_v4  ;;  %v4204_v1 = vstv %s4136_s11  ;;  %v4213_v4 = vstv %s4154_s18  ;;  %s4258_s11 = sld [smem:[#allocation5 + $0x9]]  ;;  %s5148_s18 = sld [smem:[#allocation5 + $0x1e]] }
 0x100   :  { %v283_v7 = vpop.permute.xlu1 %282  ;;  %v281_v9 = vpop.permute.xlu0 %280 }
 0x101   :  { %v4084_v10 = vsel %vm296_vm5, %v274_v5, %v283_v7  ;;  %v4087_v11 = vsel %vm296_vm5, %v272_v0, %v281_v9  ;;  %v4201_v0 = vstv %s4134_s10  ;;  %v4216_v5 = vstv %s4144_s13  ;;  %s4221_s10 = sld [smem:[#allocation5 + $0x2]]  ;;  %s5087_s13 = sld [smem:[#allocation5 + $0x33]] }
 0x102   :  { %v4219_v7 = vstv %s4146_s14  ;;  %v4224_v9 = vstv %s4156_s19  ;;  %s5099_s14 = sld [smem:[#allocation5 + $0x3a]]  ;;  %s5150_s19 = sld [smem:[#allocation5 + $0x4f]] }
 0x104   :  { %v401_v12 = vpop.permute.xlu1 %400  ;;  %v399_v13 = vpop.permute.xlu0 %398 }
 0x108   :  { %v408_v14 = vpop.permute.xlu1 %407  ;;  %v403_v15 = vpop.permute.xlu0 %402 }
 0x109   :  { %v4090_v17 = vsel %vm296_vm5, %v399_v13, %v408_v14  ;;  %v4230_v13 = vstv %s4164_s21  ;;  %v4233_v14 = vstv %s4148_s15  ;;  %s5111_s15 = sld [smem:[#allocation5 + $0x17]]  ;;  %s5176_s21 = sld [smem:[#allocation5 + $0x56]] }
 0x10c   :  { %v412_v18 = vpop.permute.xlu1 %411  ;;  %v410_v19 = vpop.permute.xlu0 %409 }
 0x10d   :  { %v4093_v21 = vsel %vm296_vm5, %v403_v15, %v412_v18  ;;  %v4096_v22 = vsel %vm296_vm5, %v401_v12, %v410_v19  ;;  %v4227_v12 = vstv %s4162_s20  ;;  %v4236_v19 = vstv %s4166_s22  ;;  %s5174_s20 = sld [smem:[#allocation5 + $0x25]]  ;;  %s5202_s22 = sld [smem:[#allocation5 + $0x2c]] }
 0x110   :  { %v2001_v23 = vpop.permute.xlu1 %2000  ;;  %v1999_v24 = vpop.permute.xlu0 %1998 }
 0x114   :  { %v2008_v25 = vpop.permute.xlu1 %2007  ;;  %v2003_v27 = vpop.permute.xlu0 %2002 }
 0x115   :  { %v2025_v28 = vsel %vm296_vm5, %v1999_v24, %v2008_v25  ;;  %v4242_v24 = vstv %s4168_s23  ;;  %v4245_v25 = vstv %s4170_s0  ;;  %s5224_s23 = sld [smem:[#allocation5 + $0x5d]]  ;;  %s5498_s0 = sld [smem:[#allocation5 + $0x4]] }
 0x118   :  { %v2012_v29 = vpop.permute.xlu1 %2011  ;;  %v2010_v30 = vpop.permute.xlu0 %2009 }
 0x119   :  { %v2027_v31 = vsel %vm296_vm5, %v2003_v27, %v2012_v29  ;;  %v2026_v20 = vsel %vm296_vm5, %v2001_v23, %v2010_v30  ;;  %v4239_v23 = vstv %s4150_s16  ;;  %v4247_v27 = vstv %s3658_s4  ;;  %s5113_s16 = sld [smem:[#allocation5 + $0x41]]  ;;  %s5570_s4 = sld [smem:[#allocation5 + $0x4a]] }
 0x11a   :  { %v4253_v29 = vstv %s4174_s25  ;;  %v4256_v30 = vstv %s4176_s28  ;;  %s5513_s25 = sld [smem:[#allocation5 + $0x35]]  ;;  %s5521_s28 = sld [smem:[#allocation5 + $0x12]] }
 0x11b   :  { %7294 = vst [vmem:[#allocation14_spill] sm:$0xff] %v4253_v29  ;;  %7295 = vst [vmem:[#allocation15_spill] sm:$0xff] %v4256_v30 }
 0x11c   :  { %v2126_v32 = vpop.permute.xlu1 %2125  ;;  %v2124_v16 = vpop.permute.xlu0 %2123 }
 0x120   :  { %v2133_v33 = vpop.permute.xlu1 %2132  ;;  %v2128_v8 = vpop.permute.xlu0 %2127 }
 0x121   :  { %v2150_v26 = vsel %vm296_vm5, %v2124_v16, %v2133_v33  ;;  %v4272_v16 = vstv %s4184_s2  ;;  %s5533_s2 = sld [smem:[#allocation5 + $0x43]] }
 0x122   :  { %7299 = vst [vmem:[#allocation19_spill] sm:$0xff] %v4272_v16 }
 0x124   :  { %v2137_v34 = vpop.permute.xlu1 %2136  ;;  %v2135_v35 = vpop.permute.xlu0 %2134 }
 0x125   :  { %v2152_v36 = vsel %vm296_vm5, %v2128_v8, %v2137_v34  ;;  %v2151_v37 = vsel %vm296_vm5, %v2126_v32, %v2135_v35  ;;  %v4269_v32 = vstv %s4182_s29  ;;  %v4278_v8 = vstv %s4192_s8  ;;  %s5531_s29 = sld [smem:[#allocation5 + $0x3c]]  ;;  %s5593_s8 = sld [smem:[#allocation5 + $0x51]] }
 0x126   :  { %7298 = vst [vmem:[#allocation18_spill] sm:$0xff] %v4269_v32  ;;  %7300 = vst [vmem:[#allocation20_spill] sm:$0xff] %v4278_v8  ;;  %v4284_v34 = vstv %s4186_s30  ;;  %s5559_s30 = sld [smem:[#allocation5 + $0x19]] }
 0x127   :  { %7302 = vst [vmem:[#allocation22_spill] sm:$0xff] %v4284_v34 }
 0x128   :  { %v4104_v38 = vpop.permute.xlu1 %289  ;;  %v4106_v39 = vpop.permute.xlu0 %287 }
 0x129   :  { %v302_v33 = vsel %vm300_vm4, %v4087_v11, %v4104_v38  ;;  %v301_v35 = vsel %vm300_vm4, %v4081_v6, %v4106_v39  ;;  %v4293_v11 = vstv %s4196_s26  ;;  %v4296_v38 = vstv %s4198_s27  ;;  %s3796_s26 = smov 126   ;;  %s3797_s27 = smov 124  }
 0x12a   :  { %7303 = vst [vmem:[#allocation23_spill] sm:$0xff] %v4293_v11  ;;  %7304 = vst [vmem:[#allocation24_spill] sm:$0xff] %v4296_v38 }
 0x12c   :  { %v4108_v40 = vpop.permute.xlu1 %416  ;;  %v4110_v41 = vpop.permute.xlu0 %291 }
 0x130   :  { %v4112_v42 = vpop.permute.xlu1 %420  ;;  %v4114_v43 = vpop.permute.xlu0 %418 }
 0x131   :  { %v429_v6 = vsel %vm300_vm4, %v4096_v22, %v4114_v43 }
 0x134   :  { %v2019_v44 = vpop.permute.xlu1 %2018  ;;  %v2017_v45 = vpop.permute.xlu0 %2016 }
 0x135   :  { %v4117_v46 = vsel %vm300_vm4, %v2026_v20, %v2019_v44  ;;  %v4120_v47 = vsel %vm300_vm4, %v2025_v28, %v2017_v45  ;;  %v4250_v28 = vstv %s4172_s24  ;;  %v4266_v20 = vstv %s4190_s7  ;;  %s5511_s24 = sld [smem:[#allocation5 + $0xb]]  ;;  %s5591_s7 = sld [smem:[#allocation5 + $0x27]] }
 0x136   :  { %7297 = vst [vmem:[#allocation17_spill] sm:$0xff] %v4266_v20  ;;  %v303_v45 = vsel %vm300_vm4, %v4084_v10, %v4110_v41 }
 0x138   :  { %v2142_v48 = vpop.permute.xlu1 %2141  ;;  %v2021_v49 = vpop.permute.xlu0 %2020 }
 0x139   :  { %v4123_v50 = vsel %vm300_vm4, %v2150_v26, %v2142_v48  ;;  %v4126_v51 = vsel %vm300_vm4, %v2027_v31, %v2021_v49  ;;  %v4263_v31 = vstv %s4188_s5  ;;  %v4281_v26 = vstv %s4194_s9  ;;  %s5576_s5 = sld [smem:[#allocation5 + $0x20]]  ;;  %s5624_s9 = sld [smem:[#allocation5 + $0x2e]] }
 0x13a   :  { %7296 = vst [vmem:[#allocation16_spill] sm:$0xff] %v4263_v31  ;;  %7301 = vst [vmem:[#allocation21_spill] sm:$0xff] %v4281_v26  ;;  %v430_v48 = vsel %vm300_vm4, %v4093_v21, %v4112_v42  ;;  %v4316_v21 = vstv %s4221_s10  ;;  %s5626_s10 = sld [smem:[#allocation5 + $0x58]] }
 0x13b   :  { %7305 = vst [vmem:[#allocation25_spill] sm:$0xff] %v4316_v21 }
 0x13c   :  { %v2146_v52 = vpop.permute.xlu1 %2145  ;;  %v2144_v53 = vpop.permute.xlu0 %2143 }
 0x13d   :  { %v4129_v54 = vsel %vm300_vm4, %v2152_v36, %v2146_v52  ;;  %v4132_v55 = vsel %vm300_vm4, %v2151_v37, %v2144_v53  ;;  %v428_v36 = vsel %vm300_vm4, %v4090_v17, %v4108_v40 }
 0x140   :  { %v4138_v56 = vpop.permute.xlu1 %339  ;;  %v4140_v57 = vpop.permute.xlu0 %337 }
 0x141   :  { %v360_v17 = vsel %vm358_vm6, %v302_v33, %v4138_v56  ;;  %v359_v39 = vsel %vm358_vm6, %v301_v35, %v4140_v57 }
 0x144   :  { %v4158_v58 = vpop.permute.xlu1 %464  ;;  %v4160_v59 = vpop.permute.xlu0 %341 }
 0x145   :  { %v485_v40 = vsel %vm358_vm6, %v428_v36, %v4158_v58  ;;  %v361_v10 = vsel %vm358_vm6, %v303_v45, %v4160_v59  ;;  %v4353_v58 = vstv %s4258_s11  ;;  %s5653_s11 = sld [smem:[#allocation5 + $0x5f]] }
 0x146   :  { %7306 = vst [vmem:[#allocation26_spill] sm:$0xff] %v4353_v58 }
 0x148   :  { %v4178_v60 = vpop.permute.xlu1 %468  ;;  %v4180_v61 = vpop.permute.xlu0 %466 }
 0x149   :  { %v487_v22 = vsel %vm358_vm6, %v430_v48, %v4178_v60  ;;  %v486_v41 = vsel %vm358_vm6, %v429_v6, %v4180_v61 }
 0x14c   :  { %v2067_v62 = vpop.permute.xlu1 %2066  ;;  %v2065_v63 = vpop.permute.xlu0 %2064 }
 0x14d   :  { %v4324_v42 = vsel %vm358_vm6, %v4117_v46, %v2067_v62  ;;  %v4328_v43 = vsel %vm358_vm6, %v4120_v47, %v2065_v63 }
 0x150   :  { %v2190_v15 = vpop.permute.xlu1 %2189  ;;  %v2069_v18 = vpop.permute.xlu0 %2068 }
 0x151   :  { %v4332_v49 = vsel %vm358_vm6, %v4123_v50, %v2190_v15  ;;  %v4336_v52 = vsel %vm358_vm6, %v4126_v51, %v2069_v18  ;;  %v4356_v51 = vstv %s4260_s12  ;;  %s5925_s12 = sld [smem:[#allocation5 + $0x6]] }
 0x152   :  { %7307 = vst [vmem:[#allocation27_spill] sm:$0xff] %v4356_v51 }
 0x154   :  { %v2194_v37 = vpop.permute.xlu1 %2193  ;;  %v2192_v44 = vpop.permute.xlu0 %2191 }
 0x155   :  { %v4340_v53 = vsel %vm358_vm6, %v4129_v54, %v2194_v37  ;;  %v4344_v46 = vsel %vm358_vm6, %v4132_v55, %v2192_v44 }
 0x158   :  { %v352_v56 = vpop.permute.xlu1 %351  ;;  %v350_v57 = vpop.permute.xlu0 %349 }
 0x159   :  { %v4347_v47 = vsel %vm362_vm7, %v360_v17, %v352_v56  ;;  %v4350_v50 = vsel %vm362_vm7, %v359_v39, %v350_v57 }
 0x15a   :  { %v1110_v54 = vmul.f32 %v4201_v0, %v4350_v50  ;;  %v1116_v55 = vmul.f32 %v4204_v1, %v4350_v50  ;;  %v4364_v59 = vmul.f32 %v4204_v1, %v4347_v47  ;;  %v1148_v60 = vmul.f32 %v4207_v2, %v4350_v50 }
 0x15b   :  { %v4370_v61 = vmul.f32 %v4207_v2, %v4347_v47  ;;  %v1180_v62 = vmul.f32 %v4216_v5, %v4350_v50  ;;  %v4376_v63 = vmul.f32 %v4216_v5, %v4347_v47  ;;  %v1212_v15 = vmul.f32 %v4219_v7, %v4350_v50 }
 0x15c   :  { %v477_v18 = vpop.permute.xlu1 %476  ;;  %v354_v33 = vpop.permute.xlu0 %353  ;;  %v1122_v35 = vrot.slane %v1116_v55, 1  ;;  %v7240_v36 = vrot.slane %v4364_v59, 1  ;;  %v1154_v37 = vrot.slane %v1148_v60, 2  ;;  %v4383_v44 = vmul.f32 %v4219_v7, %v4347_v47 }
 0x15d   :  { %v4386_v45 = vsel %vm362_vm7, %v485_v40, %v477_v18  ;;  %v4389_v48 = vsel %vm362_vm7, %v361_v10, %v354_v33  ;;  %v7243_v6 = vrot.slane %v4370_v61, 2  ;;  %v1186_v17 = vrot.slane %v1180_v62, 3 }
 0x15e   :  { %v1113_v39 = vmul.f32 %v4210_v3, %v4386_v45  ;;  %v1124_v56 = vsel %vm504_vm8, %v1122_v35, %v7240_v36  ;;  %v1132_v57 = vmul.f32 %v4213_v4, %v4386_v45  ;;  %v1164_v40 = vmul.f32 %v4224_v9, %v4386_v45 }
 0x15f   :  { %v1129_v55 = vadd.f32 %v1124_v56, %v1110_v54  ;;  %v1156_v10 = vsel %vm537_vm9, %v1154_v37, %v7243_v6  ;;  %v7244_v60 = vrot.slane %v4376_v63, 3  ;;  %v1196_v62 = vmul.f32 %v4227_v12, %v4386_v45 }
 0x160   :  { %v481_v18 = vpop.permute.xlu1 %480  ;;  %v479_v33 = vpop.permute.xlu0 %478  ;;  %v1138_v51 = vrot.slane %v1132_v57, 1  ;;  %v1170_v35 = vrot.slane %v1164_v40, 2  ;;  %v1218_v36 = vrot.slane %v1212_v15, 4  ;;  %v7245_v58 = vrot.slane %v4383_v44, 4 }
 0x161   :  { %v4409_v21 = vsel %vm362_vm7, %v487_v22, %v481_v18  ;;  %v4412_v54 = vsel %vm362_vm7, %v486_v41, %v479_v33  ;;  %v1161_v56 = vadd.f32 %v1156_v10, %v1129_v55  ;;  %v1188_v37 = vsel %vm570_vm10, %v1186_v17, %v7244_v60 }
 0x162   :  { %7308 = vst [vmem:[#allocation28_spill] sm:$0xff] %v4409_v21  ;;  %7309 = vst [vmem:[#allocation29_spill] sm:$0xff] %v4412_v54  ;;  %v4419_v6 = vmul.f32 %v4213_v4, %v4412_v54  ;;  %v4423_v15 = vmul.f32 %v4224_v9, %v4412_v54  ;;  %v4427_v22 = vmul.f32 %v4227_v12, %v4412_v54  ;;  %v1202_v57 = vrot.slane %v1196_v62, 3 }
 0x163   :  { %v1193_v41 = vadd.f32 %v1188_v37, %v1161_v56  ;;  %v1220_v40 = vsel %vm603_vm11, %v1218_v36, %v7245_v58  ;;  %v1228_v17 = vmul.f32 %v4230_v13, %v4386_v45  ;;  %v4436_v55 = vmul.f32 %v4230_v13, %v4412_v54 }
 0x164   :  { %v2079_v10 = vpop.permute.xlu1 %2078  ;;  %v2077_v18 = vpop.permute.xlu0 %2076  ;;  %v7252_v33 = vrot.slane %v4419_v6, 1  ;;  %v7251_v60 = vrot.slane %v4423_v15, 2  ;;  %v1244_v56 = vmul.f32 %v4233_v14, %v4350_v50  ;;  %v7310_v11 = vrot.slane %v4427_v22, 3 }
 0x165   :  { %v4445_v36 = vsel %vm362_vm7, %v4324_v42, %v2079_v10  ;;  %v4449_v37 = vsel %vm362_vm7, %v4328_v43, %v2077_v18  ;;  %v1225_v58 = vadd.f32 %v1220_v40, %v1193_v41  ;;  %v1234_v38 = vrot.slane %v1228_v17, 4 }
 0x166   :  { %v1140_v34 = vsel %vm504_vm8, %v1138_v51, %v7252_v33  ;;  %v1172_v62 = vsel %vm537_vm9, %v1170_v35, %v7251_v60  ;;  %v1204_v16 = vsel %vm570_vm10, %v1202_v57, %v7310_v11  ;;  %v7250_v42 = vrot.slane %v4436_v55, 4 }
 0x167   :  { %v1145_v10 = vadd.f32 %v1140_v34, %v1113_v39  ;;  %v4463_v43 = vmul.f32 %v4233_v14, %v4347_v47  ;;  %v1250_v41 = vrot.slane %v1244_v56, 5  ;;  %v1260_v40 = vmul.f32 %v4236_v19, %v4386_v45 }
 0x168   :  { %v2202_v51 = vpop.permute.xlu1 %2201  ;;  %v2081_v17 = vpop.permute.xlu0 %2080  ;;  %v1236_v35 = vsel %vm603_vm11, %v1234_v38, %v7250_v42  ;;  %v4472_v11 = vmul.f32 %v4236_v19, %v4412_v54  ;;  %v1276_v34 = vmul.f32 %v4239_v23, %v4350_v50  ;;  %v4478_v39 = vmul.f32 %v4239_v23, %v4347_v47 }
 0x169   :  { %v4482_v57 = vsel %vm362_vm7, %v4332_v49, %v2202_v51  ;;  %v4486_v18 = vsel %vm362_vm7, %v4336_v52, %v2081_v17  ;;  %v1177_v38 = vadd.f32 %v1172_v62, %v1145_v10  ;;  %v7258_v56 = vrot.slane %v4463_v43, 5 }
 0x16a   :  { %v1266_v42 = vrot.slane %v1260_v40, 5  ;;  %v7256_v60 = vrot.slane %v4472_v11, 5  ;;  %v1282_v33 = vrot.slane %v1276_v34, 6  ;;  %v7257_v26 = vrot.slane %v4478_v39, 6 }
 0x16b   :  { %v1209_v32 = vadd.f32 %v1204_v16, %v1177_v38  ;;  %v1252_v8 = vsel %vm256_vm1, %v1250_v41, %v7258_v56  ;;  %v1292_v49 = vmul.f32 %v4242_v24, %v4386_v45  ;;  %v4498_v52 = vmul.f32 %v4242_v24, %v4412_v54 }
 0x16c   :  { %v2206_v62 = vpop.permute.xlu1 %2205  ;;  %v2204_v10 = vpop.permute.xlu0 %2203  ;;  %v1257_v40 = vadd.f32 %v1252_v8, %v1225_v58  ;;  %v1268_v51 = vsel %vm256_vm1, %v1266_v42, %v7256_v60  ;;  %v1284_v16 = vsel %vm245_vm3, %v1282_v33, %v7257_v26  ;;  %v1111_v41 = vmul.f32 %v4201_v0, %v4347_v47 }
 0x16d   :  { %v4510_v17 = vsel %vm362_vm7, %v4340_v53, %v2206_v62  ;;  %v4514_v34 = vsel %vm362_vm7, %v4344_v46, %v2204_v10  ;;  %v1241_v8 = vadd.f32 %v1236_v35, %v1209_v32  ;;  %v1298_v58 = vrot.slane %v1292_v49, 6 }
 0x16e   :  { %v1289_v38 = vadd.f32 %v1284_v16, %v1257_v40  ;;  %v1299_v42 = vrot.slane %v4498_v52, 6  ;;  %v1114_v60 = vmul.f32 %v4210_v3, %v4412_v54  ;;  %v1118_v33 = vmul.f32 %v4204_v1, %v4389_v48 }
 0x16f   :  { %v1273_v26 = vadd.f32 %v1268_v51, %v1241_v8  ;;  %v1134_v53 = vmul.f32 %v4213_v4, %v4409_v21  ;;  %v1150_v62 = vmul.f32 %v4207_v2, %v4389_v48  ;;  %v1166_v32 = vmul.f32 %v4224_v9, %v4409_v21 }
 0x170   :  { %v1300_v46 = vsel %vm245_vm3, %v1298_v58, %v1299_v42  ;;  %v1125_v35 = vrot.slane %v1118_v33, 1  ;;  %v1182_v49 = vmul.f32 %v4216_v5, %v4389_v48  ;;  %v1198_v52 = vmul.f32 %v4227_v12, %v4409_v21 }
 0x171   :  { %v1305_v10 = vadd.f32 %v1300_v46, %v1273_v26  ;;  %v1141_v40 = vrot.slane %v1134_v53, 1  ;;  %v1157_v51 = vrot.slane %v1150_v62, 2  ;;  %v1173_v16 = vrot.slane %v1166_v32, 2 }
 0x172   :  { %v7311_v8 = vrot.slane %v4364_v59, 1  ;;  %v1189_v30 = vrot.slane %v1182_v49, 3  ;;  %v1205_v20 = vrot.slane %v1198_v52, 3  ;;  %v1214_v58 = vmul.f32 %v4219_v7, %v4389_v48 }
 0x173   :  { %v1307_v33 = vadd.f32 %v1305_v10, %v1289_v38  ;;  %v7312_v54 = vrot.slane %v4419_v6, 1  ;;  %v7313_v26 = vrot.slane %v4370_v61, 2  ;;  %v7314_v59 = vrot.slane %v4423_v15, 2 }
 0x174   :  { %v1126_v56 = vsel %vm504_vm8, %v7311_v8, %v1125_v35  ;;  %v7315_v46 = vrot.slane %v4376_v63, 3  ;;  %v7316_v38 = vrot.slane %v4427_v22, 3  ;;  %v1221_v61 = vrot.slane %v1214_v58, 4 }
 0x175   :  { %v1130_v29 = vadd.f32 %v1126_v56, %v1111_v41  ;;  %v1142_v31 = vsel %vm504_vm8, %v7312_v54, %v1141_v40  ;;  %v1158_v53 = vsel %vm537_vm9, %v7313_v26, %v1157_v51  ;;  %v1174_v32 = vsel %vm537_vm9, %v7314_v59, %v1173_v16  ;;  %1311 = vrot.lane.b32.xlu0 %v1307_v33, %s3796_s26 }
 0x176   :  { %v1146_v62 = vadd.f32 %v1142_v31, %v1114_v60  ;;  %v1190_v35 = vsel %vm570_vm10, %v7315_v46, %v1189_v30  ;;  %v1206_v56 = vsel %vm570_vm10, %v7316_v38, %v1205_v20  ;;  %v1230_v31 = vmul.f32 %v4230_v13, %v4409_v21 }
 0x177   :  { %v1162_v6 = vadd.f32 %v1158_v53, %v1130_v29  ;;  %v1246_v60 = vmul.f32 %v4233_v14, %v4389_v48  ;;  %v1262_v63 = vmul.f32 %v4236_v19, %v4409_v21  ;;  %v1278_v30 = vmul.f32 %v4239_v23, %v4389_v48 }
 0x178   :  { %v1178_v54 = vadd.f32 %v1174_v32, %v1146_v62  ;;  %v1294_v20 = vmul.f32 %v4242_v24, %v4409_v21  ;;  %v7317_v29 = vrot.slane %v4383_v44, 4  ;;  %v1237_v41 = vrot.slane %v1230_v31, 4 }
 0x179   :  { %v1194_v15 = vadd.f32 %v1190_v35, %v1162_v6  ;;  %v1253_v49 = vrot.slane %v1246_v60, 5  ;;  %v1269_v10 = vrot.slane %v1262_v63, 5  ;;  %v1285_v40 = vrot.slane %v1278_v30, 6 }
 0x17a   :  { %v1222_v22 = vsel %vm603_vm11, %v7317_v29, %v1221_v61  ;;  %v1210_v52 = vadd.f32 %v1206_v56, %v1178_v54  ;;  %v1301_v51 = vrot.slane %v1294_v20, 6  ;;  %v7318_v8 = vrot.slane %v4436_v55, 4 }
 0x17b   :  { %v1226_v16 = vadd.f32 %v1222_v22, %v1194_v15  ;;  %v7319_v33 = vrot.slane %v4463_v43, 5  ;;  %v2788_v44 = vmul.f32 %v4449_v37, %v4201_v0  ;;  %v7320_v62 = vrot.slane %v4472_v11, 5 }
 0x17c   :  { %v1238_v58 = vsel %vm603_vm11, %v7318_v8, %v1237_v41  ;;  %v7321_v32 = vrot.slane %v4478_v39, 6  ;;  %v1302_v55 = vsel %vm245_vm3, %v1299_v42, %v1301_v51  ;;  %v2790_v43 = vmul.f32 %v4482_v57, %v4210_v3 }
 0x17d   :  { %v1254_v26 = vsel %vm256_vm1, %v7319_v33, %v1253_v49  ;;  %v1242_v53 = vadd.f32 %v1238_v58, %v1210_v52  ;;  %v1270_v59 = vsel %vm256_vm1, %v7320_v62, %v1269_v10  ;;  %v2792_v38 = vmul.f32 %v4449_v37, %v4204_v1 }
 0x17e   :  { %v1286_v46 = vsel %vm245_vm3, %v7321_v32, %v1285_v40  ;;  %v1258_v35 = vadd.f32 %v1254_v26, %v1226_v16  ;;  %v4587_v56 = vmul.f32 %v4445_v36, %v4204_v1  ;;  %v2807_v6 = vmul.f32 %v4482_v57, %v4213_v4 }
 0x17f   :  { %v1274_v11 = vadd.f32 %v1270_v59, %v1242_v53  ;;  %v4593_v39 = vmul.f32 %v4514_v34, %v4213_v4  ;;  %v2822_v42 = vmul.f32 %v4449_v37, %v4207_v2  ;;  %v2798_v31 = vrot.slane %v2792_v38, 1 }
 0x180   :  { %v1290_v61 = vadd.f32 %v1286_v46, %v1258_v35  ;;  %v2799_v60 = vrot.slane %v4587_v56, 1  ;;  %v4600_v54 = vmul.f32 %v4445_v36, %v4207_v2  ;;  %v2813_v30 = vrot.slane %v2807_v6, 1 }
 0x181   :  { %v1306_v63 = vadd.f32 %v1302_v55, %v1274_v11  ;;  %v2814_v20 = vrot.slane %v4593_v39, 1  ;;  %v2828_v15 = vrot.slane %v2822_v42, 2  ;;  %v2837_v41 = vmul.f32 %v4482_v57, %v4224_v9 }
 0x182   :  { %v2800_v29 = vsel %vm504_vm8, %v2798_v31, %v2799_v60  ;;  %v2829_v22 = vrot.slane %v4600_v54, 2  ;;  %v4611_v49 = vmul.f32 %v4514_v34, %v4224_v9  ;;  %v2852_v51 = vmul.f32 %v4449_v37, %v4216_v5 }
 0x183   :  { %v1308_v52 = vadd.f32 %v1306_v63, %v1290_v61  ;;  %v2805_v10 = vadd.f32 %v2800_v29, %v2788_v44  ;;  %v2815_v40 = vsel %vm504_vm8, %v2813_v30, %v2814_v20  ;;  %v2843_v58 = vrot.slane %v2837_v41, 2 }
 0x184   :  { %v2820_v16 = vadd.f32 %v2815_v40, %v2790_v43  ;;  %v2830_v8 = vsel %vm537_vm9, %v2828_v15, %v2829_v22  ;;  %v2844_v33 = vrot.slane %v4611_v49, 2  ;;  %v4625_v44 = vmul.f32 %v4445_v36, %v4216_v5 }
 0x185   :  { %1313 = vrot.lane.b32.xlu1 %v1308_v52, %s3796_s26  ;;  %v2835_v26 = vadd.f32 %v2830_v8, %v2805_v10  ;;  %v2858_v53 = vrot.slane %v2852_v51, 3  ;;  %v2867_v62 = vmul.f32 %v4482_v57, %v4227_v12  ;;  %v4634_v32 = vmul.f32 %v4514_v34, %v4227_v12 }
 0x186   :  { %v2845_v59 = vsel %vm537_vm9, %v2843_v58, %v2844_v33  ;;  %v2882_v46 = vmul.f32 %v4449_v37, %v4219_v7  ;;  %v4640_v55 = vmul.f32 %v4445_v36, %v4219_v7  ;;  %v2859_v43 = vrot.slane %v4625_v44, 3 }
 0x187   :  { %v2850_v35 = vadd.f32 %v2845_v59, %v2820_v16  ;;  %v2873_v38 = vrot.slane %v2867_v62, 3  ;;  %v2897_v11 = vmul.f32 %v4482_v57, %v4230_v13  ;;  %v2874_v6 = vrot.slane %v4634_v32, 3 }
 0x188   :  { %v2888_v42 = vrot.slane %v2882_v46, 4  ;;  %v2889_v61 = vrot.slane %v4640_v55, 4  ;;  %v4649_v31 = vmul.f32 %v4514_v34, %v4230_v13  ;;  %v2860_v63 = vsel %vm570_vm10, %v2858_v53, %v2859_v43 }
 0x189   :  { %v2903_v30 = vrot.slane %v2897_v11, 4  ;;  %v2912_v15 = vmul.f32 %v4449_v37, %v4233_v14  ;;  %v4658_v29 = vmul.f32 %v4445_v36, %v4233_v14  ;;  %v2865_v41 = vadd.f32 %v2860_v63, %v2835_v26 }
 0x18a   :  { %v2875_v52 = vsel %vm570_vm10, %v2873_v38, %v2874_v6  ;;  %v2890_v10 = vsel %vm603_vm11, %v2888_v42, %v2889_v61  ;;  %v2904_v40 = vrot.slane %v4649_v31, 4  ;;  %v2927_v58 = vmul.f32 %v4482_v57, %v4236_v19 }
 0x18b   :  { %v2880_v51 = vadd.f32 %v2875_v52, %v2850_v35  ;;  %v2918_v16 = vrot.slane %v2912_v15, 5  ;;  %v7265_v8 = vrot.slane %v4658_v29, 5  ;;  %v2895_v53 = vadd.f32 %v2890_v10, %v2865_v41 }
 0x18c   :  { %v2905_v26 = vsel %vm603_vm11, %v2903_v30, %v2904_v40  ;;  %v4675_v62 = vmul.f32 %v4514_v34, %v4236_v19  ;;  %v2942_v59 = vmul.f32 %v4449_v37, %v4239_v23  ;;  %v2933_v38 = vrot.slane %v2927_v58, 5 }
 0x18d   :  { %v2910_v46 = vadd.f32 %v2905_v26, %v2880_v51  ;;  %v2920_v35 = vsel %vm256_vm1, %v2918_v16, %v7265_v8  ;;  %v4684_v11 = vmul.f32 %v4445_v36, %v4239_v23  ;;  %v2957_v15 = vmul.f32 %v4482_v57, %v4242_v24 }
 0x18e   :  { %v2925_v42 = vadd.f32 %v2920_v35, %v2895_v53  ;;  %v2934_v63 = vrot.slane %v4675_v62, 5  ;;  %v2948_v30 = vrot.slane %v2942_v59, 6  ;;  %v4692_v52 = vmul.f32 %v4514_v34, %v4242_v24 }
 0x18f   :  { %v2949_v41 = vrot.slane %v4684_v11, 6  ;;  %v2789_v10 = vmul.f32 %v4445_v36, %v4201_v0  ;;  %v2791_v51 = vmul.f32 %v4514_v34, %v4210_v3  ;;  %v2963_v58 = vrot.slane %v2957_v15, 6 }
 0x190   :  { %v2935_v16 = vsel %vm256_vm1, %v2933_v38, %v2934_v63  ;;  %v2794_v53 = vmul.f32 %v4486_v18, %v4204_v1  ;;  %v2809_v26 = vmul.f32 %v4510_v17, %v4213_v4  ;;  %v2964_v35 = vrot.slane %v4692_v52, 6 }
 0x191   :  { %v2940_v62 = vadd.f32 %v2935_v16, %v2910_v46  ;;  %v2950_v59 = vsel %vm245_vm3, %v2948_v30, %v2949_v41  ;;  %v2824_v0 = vmul.f32 %v4486_v18, %v4207_v2  ;;  %v2839_v38 = vmul.f32 %v4510_v17, %v4224_v9 }
 0x192   :  { %v2955_v11 = vadd.f32 %v2950_v59, %v2925_v42  ;;  %v2801_v8 = vrot.slane %v2794_v53, 1  ;;  %v2816_v3 = vrot.slane %v2809_v26, 1  ;;  %v2965_v15 = vsel %vm245_vm3, %v2963_v58, %v2964_v35 }
 0x193   :  { %v2831_v1 = vrot.slane %v2824_v0, 2  ;;  %v2854_v4 = vmul.f32 %v4486_v18, %v4216_v5  ;;  %v2869_v46 = vmul.f32 %v4510_v17, %v4227_v12  ;;  %v2970_v30 = vadd.f32 %v2965_v15, %v2940_v62 }
 0x194   :  { %v2802_v2 = vsel %vm504_vm8, %v2799_v60, %v2801_v8  ;;  %v2817_v42 = vsel %vm504_vm8, %v2814_v20, %v2816_v3  ;;  %v2846_v52 = vrot.slane %v2839_v38, 2  ;;  %v2884_v60 = vmul.f32 %v4486_v18, %v4219_v7 }
 0x195   :  { %v2806_v9 = vadd.f32 %v2802_v2, %v2789_v10  ;;  %v2821_v16 = vadd.f32 %v2817_v42, %v2791_v51  ;;  %v2832_v58 = vsel %vm537_vm9, %v2829_v22, %v2831_v1  ;;  %v2861_v5 = vrot.slane %v2854_v4, 3  ;;  %v7323_v1 = vld [vmem:[#allocation16_spill] sm:$0xff]  ;;  %v7325_v2 = vld [vmem:[#allocation14_spill] sm:$0xff] }
 0x196   :  { %v2972_v53 = vadd.f32 %v2970_v30, %v2955_v11  ;;  %v2847_v12 = vsel %vm537_vm9, %v2844_v33, %v2846_v52  ;;  %v2876_v56 = vrot.slane %v2869_v46, 3  ;;  %v2899_v54 = vmul.f32 %v4510_v17, %v4230_v13  ;;  %v7324_v30 = vld [vmem:[#allocation29_spill] sm:$0xff] }
 0x197   :  { %v2836_v39 = vadd.f32 %v2832_v58, %v2806_v9  ;;  %v2851_v8 = vadd.f32 %v2847_v12, %v2821_v16  ;;  %v2862_v20 = vsel %vm570_vm10, %v2859_v43, %v2861_v5  ;;  %v2891_v49 = vrot.slane %v2884_v60, 4 }
 0x198   :  { %2976 = vrot.lane.b32.xlu0 %v2972_v53, %s3796_s26  ;;  %v2877_v22 = vsel %vm570_vm10, %v2874_v6, %v2876_v56  ;;  %v2914_v33 = vmul.f32 %v4486_v18, %v4233_v14  ;;  %v2929_v7 = vmul.f32 %v4510_v17, %v4236_v19  ;;  %v2906_v51 = vrot.slane %v2899_v54, 4  ;;  %v7326_v53 = vld [vmem:[#allocation17_spill] sm:$0xff] }
 0x199   :  { %v2866_v10 = vadd.f32 %v2862_v20, %v2836_v39  ;;  %v2881_v44 = vadd.f32 %v2877_v22, %v2851_v8  ;;  %v2944_v43 = vmul.f32 %v4486_v18, %v4239_v23  ;;  %v2892_v13 = vsel %vm603_vm11, %v2889_v61, %v2891_v49  ;;  %v7327_v20 = vld [vmem:[#allocation15_spill] sm:$0xff] }
 0x19a   :  { %v2921_v32 = vrot.slane %v2914_v33, 5  ;;  %v2936_v26 = vrot.slane %v2929_v7, 5  ;;  %v2959_v6 = vmul.f32 %v4510_v17, %v4242_v24  ;;  %v2907_v14 = vsel %vm603_vm11, %v2904_v40, %v2906_v51 }
 0x19b   :  { %v2896_v62 = vadd.f32 %v2892_v13, %v2866_v10  ;;  %v2951_v19 = vrot.slane %v2944_v43, 6  ;;  %v1530_v59 = vmul.f32 %v4245_v25, %v4350_v50  ;;  %v2911_v0 = vadd.f32 %v2907_v14, %v2881_v44 }
 0x19c   :  { %v7322_v23 = vrot.slane %v4658_v29, 5  ;;  %v2937_v61 = vsel %vm256_vm1, %v2934_v63, %v2936_v26  ;;  %v2966_v11 = vrot.slane %v2959_v6, 6  ;;  %v1533_v31 = vmul.f32 %v4247_v27, %v4386_v45  ;;  %v7328_v26 = vld [vmem:[#allocation20_spill] sm:$0xff] }
 0x19d   :  { %v2952_v24 = vsel %vm245_vm3, %v2949_v41, %v2951_v19  ;;  %v1536_v40 = vmul.f32 %v4250_v28, %v4350_v50  ;;  %v2941_v38 = vadd.f32 %v2937_v61, %v2911_v0  ;;  %v4765_v29 = vmul.f32 %v4250_v28, %v4347_v47 }
 0x19e   :  { %v2922_v55 = vsel %vm256_vm1, %v7322_v23, %v2921_v32  ;;  %v2967_v15 = vsel %vm245_vm3, %v2964_v35, %v2966_v11  ;;  %v1552_v63 = vmul.f32 %v7323_v1, %v4386_v45  ;;  %v4771_v41 = vmul.f32 %v7323_v1, %v7324_v30  ;;  %v7330_v11 = vld [vmem:[#allocation21_spill] sm:$0xff] }
 0x19f   :  { %v2926_v3 = vadd.f32 %v2922_v55, %v2896_v62  ;;  %v1542_v46 = vrot.slane %v1536_v40, 1  ;;  %v1568_v42 = vmul.f32 %v7325_v2, %v4350_v50  ;;  %v2971_v52 = vadd.f32 %v2967_v15, %v2941_v38  ;;  %v7331_v15 = vld [vmem:[#allocation19_spill] sm:$0xff] }
 0x1a0   :  { %v1543_v9 = vrot.slane %v4765_v29, 1  ;;  %v1558_v35 = vrot.slane %v1552_v63, 1  ;;  %v4778_v16 = vmul.f32 %v7325_v2, %v4347_v47  ;;  %v1559_v58 = vrot.slane %v4771_v41, 1 }
 0x1a1   :  { %v2956_v4 = vadd.f32 %v2952_v24, %v2926_v3  ;;  %v1574_v5 = vrot.slane %v1568_v42, 2  ;;  %v1584_v12 = vmul.f32 %v7326_v53, %v4386_v45  ;;  %v4785_v56 = vmul.f32 %v7326_v53, %v7324_v30 }
 0x1a2   :  { %v1544_v39 = vsel %vm504_vm8, %v1542_v46, %v1543_v9  ;;  %v1575_v8 = vrot.slane %v4778_v16, 2  ;;  %v1600_v54 = vmul.f32 %v7327_v20, %v4350_v50  ;;  %v1560_v49 = vsel %vm504_vm8, %v1558_v35, %v1559_v58 }
 0x1a3   :  { %v2973_v60 = vadd.f32 %v2971_v52, %v2956_v4  ;;  %v1549_v22 = vadd.f32 %v1544_v39, %v1530_v59  ;;  %v1590_v33 = vrot.slane %v1584_v12, 2  ;;  %v1591_v7 = vrot.slane %v4785_v56, 2  ;;  %v7329_v59 = vld [vmem:[#allocation18_spill] sm:$0xff] }
 0x1a4   :  { %v1565_v10 = vadd.f32 %v1560_v49, %v1533_v31  ;;  %v1576_v44 = vsel %vm537_vm9, %v1574_v5, %v1575_v8  ;;  %v4803_v51 = vmul.f32 %v7327_v20, %v4347_v47  ;;  %v1606_v43 = vrot.slane %v1600_v54, 3 }
 0x1a5   :  { %2978 = vrot.lane.b32.xlu1 %v2973_v60, %s3796_s26  ;;  %v1581_v13 = vadd.f32 %v1576_v44, %v1549_v22  ;;  %v1592_v32 = vsel %vm537_vm9, %v1590_v33, %v1591_v7  ;;  %v1616_v6 = vmul.f32 %v7328_v26, %v4386_v45  ;;  %v4812_v62 = vmul.f32 %v7328_v26, %v7324_v30  ;;  %v7332_v22 = vld [vmem:[#allocation23_spill] sm:$0xff] }
 0x1a6   :  { %v1597_v14 = vadd.f32 %v1592_v32, %v1565_v10  ;;  %v1607_v19 = vrot.slane %v4803_v51, 3  ;;  %v1632_v0 = vmul.f32 %v7329_v59, %v4350_v50  ;;  %v4819_v23 = vmul.f32 %v7329_v59, %v4347_v47 }
 0x1a7   :  { %v1622_v55 = vrot.slane %v1616_v6, 3  ;;  %v1623_v61 = vrot.slane %v4812_v62, 3  ;;  %v1648_v3 = vmul.f32 %v7330_v11, %v4386_v45  ;;  %v4826_v24 = vmul.f32 %v7330_v11, %v7324_v30 }
 0x1a8   :  { %v1608_v31 = vsel %vm570_vm10, %v1606_v43, %v1607_v19  ;;  %v1638_v40 = vrot.slane %v1632_v0, 4  ;;  %v1639_v38 = vrot.slane %v4819_v23, 4  ;;  %v1664_v63 = vmul.f32 %v7331_v15, %v4350_v50  ;;  %v7333_v43 = vld [vmem:[#allocation22_spill] sm:$0xff]  ;;  %v7334_v0 = vld [vmem:[#allocation24_spill] sm:$0xff] }
 0x1a9   :  { %v1613_v4 = vadd.f32 %v1608_v31, %v1581_v13  ;;  %v1624_v46 = vsel %vm570_vm10, %v1622_v55, %v1623_v61  ;;  %v1654_v42 = vrot.slane %v1648_v3, 4  ;;  %v7268_v52 = vrot.slane %v4826_v24, 4 }
 0x1aa   :  { %v1629_v35 = vadd.f32 %v1624_v46, %v1597_v14  ;;  %v1640_v5 = vsel %vm603_vm11, %v1638_v40, %v1639_v38  ;;  %v4843_v12 = vmul.f32 %v7331_v15, %v4347_v47  ;;  %v1670_v60 = vrot.slane %v1664_v63, 5 }
 0x1ab   :  { %v1645_v39 = vadd.f32 %v1640_v5, %v1613_v4  ;;  %v1656_v54 = vsel %vm603_vm11, %v1654_v42, %v7268_v52  ;;  %v1680_v49 = vmul.f32 %v7332_v22, %v4386_v45  ;;  %v4852_v33 = vmul.f32 %v7332_v22, %v7324_v30 }
 0x1ac   :  { %v1661_v10 = vadd.f32 %v1656_v54, %v1629_v35  ;;  %v7266_v44 = vrot.slane %v4843_v12, 5  ;;  %v1696_v13 = vmul.f32 %v7333_v43, %v4350_v50  ;;  %v4859_v32 = vmul.f32 %v7333_v43, %v4347_v47 }
 0x1ad   :  { %v1686_v6 = vrot.slane %v1680_v49, 5  ;;  %v7267_v14 = vrot.slane %v4852_v33, 5  ;;  %v1712_v55 = vmul.f32 %v7334_v0, %v4386_v45  ;;  %v4866_v3 = vmul.f32 %v7334_v0, %v7324_v30 }
 0x1ae   :  { %v1672_v31 = vsel %vm256_vm1, %v1670_v60, %v7266_v44  ;;  %v1702_v40 = vrot.slane %v1696_v13, 6  ;;  %v1703_v63 = vrot.slane %v4859_v32, 6  ;;  %v1531_v4 = vmul.f32 %v4245_v25, %v4347_v47 }
 0x1af   :  { %v1677_v46 = vadd.f32 %v1672_v31, %v1645_v39  ;;  %v1688_v42 = vsel %vm256_vm1, %v1686_v6, %v7267_v14  ;;  %v1718_v35 = vrot.slane %v1712_v55, 6  ;;  %v1719_v5 = vrot.slane %v4866_v3, 6 }
 0x1b0   :  { %v1693_v54 = vadd.f32 %v1688_v42, %v1661_v10  ;;  %v1704_v49 = vsel %vm245_vm3, %v1702_v40, %v1703_v63  ;;  %v1534_v60 = vmul.f32 %v4247_v27, %v7324_v30  ;;  %v1538_v13 = vmul.f32 %v4250_v28, %v4389_v48 }
 0x1b1   :  { %v1709_v32 = vadd.f32 %v1704_v49, %v1677_v46  ;;  %v1720_v44 = vsel %vm245_vm3, %v1718_v35, %v1719_v5  ;;  %v1554_v39 = vmul.f32 %v7323_v1, %v4409_v21  ;;  %v1570_v6 = vmul.f32 %v7325_v2, %v4389_v48 }
 0x1b2   :  { %v1725_v55 = vadd.f32 %v1720_v44, %v1693_v54  ;;  %v1545_v3 = vrot.slane %v1538_v13, 1  ;;  %v1586_v10 = vmul.f32 %v7326_v53, %v4409_v21  ;;  %v1602_v31 = vmul.f32 %v7327_v20, %v4389_v48 }
 0x1b3   :  { %v1561_v40 = vrot.slane %v1554_v39, 1  ;;  %v1577_v42 = vrot.slane %v1570_v6, 2  ;;  %v1618_v46 = vmul.f32 %v7328_v26, %v4409_v21  ;;  %v1634_v35 = vmul.f32 %v7329_v59, %v4389_v48 }
 0x1b4   :  { %v1727_v49 = vadd.f32 %v1725_v55, %v1709_v32  ;;  %v1546_v44 = vsel %vm504_vm8, %v1543_v9, %v1545_v3  ;;  %v1593_v54 = vrot.slane %v1586_v10, 2  ;;  %v1609_v13 = vrot.slane %v1602_v31, 3 }
 0x1b5   :  { %v1550_v14 = vadd.f32 %v1546_v44, %v1531_v4  ;;  %v1562_v52 = vsel %vm504_vm8, %v1559_v58, %v1561_v40  ;;  %v1578_v39 = vsel %vm537_vm9, %v1575_v8, %v1577_v42  ;;  %v1625_v6 = vrot.slane %v1618_v46, 3 }
 0x1b6   :  { %1731 = vrot.lane.b32.xlu0 %v1727_v49, %s3797_s27  ;;  %v1566_v32 = vadd.f32 %v1562_v52, %v1534_v60  ;;  %v1594_v29 = vsel %vm537_vm9, %v1591_v7, %v1593_v54  ;;  %v1610_v9 = vsel %vm570_vm10, %v1607_v19, %v1609_v13  ;;  %v1641_v41 = vrot.slane %v1634_v35, 4 }
 0x1b7   :  { %v1582_v4 = vadd.f32 %v1578_v39, %v1550_v14  ;;  %v1626_v16 = vsel %vm570_vm10, %v1623_v61, %v1625_v6  ;;  %v1650_v58 = vmul.f32 %v7330_v11, %v4409_v21  ;;  %v1666_v8 = vmul.f32 %v7331_v15, %v4389_v48 }
 0x1b8   :  { %v1598_v52 = vadd.f32 %v1594_v29, %v1566_v32  ;;  %v1642_v56 = vsel %vm603_vm11, %v1639_v38, %v1641_v41  ;;  %v1682_v7 = vmul.f32 %v7332_v22, %v4409_v21  ;;  %v1698_v51 = vmul.f32 %v7333_v43, %v4389_v48 }
 0x1b9   :  { %v1614_v62 = vadd.f32 %v1610_v9, %v1582_v4  ;;  %v1657_v19 = vrot.slane %v1650_v58, 4  ;;  %v1673_v61 = vrot.slane %v1666_v8, 5  ;;  %v1714_v14 = vmul.f32 %v7334_v0, %v4409_v21 }
 0x1ba   :  { %v1630_v60 = vadd.f32 %v1626_v16, %v1598_v52  ;;  %v1689_v55 = vrot.slane %v1682_v7, 5  ;;  %v1705_v3 = vrot.slane %v1698_v51, 6  ;;  %v3180_v23 = vmul.f32 %v4449_v37, %v4245_v25 }
 0x1bb   :  { %v1646_v10 = vadd.f32 %v1642_v56, %v1614_v62  ;;  %v7335_v38 = vrot.slane %v4826_v24, 4  ;;  %v7336_v40 = vrot.slane %v4843_v12, 5  ;;  %v1721_v46 = vrot.slane %v1714_v14, 6 }
 0x1bc   :  { %v7337_v49 = vrot.slane %v4852_v33, 5  ;;  %v1706_v54 = vsel %vm245_vm3, %v1703_v63, %v1705_v3  ;;  %v3182_v13 = vmul.f32 %v4482_v57, %v4247_v27  ;;  %v3184_v6 = vmul.f32 %v4449_v37, %v4250_v28 }
 0x1bd   :  { %v1658_v31 = vsel %vm603_vm11, %v7335_v38, %v1657_v19  ;;  %v1674_v42 = vsel %vm256_vm1, %v7336_v40, %v1673_v61  ;;  %v1722_v24 = vsel %vm245_vm3, %v1719_v5, %v1721_v46  ;;  %v4947_v12 = vmul.f32 %v4445_v36, %v4250_v28 }
 0x1be   :  { %v1662_v35 = vadd.f32 %v1658_v31, %v1630_v60  ;;  %v1690_v44 = vsel %vm256_vm1, %v7337_v49, %v1689_v55  ;;  %v1678_v39 = vadd.f32 %v1674_v42, %v1646_v10  ;;  %v3199_v33 = vmul.f32 %v4482_v57, %v7323_v1 }
 0x1bf   :  { %v4953_v63 = vmul.f32 %v4514_v34, %v7323_v1  ;;  %v3214_v29 = vmul.f32 %v4449_v37, %v7325_v2  ;;  %v3190_v5 = vrot.slane %v3184_v6, 1  ;;  %v3191_v41 = vrot.slane %v4947_v12, 1 }
 0x1c0   :  { %v1694_v32 = vadd.f32 %v1690_v44, %v1662_v35  ;;  %v1710_v9 = vadd.f32 %v1706_v54, %v1678_v39  ;;  %v4960_v4 = vmul.f32 %v4445_v36, %v7325_v2  ;;  %v3205_v58 = vrot.slane %v3199_v33, 1 }
 0x1c1   :  { %v3206_v8 = vrot.slane %v4953_v63, 1  ;;  %v3220_v52 = vrot.slane %v3214_v29, 2  ;;  %v3192_v56 = vsel %vm504_vm8, %v3190_v5, %v3191_v41  ;;  %v3229_v51 = vmul.f32 %v4482_v57, %v7326_v53 }
 0x1c2   :  { %v1726_v16 = vadd.f32 %v1722_v24, %v1694_v32  ;;  %v3221_v7 = vrot.slane %v4960_v4, 2  ;;  %v4971_v62 = vmul.f32 %v4514_v34, %v7326_v53  ;;  %v3197_v61 = vadd.f32 %v3192_v56, %v3180_v23 }
 0x1c3   :  { %v3207_v14 = vsel %vm504_vm8, %v3205_v58, %v3206_v8  ;;  %v3244_v60 = vmul.f32 %v4449_v37, %v7327_v20  ;;  %v3235_v10 = vrot.slane %v3229_v51, 2  ;;  %v4985_v23 = vmul.f32 %v4445_v36, %v7327_v20 }
 0x1c4   :  { %v1728_v19 = vadd.f32 %v1726_v16, %v1710_v9  ;;  %v3212_v55 = vadd.f32 %v3207_v14, %v3182_v13  ;;  %v3222_v3 = vsel %vm537_vm9, %v3220_v52, %v3221_v7  ;;  %v3236_v38 = vrot.slane %v4971_v62, 2 }
 0x1c5   :  { %v3227_v31 = vadd.f32 %v3222_v3, %v3197_v61  ;;  %v3250_v40 = vrot.slane %v3244_v60, 3  ;;  %v3259_v42 = vmul.f32 %v4482_v57, %v7328_v26  ;;  %v4994_v35 = vmul.f32 %v4514_v34, %v7328_v26 }
 0x1c6   :  { %1733 = vrot.lane.b32.xlu1 %v1728_v19, %s3797_s27  ;;  %v3237_v46 = vsel %vm537_vm9, %v3235_v10, %v3236_v38  ;;  %v3274_v49 = vmul.f32 %v4449_v37, %v7329_v59  ;;  %v5000_v44 = vmul.f32 %v4445_v36, %v7329_v59  ;;  %v3251_v13 = vrot.slane %v4985_v23, 3 }
 0x1c7   :  { %v3242_v54 = vadd.f32 %v3237_v46, %v3212_v55  ;;  %v3265_v39 = vrot.slane %v3259_v42, 3  ;;  %v3289_v24 = vmul.f32 %v4482_v57, %v7330_v11  ;;  %v3266_v6 = vrot.slane %v4994_v35, 3 }
 0x1c8   :  { %v3280_v32 = vrot.slane %v3274_v49, 4  ;;  %v3281_v33 = vrot.slane %v5000_v44, 4  ;;  %v5009_v29 = vmul.f32 %v4514_v34, %v7330_v11  ;;  %v3252_v9 = vsel %vm570_vm10, %v3250_v40, %v3251_v13 }
 0x1c9   :  { %v3295_v5 = vrot.slane %v3289_v24, 4  ;;  %v3304_v16 = vmul.f32 %v4449_v37, %v7331_v15  ;;  %v5018_v58 = vmul.f32 %v4445_v36, %v7331_v15  ;;  %v3257_v52 = vadd.f32 %v3252_v9, %v3227_v31 }
 0x1ca   :  { %v3267_v56 = vsel %vm570_vm10, %v3265_v39, %v3266_v6  ;;  %v3282_v51 = vsel %vm603_vm11, %v3280_v32, %v3281_v33  ;;  %v3296_v19 = vrot.slane %v5009_v29, 4  ;;  %v3319_v55 = vmul.f32 %v4482_v57, %v7332_v22 }
 0x1cb   :  { %v3272_v61 = vadd.f32 %v3267_v56, %v3242_v54  ;;  %v3310_v14 = vrot.slane %v3304_v16, 5  ;;  %v3311_v60 = vrot.slane %v5018_v58, 5  ;;  %v3287_v3 = vadd.f32 %v3282_v51, %v3257_v52 }
 0x1cc   :  { %v3297_v10 = vsel %vm603_vm11, %v3295_v5, %v3296_v19  ;;  %v5035_v31 = vmul.f32 %v4514_v34, %v7332_v22  ;;  %v3334_v40 = vmul.f32 %v4449_v37, %v7333_v43  ;;  %v3325_v49 = vrot.slane %v3319_v55, 5 }
 0x1cd   :  { %v3302_v42 = vadd.f32 %v3297_v10, %v3272_v61  ;;  %v3312_v46 = vsel %vm256_vm1, %v3310_v14, %v3311_v60  ;;  %v5044_v54 = vmul.f32 %v4445_v36, %v7333_v43  ;;  %v3349_v9 = vmul.f32 %v4482_v57, %v7334_v0 }
 0x1ce   :  { %v3317_v39 = vadd.f32 %v3312_v46, %v3287_v3  ;;  %v7269_v24 = vrot.slane %v5035_v31, 5  ;;  %v3340_v32 = vrot.slane %v3334_v40, 6  ;;  %v5052_v16 = vmul.f32 %v4514_v34, %v7334_v0 }
 0x1cf   :  { %v3341_v5 = vrot.slane %v5044_v54, 6  ;;  %v3181_v52 = vmul.f32 %v4445_v36, %v4245_v25  ;;  %v3183_v56 = vmul.f32 %v4514_v34, %v4247_v27  ;;  %v3355_v61 = vrot.slane %v3349_v9, 6 }
 0x1d0   :  { %v3327_v51 = vsel %vm256_vm1, %v3325_v49, %v7269_v24  ;;  %v3186_v14 = vmul.f32 %v4486_v18, %v4250_v28  ;;  %v3201_v55 = vmul.f32 %v4510_v17, %v7323_v1  ;;  %v3356_v25 = vrot.slane %v5052_v16, 6 }
 0x1d1   :  { %v3332_v3 = vadd.f32 %v3327_v51, %v3302_v42  ;;  %v3342_v10 = vsel %vm245_vm3, %v3340_v32, %v3341_v5  ;;  %v3216_v27 = vmul.f32 %v4486_v18, %v7325_v2  ;;  %v3231_v9 = vmul.f32 %v4510_v17, %v7326_v53 }
 0x1d2   :  { %v3347_v40 = vadd.f32 %v3342_v10, %v3317_v39  ;;  %v3193_v46 = vrot.slane %v3186_v14, 1  ;;  %v3208_v49 = vrot.slane %v3201_v55, 1  ;;  %v3357_v28 = vsel %vm245_vm3, %v3355_v61, %v3356_v25 }
 0x1d3   :  { %v3223_v24 = vrot.slane %v3216_v27, 2  ;;  %v3246_v1 = vmul.f32 %v4486_v18, %v7327_v20  ;;  %v3261_v42 = vmul.f32 %v4510_v17, %v7328_v26  ;;  %v3362_v32 = vadd.f32 %v3357_v28, %v3332_v3  ;;  %v7338_v3 = vld [vmem:[#allocation25_spill] sm:$0xff] }
 0x1d4   :  { %v3194_v2 = vsel %vm504_vm8, %v3191_v41, %v3193_v46  ;;  %v3209_v39 = vsel %vm504_vm8, %v3206_v8, %v3208_v49  ;;  %v3238_v16 = vrot.slane %v3231_v9, 2  ;;  %v3276_v63 = vmul.f32 %v4486_v18, %v7329_v59  ;;  %v7340_v49 = vld [vmem:[#allocation26_spill] sm:$0xff] }
 0x1d5   :  { %v3198_v53 = vadd.f32 %v3194_v2, %v3181_v52  ;;  %v3213_v51 = vadd.f32 %v3209_v39, %v3183_v56  ;;  %v3224_v61 = vsel %vm537_vm9, %v3221_v7, %v3223_v24  ;;  %v3253_v20 = vrot.slane %v3246_v1, 3 }
 0x1d6   :  { %v3364_v26 = vadd.f32 %v3362_v32, %v3347_v40  ;;  %v3239_v12 = vsel %vm537_vm9, %v3236_v38, %v3238_v16  ;;  %v3268_v41 = vrot.slane %v3261_v42, 3  ;;  %v3291_v7 = vmul.f32 %v4510_v17, %v7330_v11  ;;  %v7341_v42 = vld [vmem:[#allocation27_spill] sm:$0xff] }
 0x1d7   :  { %v3228_v8 = vadd.f32 %v3224_v61, %v3198_v53  ;;  %v3243_v14 = vadd.f32 %v3239_v12, %v3213_v51  ;;  %v3254_v4 = vsel %vm570_vm10, %v3251_v13, %v3253_v20  ;;  %v3283_v38 = vrot.slane %v3276_v63, 4 }
 0x1d8   :  { %3368 = vrot.lane.b32.xlu0 %v3364_v26, %s3797_s27  ;;  %v3269_v62 = vsel %vm570_vm10, %v3266_v6, %v3268_v41  ;;  %v3306_v59 = vmul.f32 %v4486_v18, %v7331_v15  ;;  %v3321_v23 = vmul.f32 %v4510_v17, %v7332_v22  ;;  %v3298_v52 = vrot.slane %v3291_v7, 4 }
 0x1d9   :  { %v3258_v24 = vadd.f32 %v3254_v4, %v3228_v8  ;;  %v3273_v13 = vadd.f32 %v3269_v62, %v3243_v14  ;;  %v3336_v11 = vmul.f32 %v4486_v18, %v7333_v43  ;;  %v3284_v35 = vsel %vm603_vm11, %v3281_v33, %v3283_v38 }
 0x1da   :  { %v3313_v6 = vrot.slane %v3306_v59, 5  ;;  %v3328_v15 = vrot.slane %v3321_v23, 5  ;;  %v3351_v22 = vmul.f32 %v4510_v17, %v7334_v0  ;;  %v3299_v55 = vsel %vm603_vm11, %v3296_v19, %v3298_v52 }
 0x1db   :  { %v3288_v56 = vadd.f32 %v3284_v35, %v3258_v24  ;;  %v3343_v43 = vrot.slane %v3336_v11, 6  ;;  %v900_v10 = vmul.f32 %v7338_v3, %v4350_v50  ;;  %v3303_v27 = vadd.f32 %v3299_v55, %v3273_v13 }
 0x1dc   :  { %v3314_v44 = vsel %vm256_vm1, %v3311_v60, %v3313_v6  ;;  %v7339_v33 = vrot.slane %v5035_v31, 5  ;;  %v3358_v0 = vrot.slane %v3351_v22, 6  ;;  %v5137_v46 = vstv %s5087_s13  ;;  %s5945_s13 = sld [smem:[#allocation5 + $0x37]] }
 0x1dd   :  { %v3318_v29 = vadd.f32 %v3314_v44, %v3288_v56  ;;  %v3344_v19 = vsel %vm245_vm3, %v3341_v5, %v3343_v43  ;;  %v906_v58 = vmul.f32 %v7340_v49, %v4350_v50  ;;  %v903_v31 = vmul.f32 %v5137_v46, %v4386_v45 }
 0x1de   :  { %v3329_v40 = vsel %vm256_vm1, %v7339_v33, %v3328_v15  ;;  %v3359_v60 = vsel %vm245_vm3, %v3356_v25, %v3358_v0  ;;  %v5146_v28 = vmul.f32 %v7340_v49, %v4347_v47  ;;  %v5153_v1 = vstv %s5099_s14  ;;  %s5947_s14 = sld [smem:[#allocation5 + $0x3e]] }
 0x1df   :  { %v3333_v9 = vadd.f32 %v3329_v40, %v3303_v27  ;;  %v3348_v54 = vadd.f32 %v3344_v19, %v3318_v29  ;;  %v912_v5 = vrot.slane %v906_v58, 1  ;;  %v938_v32 = vmul.f32 %v7341_v42, %v4350_v50 }
 0x1e0   :  { %v913_v2 = vrot.slane %v5146_v28, 1  ;;  %v922_v39 = vmul.f32 %v5153_v1, %v4386_v45  ;;  %v5162_v16 = vmul.f32 %v5153_v1, %v7324_v30  ;;  %v5166_v53 = vmul.f32 %v7341_v42, %v4347_v47 }
 0x1e1   :  { %v3363_v25 = vadd.f32 %v3359_v60, %v3333_v9  ;;  %v944_v51 = vrot.slane %v938_v32, 2  ;;  %v5169_v61 = vstv %s5113_s16  ;;  %v5172_v20 = vstv %s5111_s15  ;;  %s5964_s15 = sld [smem:[#allocation5 + $0x14]]  ;;  %s5972_s16 = sld [smem:[#allocation5 + $0x45]] }
 0x1e2   :  { %v914_v12 = vsel %vm504_vm8, %v912_v5, %v913_v2  ;;  %v928_v41 = vrot.slane %v922_v39, 1  ;;  %v929_v63 = vrot.slane %v5162_v16, 1  ;;  %v945_v14 = vrot.slane %v5166_v53, 2 }
 0x1e3   :  { %v3365_v26 = vadd.f32 %v3363_v25, %v3348_v54  ;;  %v919_v8 = vadd.f32 %v914_v12, %v900_v10  ;;  %v954_v4 = vmul.f32 %v5169_v61, %v4386_v45  ;;  %v5187_v7 = vmul.f32 %v5169_v61, %v7324_v30 }
 0x1e4   :  { %v930_v62 = vsel %vm504_vm8, %v928_v41, %v929_v63  ;;  %v970_v38 = vmul.f32 %v5172_v20, %v4350_v50  ;;  %v5197_v59 = vmul.f32 %v5172_v20, %v4347_v47  ;;  %v5200_v23 = vstv %s5131_s17  ;;  %s5983_s17 = sld [smem:[#allocation5 + $0x1b]] }
 0x1e5   :  { %3370 = vrot.lane.b32.xlu1 %v3365_v26, %s3797_s27  ;;  %v935_v24 = vadd.f32 %v930_v62, %v903_v31  ;;  %v946_v13 = vsel %vm537_vm9, %v944_v51, %v945_v14  ;;  %v960_v52 = vrot.slane %v954_v4, 2  ;;  %v961_v11 = vrot.slane %v5187_v7, 2 }
 0x1e6   :  { %v951_v35 = vadd.f32 %v946_v13, %v919_v8  ;;  %v976_v6 = vrot.slane %v970_v38, 3  ;;  %v977_v15 = vrot.slane %v5197_v59, 3  ;;  %v986_v22 = vmul.f32 %v5200_v23, %v4386_v45 }
 0x1e7   :  { %v962_v56 = vsel %vm537_vm9, %v960_v52, %v961_v11  ;;  %v5216_v55 = vmul.f32 %v5200_v23, %v7324_v30  ;;  %v5219_v43 = vstv %s5148_s18  ;;  %v5222_v10 = vstv %s5150_s19  ;;  %s5994_s18 = sld [smem:[#allocation5 + $0x4c]]  ;;  %s6005_s19 = sld [smem:[#allocation5 + $0x22]] }
 0x1e8   :  { %v967_v27 = vadd.f32 %v962_v56, %v935_v24  ;;  %v978_v44 = vsel %vm570_vm10, %v976_v6, %v977_v15  ;;  %v992_v33 = vrot.slane %v986_v22, 3  ;;  %v1002_v40 = vmul.f32 %v5219_v43, %v4350_v50 }
 0x1e9   :  { %v983_v0 = vadd.f32 %v978_v44, %v951_v35  ;;  %v7274_v29 = vrot.slane %v5216_v55, 3  ;;  %v5234_v19 = vmul.f32 %v5219_v43, %v4347_v47  ;;  %v1018_v58 = vmul.f32 %v5222_v10, %v4386_v45 }
 0x1ea   :  { %v1008_v9 = vrot.slane %v1002_v40, 4  ;;  %v5240_v60 = vmul.f32 %v5222_v10, %v7324_v30  ;;  %v5243_v31 = vstv %s5174_s20  ;;  %v5246_v54 = vstv %s5176_s21  ;;  %s6024_s20 = sld [smem:[#allocation5 + $0x29]]  ;;  %s6032_s21 = sld [smem:[#allocation5 + $0x53]] }
 0x1eb   :  { %v994_v5 = vsel %vm570_vm10, %v992_v33, %v7274_v29  ;;  %v7273_v32 = vrot.slane %v5234_v19, 4  ;;  %v1024_v25 = vrot.slane %v1018_v58, 4  ;;  %v1034_v39 = vmul.f32 %v5243_v31, %v4350_v50 }
 0x1ec   :  { %v999_v51 = vadd.f32 %v994_v5, %v967_v27  ;;  %v7272_v26 = vrot.slane %v5240_v60, 4  ;;  %v5257_v12 = vmul.f32 %v5243_v31, %v4347_v47  ;;  %v1050_v41 = vmul.f32 %v5246_v54, %v4386_v45 }
 0x1ed   :  { %v1010_v8 = vsel %vm603_vm11, %v1008_v9, %v7273_v32  ;;  %v1040_v4 = vrot.slane %v1034_v39, 5  ;;  %v5266_v62 = vmul.f32 %v5246_v54, %v7324_v30  ;;  %v5269_v38 = vstv %s5202_s22  ;;  %s6056_s22 = sld [smem:[#allocation5 + $0x30]] }
 0x1ee   :  { %v1015_v24 = vadd.f32 %v1010_v8, %v983_v0  ;;  %v1026_v13 = vsel %vm603_vm11, %v1024_v25, %v7272_v26  ;;  %v7271_v52 = vrot.slane %v5257_v12, 5  ;;  %v1056_v35 = vrot.slane %v1050_v41, 5 }
 0x1ef   :  { %v1031_v6 = vadd.f32 %v1026_v13, %v999_v51  ;;  %v7270_v22 = vrot.slane %v5266_v62, 5  ;;  %v1066_v56 = vmul.f32 %v5269_v38, %v4350_v50  ;;  %v5280_v27 = vmul.f32 %v5269_v38, %v4347_v47 }
 0x1f0   :  { %v1042_v44 = vsel %vm256_vm1, %v1040_v4, %v7271_v52  ;;  %v5286_v33 = vstv %s5224_s23  ;;  %v901_v40 = vmul.f32 %v7338_v3, %v4347_v47  ;;  %v904_v0 = vmul.f32 %v5137_v46, %v7324_v30  ;;  %s6058_s23 = sld [smem:[#allocation5 + $0x5a]] }
 0x1f1   :  { %v1047_v58 = vadd.f32 %v1042_v44, %v1015_v24  ;;  %v1058_v9 = vsel %vm256_vm1, %v1056_v35, %v7270_v22  ;;  %v1072_v5 = vrot.slane %v1066_v56, 6  ;;  %v1073_v25 = vrot.slane %v5280_v27, 6 }
 0x1f2   :  { %v1063_v39 = vadd.f32 %v1058_v9, %v1031_v6  ;;  %v1082_v51 = vmul.f32 %v5286_v33, %v4386_v45  ;;  %v1083_v41 = vmul.f32 %v5286_v33, %v7324_v30  ;;  %v908_v8 = vmul.f32 %v7340_v49, %v4389_v48 }
 0x1f3   :  { %v1074_v4 = vsel %vm245_vm3, %v1072_v5, %v1073_v25  ;;  %v924_v24 = vmul.f32 %v5153_v1, %v4409_v21  ;;  %v940_v13 = vmul.f32 %v7341_v42, %v4389_v48  ;;  %v956_v35 = vmul.f32 %v5169_v61, %v4409_v21 }
 0x1f4   :  { %v1079_v6 = vadd.f32 %v1074_v4, %v1047_v58  ;;  %v1088_v56 = vrot.slane %v1082_v51, 6  ;;  %v1089_v27 = vrot.slane %v1083_v41, 6  ;;  %v915_v44 = vrot.slane %v908_v8, 1 }
 0x1f5   :  { %v931_v9 = vrot.slane %v924_v24, 1  ;;  %v947_v22 = vrot.slane %v940_v13, 2  ;;  %v963_v52 = vrot.slane %v956_v35, 2  ;;  %v972_v26 = vmul.f32 %v5172_v20, %v4389_v48 }
 0x1f6   :  { %v1090_v5 = vsel %vm245_vm3, %v1088_v56, %v1089_v27  ;;  %v916_v32 = vsel %vm504_vm8, %v913_v2, %v915_v44  ;;  %v988_v29 = vmul.f32 %v5200_v23, %v4409_v21  ;;  %v1004_v58 = vmul.f32 %v5219_v43, %v4389_v48 }
 0x1f7   :  { %v1095_v51 = vadd.f32 %v1090_v5, %v1063_v39  ;;  %v920_v41 = vadd.f32 %v916_v32, %v901_v40  ;;  %v932_v8 = vsel %vm504_vm8, %v929_v63, %v931_v9  ;;  %v948_v4 = vsel %vm537_vm9, %v945_v14, %v947_v22 }
 0x1f8   :  { %v936_v24 = vadd.f32 %v932_v8, %v904_v0  ;;  %v964_v28 = vsel %vm537_vm9, %v961_v11, %v963_v52  ;;  %v979_v2 = vrot.slane %v972_v26, 3  ;;  %v995_v13 = vrot.slane %v988_v29, 3 }
 0x1f9   :  { %v1097_v35 = vadd.f32 %v1095_v51, %v1079_v6  ;;  %v952_v56 = vadd.f32 %v948_v4, %v920_v41  ;;  %v1011_v44 = vrot.slane %v1004_v58, 4  ;;  %v1020_v32 = vmul.f32 %v5222_v10, %v4409_v21 }
 0x1fa   :  { %v968_v16 = vadd.f32 %v964_v28, %v936_v24  ;;  %v980_v53 = vsel %vm570_vm10, %v977_v15, %v979_v2  ;;  %v7342_v63 = vrot.slane %v5216_v55, 3  ;;  %v1036_v7 = vmul.f32 %v5243_v31, %v4389_v48 }
 0x1fb   :  { %1101 = vrot.lane.b32.xlu0 %v1097_v35, %s3796_s26  ;;  %v984_v11 = vadd.f32 %v980_v53, %v952_v56  ;;  %v7343_v29 = vrot.slane %v5234_v19, 4  ;;  %v1027_v52 = vrot.slane %v1020_v32, 4  ;;  %v1052_v59 = vmul.f32 %v5246_v54, %v4409_v21 }
 0x1fc   :  { %v996_v14 = vsel %vm570_vm10, %v7342_v63, %v995_v13  ;;  %v1043_v15 = vrot.slane %v1036_v7, 5  ;;  %v1068_v55 = vmul.f32 %v5269_v38, %v4389_v48  ;;  %v1084_v40 = vmul.f32 %v5286_v33, %v4409_v21 }
 0x1fd   :  { %v1012_v26 = vsel %vm603_vm11, %v7343_v29, %v1011_v44  ;;  %v1000_v22 = vadd.f32 %v996_v14, %v968_v16  ;;  %v7344_v39 = vrot.slane %v5240_v60, 4  ;;  %v1059_v19 = vrot.slane %v1052_v59, 5 }
 0x1fe   :  { %v1016_v0 = vadd.f32 %v1012_v26, %v984_v11  ;;  %v2592_v9 = vmul.f32 %v4449_v37, %v7338_v3  ;;  %v7345_v58 = vrot.slane %v5257_v12, 5  ;;  %v1075_v41 = vrot.slane %v1068_v55, 6 }
 0x1ff   :  { %v1028_v6 = vsel %vm603_vm11, %v7344_v39, %v1027_v52  ;;  %v1091_v8 = vrot.slane %v1084_v40, 6  ;;  %v7346_v24 = vrot.slane %v5266_v62, 5  ;;  %v2594_v60 = vmul.f32 %v4482_v57, %v5137_v46 }
 0x200   :  { %v1032_v5 = vadd.f32 %v1028_v6, %v1000_v22  ;;  %v1044_v51 = vsel %vm256_vm1, %v7345_v58, %v1043_v15  ;;  %v2596_v2 = vmul.f32 %v4449_v37, %v7340_v49  ;;  %v1076_v35 = vsel %vm245_vm3, %v1073_v25, %v1075_v41 }
 0x201   :  { %v1048_v4 = vadd.f32 %v1044_v51, %v1016_v0  ;;  %v1060_v28 = vsel %vm256_vm1, %v7346_v24, %v1059_v19  ;;  %v1092_v12 = vsel %vm245_vm3, %v1089_v27, %v1091_v8  ;;  %v5367_v56 = vmul.f32 %v4445_v36, %v7340_v49 }
 0x202   :  { %v1064_v13 = vadd.f32 %v1060_v28, %v1032_v5  ;;  %v2602_v32 = vrot.slane %v2596_v2, 1  ;;  %v2611_v62 = vmul.f32 %v4482_v57, %v5153_v1  ;;  %v5373_v16 = vmul.f32 %v4514_v34, %v5153_v1 }
 0x203   :  { %v1080_v44 = vadd.f32 %v1076_v35, %v1048_v4  ;;  %v2603_v63 = vrot.slane %v5367_v56, 1  ;;  %v2626_v25 = vmul.f32 %v4449_v37, %v7341_v42  ;;  %v5380_v27 = vmul.f32 %v4445_v36, %v7341_v42 }
 0x204   :  { %v1096_v53 = vadd.f32 %v1092_v12, %v1064_v13  ;;  %v2617_v14 = vrot.slane %v2611_v62, 1  ;;  %v2618_v7 = vrot.slane %v5373_v16, 1  ;;  %v2641_v11 = vmul.f32 %v4482_v57, %v5169_v61 }
 0x205   :  { %v5387_v29 = vmul.f32 %v4514_v34, %v5169_v61  ;;  %v2604_v52 = vsel %vm504_vm8, %v2602_v32, %v2603_v63  ;;  %v2632_v59 = vrot.slane %v2626_v25, 2  ;;  %v2633_v22 = vrot.slane %v5380_v27, 2 }
 0x206   :  { %v1098_v26 = vadd.f32 %v1096_v53, %v1080_v44  ;;  %v2609_v15 = vadd.f32 %v2604_v52, %v2592_v9  ;;  %v2619_v55 = vsel %vm504_vm8, %v2617_v14, %v2618_v7  ;;  %v2647_v40 = vrot.slane %v2641_v11, 2 }
 0x207   :  { %v2648_v0 = vrot.slane %v5387_v29, 2  ;;  %v2624_v39 = vadd.f32 %v2619_v55, %v2594_v60  ;;  %v2634_v6 = vsel %vm537_vm9, %v2632_v59, %v2633_v22  ;;  %v2656_v19 = vmul.f32 %v4449_v37, %v5172_v20 }
 0x208   :  { %1103 = vrot.lane.b32.xlu1 %v1098_v26, %s3796_s26  ;;  %v5405_v9 = vmul.f32 %v4445_v36, %v5172_v20  ;;  %v2639_v5 = vadd.f32 %v2634_v6, %v2609_v15  ;;  %v2671_v51 = vmul.f32 %v4482_v57, %v5200_v23  ;;  %v5414_v41 = vmul.f32 %v4514_v34, %v5200_v23 }
 0x209   :  { %v2649_v58 = vsel %vm537_vm9, %v2647_v40, %v2648_v0  ;;  %v2662_v4 = vrot.slane %v2656_v19, 3  ;;  %v2686_v28 = vmul.f32 %v4449_v37, %v5219_v43  ;;  %v5422_v13 = vmul.f32 %v4445_v36, %v5219_v43 }
 0x20a   :  { %v2654_v8 = vadd.f32 %v2649_v58, %v2624_v39  ;;  %v2663_v24 = vrot.slane %v5405_v9, 3  ;;  %v2677_v60 = vrot.slane %v2671_v51, 3  ;;  %v2678_v2 = vrot.slane %v5414_v41, 3 }
 0x20b   :  { %v2701_v35 = vmul.f32 %v4482_v57, %v5222_v10  ;;  %v2692_v44 = vrot.slane %v2686_v28, 4  ;;  %v5431_v32 = vmul.f32 %v4514_v34, %v5222_v10  ;;  %v2716_v62 = vmul.f32 %v4449_v37, %v5243_v31 }
 0x20c   :  { %v2664_v12 = vsel %vm570_vm10, %v2662_v4, %v2663_v24  ;;  %v2679_v25 = vsel %vm570_vm10, %v2677_v60, %v2678_v2  ;;  %v2693_v14 = vrot.slane %v5422_v13, 4  ;;  %v5442_v59 = vmul.f32 %v4445_v36, %v5243_v31 }
 0x20d   :  { %v2669_v53 = vadd.f32 %v2664_v12, %v2639_v5  ;;  %v2707_v11 = vrot.slane %v2701_v35, 4  ;;  %v2684_v26 = vadd.f32 %v2679_v25, %v2654_v8  ;;  %v2708_v52 = vrot.slane %v5431_v32, 4 }
 0x20e   :  { %v2722_v15 = vrot.slane %v2716_v62, 5  ;;  %v2694_v55 = vsel %vm603_vm11, %v2692_v44, %v2693_v14  ;;  %v2731_v40 = vmul.f32 %v4482_v57, %v5246_v54  ;;  %v5451_v39 = vmul.f32 %v4514_v34, %v5246_v54 }
 0x20f   :  { %v2746_v6 = vmul.f32 %v4449_v37, %v5269_v38  ;;  %v2699_v19 = vadd.f32 %v2694_v55, %v2669_v53  ;;  %v2709_v5 = vsel %vm603_vm11, %v2707_v11, %v2708_v52  ;;  %v2723_v58 = vrot.slane %v5442_v59, 5 }
 0x210   :  { %v5461_v51 = vmul.f32 %v4445_v36, %v5269_v38  ;;  %v2714_v8 = vadd.f32 %v2709_v5, %v2684_v26  ;;  %v2737_v4 = vrot.slane %v2731_v40, 5  ;;  %v2738_v28 = vrot.slane %v5451_v39, 5 }
 0x211   :  { %v2752_v60 = vrot.slane %v2746_v6, 6  ;;  %v2724_v35 = vsel %vm256_vm1, %v2722_v15, %v2723_v58  ;;  %v2761_v44 = vmul.f32 %v4482_v57, %v5286_v33  ;;  %v5472_v62 = vmul.f32 %v4514_v34, %v5286_v33 }
 0x212   :  { %v2753_v12 = vrot.slane %v5461_v51, 6  ;;  %v2729_v53 = vadd.f32 %v2724_v35, %v2699_v19  ;;  %v2739_v25 = vsel %vm256_vm1, %v2737_v4, %v2738_v28  ;;  %v2593_v11 = vmul.f32 %v4445_v36, %v7338_v3 }
 0x213   :  { %v2595_v26 = vmul.f32 %v4514_v34, %v5137_v46  ;;  %v2744_v15 = vadd.f32 %v2739_v25, %v2714_v8  ;;  %v2767_v40 = vrot.slane %v2761_v44, 6  ;;  %v2768_v6 = vrot.slane %v5472_v62, 6 }
 0x214   :  { %v2754_v55 = vsel %vm245_vm3, %v2752_v60, %v2753_v12  ;;  %v2598_v19 = vmul.f32 %v4486_v18, %v7340_v49  ;;  %v2613_v4 = vmul.f32 %v4510_v17, %v5153_v1  ;;  %v2628_v3 = vmul.f32 %v4486_v18, %v7341_v42 }
 0x215   :  { %v2759_v5 = vadd.f32 %v2754_v55, %v2729_v53  ;;  %v2769_v46 = vsel %vm245_vm3, %v2767_v40, %v2768_v6  ;;  %v2643_v8 = vmul.f32 %v4510_v17, %v5169_v61  ;;  %v2658_v60 = vmul.f32 %v4486_v18, %v5172_v20 }
 0x216   :  { %v2673_v35 = vmul.f32 %v4510_v17, %v5200_v23  ;;  %v2774_v44 = vadd.f32 %v2769_v46, %v2744_v15  ;;  %v2605_v62 = vrot.slane %v2598_v19, 1  ;;  %v2620_v49 = vrot.slane %v2613_v4, 1 }
 0x217   :  { %v2635_v53 = vrot.slane %v2628_v3, 2  ;;  %v2650_v1 = vrot.slane %v2643_v8, 2  ;;  %v2665_v25 = vrot.slane %v2658_v60, 3  ;;  %v2688_v55 = vmul.f32 %v4486_v18, %v5219_v43 }
 0x218   :  { %v2680_v42 = vrot.slane %v2673_v35, 3  ;;  %v2776_v40 = vadd.f32 %v2774_v44, %v2759_v5  ;;  %v2606_v61 = vsel %vm504_vm8, %v2603_v63, %v2605_v62  ;;  %v2621_v20 = vsel %vm504_vm8, %v2618_v7, %v2620_v49 }
 0x219   :  { %v2636_v23 = vsel %vm537_vm9, %v2633_v22, %v2635_v53  ;;  %v2610_v15 = vadd.f32 %v2606_v61, %v2593_v11  ;;  %v2625_v19 = vadd.f32 %v2621_v20, %v2595_v26  ;;  %v2651_v43 = vsel %vm537_vm9, %v2648_v0, %v2650_v1 }
 0x21a   :  { %v2666_v56 = vsel %vm570_vm10, %v2663_v24, %v2665_v25  ;;  %2780 = vrot.lane.b32.xlu0 %v2776_v40, %s3796_s26  ;;  %v2681_v16 = vsel %vm570_vm10, %v2678_v2, %v2680_v42  ;;  %v2695_v63 = vrot.slane %v2688_v55, 4  ;;  %v2703_v27 = vmul.f32 %v4510_v17, %v5222_v10 }
 0x21b   :  { %v2718_v7 = vmul.f32 %v4486_v18, %v5243_v31  ;;  %v2640_v29 = vadd.f32 %v2636_v23, %v2610_v15  ;;  %v2655_v22 = vadd.f32 %v2651_v43, %v2625_v19  ;;  %v2733_v0 = vmul.f32 %v4510_v17, %v5246_v54 }
 0x21c   :  { %v2748_v9 = vmul.f32 %v4486_v18, %v5269_v38  ;;  %v2696_v10 = vsel %vm603_vm11, %v2693_v14, %v2695_v63  ;;  %v2710_v41 = vrot.slane %v2703_v27, 4  ;;  %v2763_v31 = vmul.f32 %v4510_v17, %v5286_v33 }
 0x21d   :  { %v2725_v24 = vrot.slane %v2718_v7, 5  ;;  %v2670_v2 = vadd.f32 %v2666_v56, %v2640_v29  ;;  %v2685_v11 = vadd.f32 %v2681_v16, %v2655_v22  ;;  %v2740_v26 = vrot.slane %v2733_v0, 5 }
 0x21e   :  { %v2755_v5 = vrot.slane %v2748_v9, 6  ;;  %v2711_v54 = vsel %vm603_vm11, %v2708_v52, %v2710_v41  ;;  %v2770_v13 = vrot.slane %v2763_v31, 6  ;;  %v5551_v14 = vstv %s5498_s0  ;;  %s3798_s0 = smov 122  }
 0x21f   :  { %v2726_v38 = vsel %vm256_vm1, %v2723_v58, %v2725_v24  ;;  %v2700_v4 = vadd.f32 %v2696_v10, %v2670_v2  ;;  %v2715_v33 = vadd.f32 %v2711_v54, %v2685_v11  ;;  %v2741_v3 = vsel %vm256_vm1, %v2738_v28, %v2740_v26 }
 0x220   :  { %v2756_v32 = vsel %vm245_vm3, %v2753_v12, %v2755_v5  ;;  %v2771_v52 = vsel %vm245_vm3, %v2768_v6, %v2770_v13  ;;  %v1320_v59 = vmul.f32 %v5551_v14, %v4350_v50  ;;  %v5565_v58 = vstv %s5513_s25  ;;  %s6372_s25 = sld [smem:[#allocation5 + $0x8]] }
 0x221   :  { %v5568_v46 = vstv %s5511_s24  ;;  %v2730_v39 = vadd.f32 %v2726_v38, %v2700_v4  ;;  %v2745_v8 = vadd.f32 %v2741_v3, %v2715_v33  ;;  %v1323_v51 = vmul.f32 %v5565_v58, %v4386_v45  ;;  %s6359_s24 = sld [smem:[#allocation5 + $0x1]] }
 0x222   :  { %v1326_v28 = vmul.f32 %v5568_v46, %v4350_v50  ;;  %v5580_v12 = vmul.f32 %v5568_v46, %v4347_v47  ;;  %v5583_v6 = vstv %s5531_s29  ;;  %v5586_v60 = vstv %s5521_s28  ;;  %s6374_s28 = sld [smem:[#allocation5 + $0x32]]  ;;  %s6382_s29 = sld [smem:[#allocation5 + $0xf]] }
 0x223   :  { %v5589_v35 = vstv %s5533_s2  ;;  %v2760_v44 = vadd.f32 %v2756_v32, %v2730_v39  ;;  %v2775_v62 = vadd.f32 %v2771_v52, %v2745_v8  ;;  %v1342_v53 = vmul.f32 %v5583_v6, %v4386_v45  ;;  %s6384_s2 = sld [smem:[#allocation5 + $0x16]] }
 0x224   :  { %v1332_v49 = vrot.slane %v1326_v28, 1  ;;  %v1333_v1 = vrot.slane %v5580_v12, 1  ;;  %v5600_v25 = vmul.f32 %v5583_v6, %v7324_v30  ;;  %v1358_v42 = vmul.f32 %v5586_v60, %v4350_v50 }
 0x225   :  { %v5606_v55 = vmul.f32 %v5586_v60, %v4347_v47  ;;  %v2777_v40 = vadd.f32 %v2775_v62, %v2760_v44  ;;  %v1348_v61 = vrot.slane %v1342_v53, 1  ;;  %v1374_v20 = vmul.f32 %v5589_v35, %v4386_v45 }
 0x226   :  { %v5612_v23 = vmul.f32 %v5589_v35, %v7324_v30  ;;  %v1334_v15 = vsel %vm504_vm8, %v1332_v49, %v1333_v1  ;;  %v1349_v19 = vrot.slane %v5600_v25, 1  ;;  %v1364_v43 = vrot.slane %v1358_v42, 2 }
 0x227   :  { %v1365_v56 = vrot.slane %v5606_v55, 2  ;;  %2782 = vrot.lane.b32.xlu1 %v2777_v40, %s3796_s26  ;;  %v1339_v16 = vadd.f32 %v1334_v15, %v1320_v59  ;;  %v1380_v63 = vrot.slane %v1374_v20, 2  ;;  %v5622_v7 = vstv %s5559_s30  ;;  %s5937_s26 = sld [smem:[#allocation5 + $0xd]]  ;;  %s6394_s30 = sld [smem:[#allocation5 + $0x39]] }
 0x228   :  { %v1381_v27 = vrot.slane %v5612_v23, 2  ;;  %v1350_v29 = vsel %vm504_vm8, %v1348_v61, %v1349_v19  ;;  %v1390_v0 = vmul.f32 %v5622_v7, %v4350_v50  ;;  %v5638_v9 = vmul.f32 %v5622_v7, %v4347_v47 }
 0x229   :  { %v1366_v22 = vsel %vm537_vm9, %v1364_v43, %v1365_v56  ;;  %v1355_v10 = vadd.f32 %v1350_v29, %v1323_v51  ;;  %v5644_v31 = vstv %s5570_s4  ;;  %v5656_v38 = vstv %s5576_s5  ;;  %s6396_s4 = sld [smem:[#allocation5 + $0x40]]  ;;  %s6422_s5 = sld [smem:[#allocation5 + $0x47]] }
 0x22a   :  { %v1371_v41 = vadd.f32 %v1366_v22, %v1339_v16  ;;  %v1382_v24 = vsel %vm537_vm9, %v1380_v63, %v1381_v27  ;;  %v1396_v2 = vrot.slane %v1390_v0, 3  ;;  %v1397_v11 = vrot.slane %v5638_v9, 3 }
 0x22b   :  { %v1406_v26 = vmul.f32 %v5644_v31, %v4386_v45  ;;  %v5651_v5 = vmul.f32 %v5644_v31, %v7324_v30  ;;  %v1387_v54 = vadd.f32 %v1382_v24, %v1355_v10  ;;  %v5659_v13 = vstv %s5593_s8  ;;  %s6427_s8 = sld [smem:[#allocation5 + $0x4e]] }
 0x22c   :  { %v5662_v4 = vstv %s5591_s7  ;;  %v1398_v33 = vsel %vm570_vm10, %v1396_v2, %v1397_v11  ;;  %v1422_v52 = vmul.f32 %v5656_v38, %v4350_v50  ;;  %v5672_v39 = vmul.f32 %v5656_v38, %v4347_v47  ;;  %s6425_s7 = sld [smem:[#allocation5 + $0x1d]] }
 0x22d   :  { %v1412_v3 = vrot.slane %v1406_v26, 3  ;;  %v7278_v32 = vrot.slane %v5651_v5, 3  ;;  %v1403_v59 = vadd.f32 %v1398_v33, %v1371_v41  ;;  %v1438_v8 = vmul.f32 %v5659_v13, %v4386_v45 }
 0x22e   :  { %v5678_v51 = vmul.f32 %v5659_v13, %v7324_v30  ;;  %v1428_v44 = vrot.slane %v1422_v52, 4  ;;  %v1454_v62 = vmul.f32 %v5662_v4, %v4350_v50  ;;  %v5687_v49 = vmul.f32 %v5662_v4, %v4347_v47 }
 0x22f   :  { %v1414_v28 = vsel %vm570_vm10, %v1412_v3, %v7278_v32  ;;  %v7277_v42 = vrot.slane %v5672_v39, 4  ;;  %v1444_v40 = vrot.slane %v1438_v8, 4  ;;  %v5693_v43 = vstv %s5626_s10  ;;  %s6445_s10 = sld [smem:[#allocation5 + $0x55]] }
 0x230   :  { %v1419_v53 = vadd.f32 %v1414_v28, %v1387_v54  ;;  %v7276_v61 = vrot.slane %v5678_v51, 4  ;;  %v1460_v20 = vrot.slane %v1454_v62, 5  ;;  %v7275_v15 = vrot.slane %v5687_v49, 5 }
 0x231   :  { %v5696_v16 = vstv %s5624_s9  ;;  %v1430_v63 = vsel %vm603_vm11, %v1428_v44, %v7277_v42  ;;  %v1470_v22 = vmul.f32 %v5693_v43, %v4386_v45  ;;  %v5708_v0 = vmul.f32 %v5693_v43, %v7324_v30  ;;  %s6443_s9 = sld [smem:[#allocation5 + $0x24]] }
 0x232   :  { %v1446_v29 = vsel %vm603_vm11, %v1444_v40, %v7276_v61  ;;  %v1435_v10 = vadd.f32 %v1430_v63, %v1403_v59  ;;  %v1462_v24 = vsel %vm256_vm1, %v1460_v20, %v7275_v15  ;;  %v1486_v2 = vmul.f32 %v5696_v16, %v4350_v50 }
 0x233   :  { %v1451_v41 = vadd.f32 %v1446_v29, %v1419_v53  ;;  %v1476_v26 = vrot.slane %v1470_v22, 5  ;;  %v1477_v54 = vrot.slane %v5708_v0, 5  ;;  %v5718_v33 = vmul.f32 %v5696_v16, %v4347_v47 }
 0x234   :  { %v5721_v3 = vstv %s5653_s11  ;;  %v1467_v52 = vadd.f32 %v1462_v24, %v1435_v10  ;;  %v1492_v8 = vrot.slane %v1486_v2, 6  ;;  %v1321_v53 = vmul.f32 %v5551_v14, %v4347_v47  ;;  %s6460_s11 = sld [smem:[#allocation5 + $0x2b]] }
 0x235   :  { %v1502_v59 = vmul.f32 %v5721_v3, %v4386_v45  ;;  %v5727_v28 = vmul.f32 %v5721_v3, %v7324_v30  ;;  %v1478_v44 = vsel %vm256_vm1, %v1476_v26, %v1477_v54  ;;  %v1493_v62 = vrot.slane %v5718_v33, 6 }
 0x236   :  { %v1324_v40 = vmul.f32 %v5565_v58, %v7324_v30  ;;  %v1483_v20 = vadd.f32 %v1478_v44, %v1451_v41  ;;  %v1328_v22 = vmul.f32 %v5568_v46, %v4389_v48  ;;  %v1344_v10 = vmul.f32 %v5583_v6, %v4409_v21 }
 0x237   :  { %v1508_v63 = vrot.slane %v1502_v59, 6  ;;  %v1509_v29 = vrot.slane %v5727_v28, 6  ;;  %v1494_v0 = vsel %vm245_vm3, %v1492_v8, %v1493_v62  ;;  %v1360_v24 = vmul.f32 %v5586_v60, %v4389_v48 }
 0x238   :  { %v1376_v2 = vmul.f32 %v5589_v35, %v4409_v21  ;;  %v1499_v26 = vadd.f32 %v1494_v0, %v1467_v52  ;;  %v1335_v33 = vrot.slane %v1328_v22, 1  ;;  %v1392_v59 = vmul.f32 %v5622_v7, %v4389_v48 }
 0x239   :  { %v1510_v41 = vsel %vm245_vm3, %v1508_v63, %v1509_v29  ;;  %v1351_v44 = vrot.slane %v1344_v10, 1  ;;  %v1367_v15 = vrot.slane %v1360_v24, 2  ;;  %v1408_v32 = vmul.f32 %v5644_v31, %v4409_v21 }
 0x23a   :  { %v1515_v28 = vadd.f32 %v1510_v41, %v1483_v20  ;;  %v1383_v8 = vrot.slane %v1376_v2, 2  ;;  %v1336_v61 = vsel %vm504_vm8, %v1333_v1, %v1335_v33  ;;  %v1399_v42 = vrot.slane %v1392_v59, 3 }
 0x23b   :  { %v1424_v52 = vmul.f32 %v5656_v38, %v4389_v48  ;;  %v1340_v22 = vadd.f32 %v1336_v61, %v1321_v53  ;;  %v1352_v20 = vsel %vm504_vm8, %v1349_v19, %v1351_v44  ;;  %v1368_v0 = vsel %vm537_vm9, %v1365_v56, %v1367_v15 }
 0x23c   :  { %v1517_v63 = vadd.f32 %v1515_v28, %v1499_v26  ;;  %v1356_v12 = vadd.f32 %v1352_v20, %v1324_v40  ;;  %v1384_v1 = vsel %vm537_vm9, %v1381_v27, %v1383_v8  ;;  %v1400_v10 = vsel %vm570_vm10, %v1397_v11, %v1399_v42 }
 0x23d   :  { %v1415_v24 = vrot.slane %v1408_v32, 3  ;;  %v1372_v61 = vadd.f32 %v1368_v0, %v1340_v22  ;;  %v1431_v25 = vrot.slane %v1424_v52, 4  ;;  %v1440_v19 = vmul.f32 %v5659_v13, %v4409_v21 }
 0x23e   :  { %1521 = vrot.lane.b32.xlu0 %v1517_v63, %s3797_s27  ;;  %v1456_v55 = vmul.f32 %v5662_v4, %v4389_v48  ;;  %v1388_v56 = vadd.f32 %v1384_v1, %v1356_v12  ;;  %v7347_v23 = vrot.slane %v5651_v5, 3  ;;  %v1472_v9 = vmul.f32 %v5693_v43, %v4409_v21 }
 0x23f   :  { %v1488_v11 = vmul.f32 %v5696_v16, %v4389_v48  ;;  %v1404_v32 = vadd.f32 %v1400_v10, %v1372_v61  ;;  %v7348_v42 = vrot.slane %v5672_v39, 4  ;;  %v1447_v53 = vrot.slane %v1440_v19, 4 }
 0x240   :  { %v1416_v27 = vsel %vm570_vm10, %v7347_v23, %v1415_v24  ;;  %v1463_v40 = vrot.slane %v1456_v55, 5  ;;  %v1479_v26 = vrot.slane %v1472_v9, 5  ;;  %v1504_v5 = vmul.f32 %v5721_v3, %v4409_v21 }
 0x241   :  { %v1432_v15 = vsel %vm603_vm11, %v7348_v42, %v1431_v25  ;;  %v1420_v2 = vadd.f32 %v1416_v27, %v1388_v56  ;;  %v1495_v41 = vrot.slane %v1488_v11, 6  ;;  %v7349_v59 = vrot.slane %v5678_v51, 4 }
 0x242   :  { %v1436_v33 = vadd.f32 %v1432_v15, %v1404_v32  ;;  %v7350_v44 = vrot.slane %v5687_v49, 5  ;;  %v2984_v39 = vmul.f32 %v4449_v37, %v5551_v14  ;;  %v1480_v63 = vsel %vm256_vm1, %v1477_v54, %v1479_v26 }
 0x243   :  { %v1448_v28 = vsel %vm603_vm11, %v7349_v59, %v1447_v53  ;;  %v1496_v22 = vsel %vm245_vm3, %v1493_v62, %v1495_v41  ;;  %v1511_v20 = vrot.slane %v1504_v5, 6  ;;  %v2986_v12 = vmul.f32 %v4482_v57, %v5565_v58 }
 0x244   :  { %v1464_v8 = vsel %vm256_vm1, %v7350_v44, %v1463_v40  ;;  %v1452_v52 = vadd.f32 %v1448_v28, %v1420_v2  ;;  %v2988_v51 = vmul.f32 %v4449_v37, %v5568_v46  ;;  %v5800_v49 = vmul.f32 %v4445_v36, %v5568_v46 }
 0x245   :  { %v1468_v0 = vadd.f32 %v1464_v8, %v1436_v33  ;;  %v1512_v10 = vsel %vm245_vm3, %v1509_v29, %v1511_v20  ;;  %v3003_v54 = vmul.f32 %v4482_v57, %v5583_v6  ;;  %v5807_v62 = vmul.f32 %v4514_v34, %v5583_v6 }
 0x246   :  { %v1484_v1 = vadd.f32 %v1480_v63, %v1452_v52  ;;  %v2994_v61 = vrot.slane %v2988_v51, 1  ;;  %v2995_v25 = vrot.slane %v5800_v49, 1  ;;  %v3018_v19 = vmul.f32 %v4449_v37, %v5586_v60 }
 0x247   :  { %v1500_v24 = vadd.f32 %v1496_v22, %v1468_v0  ;;  %v3009_v56 = vrot.slane %v3003_v54, 1  ;;  %v3010_v23 = vrot.slane %v5807_v62, 1  ;;  %v5815_v29 = vmul.f32 %v4445_v36, %v5586_v60 }
 0x248   :  { %v1516_v55 = vadd.f32 %v1512_v10, %v1484_v1  ;;  %v2996_v27 = vsel %vm504_vm8, %v2994_v61, %v2995_v25  ;;  %v3024_v9 = vrot.slane %v3018_v19, 2  ;;  %v3033_v11 = vmul.f32 %v4482_v57, %v5589_v35 }
 0x249   :  { %v5824_v32 = vmul.f32 %v4514_v34, %v5589_v35  ;;  %v3001_v15 = vadd.f32 %v2996_v27, %v2984_v39  ;;  %v3011_v53 = vsel %vm504_vm8, %v3009_v56, %v3010_v23  ;;  %v3025_v40 = vrot.slane %v5815_v29, 2 }
 0x24a   :  { %v1518_v42 = vadd.f32 %v1516_v55, %v1500_v24  ;;  %v3016_v2 = vadd.f32 %v3011_v53, %v2986_v12  ;;  %v3039_v26 = vrot.slane %v3033_v11, 2  ;;  %v3048_v5 = vmul.f32 %v4449_v37, %v5622_v7 }
 0x24b   :  { %v3040_v41 = vrot.slane %v5824_v32, 2  ;;  %v3026_v33 = vsel %vm537_vm9, %v3024_v9, %v3025_v40  ;;  %v5839_v59 = vmul.f32 %v4445_v36, %v5622_v7  ;;  %v3063_v28 = vmul.f32 %v4482_v57, %v5644_v31 }
 0x24c   :  { %1523 = vrot.lane.b32.xlu1 %v1518_v42, %s3797_s27  ;;  %v5845_v44 = vmul.f32 %v4514_v34, %v5644_v31  ;;  %v3031_v8 = vadd.f32 %v3026_v33, %v3001_v15  ;;  %v3054_v52 = vrot.slane %v3048_v5, 3  ;;  %v3078_v63 = vmul.f32 %v4449_v37, %v5656_v38 }
 0x24d   :  { %v3041_v39 = vsel %vm537_vm9, %v3039_v26, %v3040_v41  ;;  %v3055_v20 = vrot.slane %v5839_v59, 3  ;;  %v3069_v0 = vrot.slane %v3063_v28, 3  ;;  %v5856_v51 = vmul.f32 %v4445_v36, %v5656_v38 }
 0x24e   :  { %v3046_v22 = vadd.f32 %v3041_v39, %v3016_v2  ;;  %v3070_v12 = vrot.slane %v5845_v44, 3  ;;  %v3084_v1 = vrot.slane %v3078_v63, 4  ;;  %v3093_v10 = vmul.f32 %v4482_v57, %v5659_v13 }
 0x24f   :  { %v5862_v54 = vmul.f32 %v4514_v34, %v5659_v13  ;;  %v3056_v24 = vsel %vm570_vm10, %v3054_v52, %v3055_v20  ;;  %v3108_v19 = vmul.f32 %v4449_v37, %v5662_v4  ;;  %v5874_v55 = vmul.f32 %v4445_v36, %v5662_v4 }
 0x250   :  { %v3071_v61 = vsel %vm570_vm10, %v3069_v0, %v3070_v12  ;;  %v3061_v56 = vadd.f32 %v3056_v24, %v3031_v8  ;;  %v3085_v9 = vrot.slane %v5856_v51, 4  ;;  %v3099_v11 = vrot.slane %v3093_v10, 4 }
 0x251   :  { %v3076_v27 = vadd.f32 %v3071_v61, %v3046_v22  ;;  %v3100_v42 = vrot.slane %v5862_v54, 4  ;;  %v3114_v15 = vrot.slane %v3108_v19, 5  ;;  %v3115_v53 = vrot.slane %v5874_v55, 5 }
 0x252   :  { %v3123_v2 = vmul.f32 %v4482_v57, %v5693_v43  ;;  %v3086_v26 = vsel %vm603_vm11, %v3084_v1, %v3085_v9  ;;  %v5884_v5 = vmul.f32 %v4514_v34, %v5693_v43  ;;  %v3138_v33 = vmul.f32 %v4449_v37, %v5696_v16 }
 0x253   :  { %v5890_v28 = vmul.f32 %v4445_v36, %v5696_v16  ;;  %v3091_v8 = vadd.f32 %v3086_v26, %v3061_v56  ;;  %v3101_v39 = vsel %vm603_vm11, %v3099_v11, %v3100_v42  ;;  %v3116_v52 = vsel %vm256_vm1, %v3114_v15, %v3115_v53 }
 0x254   :  { %v3129_v63 = vrot.slane %v3123_v2, 5  ;;  %v3106_v22 = vadd.f32 %v3101_v39, %v3076_v27  ;;  %v3130_v0 = vrot.slane %v5884_v5, 5  ;;  %v3144_v51 = vrot.slane %v3138_v33, 6 }
 0x255   :  { %v3145_v1 = vrot.slane %v5890_v28, 6  ;;  %v3121_v10 = vadd.f32 %v3116_v52, %v3091_v8  ;;  %v3153_v24 = vmul.f32 %v4482_v57, %v5721_v3  ;;  %v5904_v61 = vmul.f32 %v4514_v34, %v5721_v3 }
 0x256   :  { %v2985_v19 = vmul.f32 %v4445_v36, %v5551_v14  ;;  %v3131_v56 = vsel %vm256_vm1, %v3129_v63, %v3130_v0  ;;  %v2987_v11 = vmul.f32 %v4514_v34, %v5565_v58  ;;  %v2990_v15 = vmul.f32 %v4486_v18, %v5568_v46 }
 0x257   :  { %v3146_v27 = vsel %vm245_vm3, %v3144_v51, %v3145_v1  ;;  %v3136_v2 = vadd.f32 %v3131_v56, %v3106_v22  ;;  %v3159_v33 = vrot.slane %v3153_v24, 6  ;;  %v3160_v8 = vrot.slane %v5904_v61, 6 }
 0x258   :  { %v3151_v26 = vadd.f32 %v3146_v27, %v3121_v10  ;;  %v2997_v14 = vrot.slane %v2990_v15, 1  ;;  %v3005_v39 = vmul.f32 %v4510_v17, %v5583_v6  ;;  %v3020_v52 = vmul.f32 %v4486_v18, %v5586_v60 }
 0x259   :  { %v3035_v63 = vmul.f32 %v4510_v17, %v5589_v35  ;;  %v3161_v58 = vsel %vm245_vm3, %v3159_v33, %v3160_v8  ;;  %v3050_v46 = vmul.f32 %v4486_v18, %v5622_v7  ;;  %v3065_v22 = vmul.f32 %v4510_v17, %v5644_v31 }
 0x25a   :  { %v3080_v51 = vmul.f32 %v4486_v18, %v5656_v38  ;;  %v3166_v6 = vadd.f32 %v3161_v58, %v3136_v2  ;;  %v2998_v60 = vsel %vm504_vm8, %v2995_v25, %v2997_v14  ;;  %v3012_v10 = vrot.slane %v3005_v39, 1 }
 0x25b   :  { %v3027_v35 = vrot.slane %v3020_v52, 2  ;;  %v3002_v24 = vadd.f32 %v2998_v60, %v2985_v19  ;;  %v3042_v61 = vrot.slane %v3035_v63, 2  ;;  %v3057_v56 = vrot.slane %v3050_v46, 3 }
 0x25c   :  { %v3072_v27 = vrot.slane %v3065_v22, 3  ;;  %v3168_v7 = vadd.f32 %v3166_v6, %v3151_v26  ;;  %v3013_v31 = vsel %vm504_vm8, %v3010_v23, %v3012_v10  ;;  %v3087_v49 = vrot.slane %v3080_v51, 4 }
 0x25d   :  { %v3028_v38 = vsel %vm537_vm9, %v3025_v40, %v3027_v35  ;;  %v3017_v25 = vadd.f32 %v3013_v31, %v2987_v11  ;;  %v3043_v15 = vsel %vm537_vm9, %v3040_v41, %v3042_v61  ;;  %v3058_v62 = vsel %vm570_vm10, %v3055_v20, %v3057_v56 }
 0x25e   :  { %v3032_v19 = vadd.f32 %v3028_v38, %v3002_v24  ;;  %3172 = vrot.lane.b32.xlu0 %v3168_v7, %s3797_s27  ;;  %v3073_v23 = vsel %vm570_vm10, %v3070_v12, %v3072_v27  ;;  %v3088_v29 = vsel %vm603_vm11, %v3085_v9, %v3087_v49  ;;  %v3095_v40 = vmul.f32 %v4510_v17, %v5659_v13 }
 0x25f   :  { %v3110_v32 = vmul.f32 %v4486_v18, %v5662_v4  ;;  %v3047_v41 = vadd.f32 %v3043_v15, %v3017_v25  ;;  %v3125_v20 = vmul.f32 %v4510_v17, %v5693_v43  ;;  %v3140_v44 = vmul.f32 %v4486_v18, %v5696_v16 }
 0x260   :  { %v3062_v59 = vadd.f32 %v3058_v62, %v3032_v19  ;;  %v3102_v11 = vrot.slane %v3095_v40, 4  ;;  %v3155_v9 = vmul.f32 %v4510_v17, %v5721_v3  ;;  %v5975_v13 = vstv %s5925_s12  ;;  %s6485_s12 = sld [smem:[#allocation5 + $0x5c]] }
 0x261   :  { %v3117_v12 = vrot.slane %v3110_v32, 5  ;;  %v3077_v4 = vadd.f32 %v3073_v23, %v3047_v41  ;;  %v3132_v26 = vrot.slane %v3125_v20, 5  ;;  %v3147_v33 = vrot.slane %v3140_v44, 6 }
 0x262   :  { %v3092_v2 = vadd.f32 %v3088_v29, %v3062_v59  ;;  %v3103_v43 = vsel %vm603_vm11, %v3100_v42, %v3102_v11  ;;  %v3162_v3 = vrot.slane %v3155_v9, 6  ;;  %v1740_v14 = vmul.f32 %v5975_v13, %v4350_v50 }
 0x263   :  { %v3118_v16 = vsel %vm256_vm1, %v3115_v53, %v3117_v12  ;;  %v3107_v39 = vadd.f32 %v3103_v43, %v3077_v4  ;;  %v3133_v63 = vsel %vm256_vm1, %v3130_v0, %v3132_v26  ;;  %v3148_v54 = vsel %vm245_vm3, %v3145_v1, %v3147_v33 }
 0x264   :  { %v3122_v52 = vadd.f32 %v3118_v16, %v3092_v2  ;;  %v3163_v55 = vsel %vm245_vm3, %v3160_v8, %v3162_v3  ;;  %v5997_v42 = vstv %s5945_s13  ;;  %v6000_v53 = vstv %s5937_s26  ;;  %s3611_s26 = sld [smem:[#allocation5 + $0x7]]  ;;  %s3660_s13 = sld [smem:[#allocation5 + $0x38]] }
 0x265   :  { %v6003_v58 = vstv %s5947_s14  ;;  %v3137_v46 = vadd.f32 %v3133_v63, %v3107_v39  ;;  %v1743_v5 = vmul.f32 %v5997_v42, %v4386_v45  ;;  %v1746_v28 = vmul.f32 %v6000_v53, %v4350_v50  ;;  %s3618_s14 = sld [smem:[#allocation5 + $0xe]] }
 0x266   :  { %v3152_v22 = vadd.f32 %v3148_v54, %v3122_v52  ;;  %v6013_v0 = vmul.f32 %v6000_v53, %v4347_v47  ;;  %v1762_v1 = vmul.f32 %v6003_v58, %v4386_v45  ;;  %v6019_v8 = vmul.f32 %v6003_v58, %v7324_v30 }
 0x267   :  { %v6022_v51 = vstv %s5964_s15  ;;  %v3167_v6 = vadd.f32 %v3163_v55, %v3137_v46  ;;  %v1752_v60 = vrot.slane %v1746_v28, 1  ;;  %v6037_v27 = vstv %s5972_s16  ;;  %s133_s15 = sld [smem:[#allocation5]]  ;;  %s3667_s16 = sld [smem:[#allocation5 + $0x3f]] }
 0x268   :  { %v1778_v10 = vmul.f32 %v6022_v51, %v4350_v50  ;;  %v6030_v35 = vmul.f32 %v6022_v51, %v4347_v47  ;;  %v1753_v24 = vrot.slane %v6013_v0, 1  ;;  %v1768_v61 = vrot.slane %v1762_v1, 1 }
 0x269   :  { %v1769_v56 = vrot.slane %v6019_v8, 1  ;;  %v3169_v7 = vadd.f32 %v3167_v6, %v3152_v22  ;;  %v1794_v49 = vmul.f32 %v6037_v27, %v4386_v45  ;;  %v6050_v15 = vmul.f32 %v6037_v27, %v7324_v30 }
 0x26a   :  { %v1784_v31 = vrot.slane %v1778_v10, 2  ;;  %v1785_v38 = vrot.slane %v6030_v35, 2  ;;  %v1754_v25 = vsel %vm504_vm8, %v1752_v60, %v1753_v24  ;;  %v6053_v62 = vstv %s5983_s17  ;;  %s3625_s17 = sld [smem:[#allocation5 + $0x15]] }
 0x26b   :  { %v1770_v19 = vsel %vm504_vm8, %v1768_v61, %v1769_v56  ;;  %3174 = vrot.lane.b32.xlu1 %v3169_v7, %s3797_s27  ;;  %v1759_v23 = vadd.f32 %v1754_v25, %v1740_v14  ;;  %v1800_v32 = vrot.slane %v1794_v49, 2  ;;  %v1801_v41 = vrot.slane %v6050_v15, 2  ;;  %s6082_s27 = sld [smem:[#allocation5 + $0x61]] }
 0x26c   :  { %v1775_v29 = vadd.f32 %v1770_v19, %v1743_v5  ;;  %v1786_v40 = vsel %vm537_vm9, %v1784_v31, %v1785_v38  ;;  %v1810_v59 = vmul.f32 %v6053_v62, %v4350_v50  ;;  %v6068_v20 = vmul.f32 %v6053_v62, %v4347_v47 }
 0x26d   :  { %v6071_v44 = vstv %s5994_s18  ;;  %v1791_v11 = vadd.f32 %v1786_v40, %v1759_v23  ;;  %v6080_v4 = vstv %s6005_s19  ;;  %v1802_v2 = vsel %vm537_vm9, %v1800_v32, %v1801_v41  ;;  %s3653_s18 = sld [smem:[#allocation5 + $0x31]]  ;;  %s3632_s19 = sld [smem:[#allocation5 + $0x1c]] }
 0x26e   :  { %v1826_v12 = vmul.f32 %v6071_v44, %v4386_v45  ;;  %v6077_v9 = vmul.f32 %v6071_v44, %v7324_v30  ;;  %v1816_v26 = vrot.slane %v1810_v59, 3  ;;  %v7283_v33 = vrot.slane %v6068_v20, 3 }
 0x26f   :  { %v1842_v43 = vmul.f32 %v6080_v4, %v4350_v50  ;;  %v1807_v16 = vadd.f32 %v1802_v2, %v1775_v29  ;;  %v6093_v39 = vmul.f32 %v6080_v4, %v4347_v47  ;;  %v6099_v54 = vstv %s6032_s21  ;;  %s6843_s21 = sld [smem:[#allocation5 + $0x23]] }
 0x270   :  { %v1832_v3 = vrot.slane %v1826_v12, 3  ;;  %v7282_v14 = vrot.slane %v6077_v9, 3  ;;  %v1818_v52 = vsel %vm570_vm10, %v1816_v26, %v7283_v33  ;;  %v6102_v55 = vstv %s6024_s20  ;;  %s6829_s20 = sld [smem:[#allocation5 + $0x4d]] }
 0x271   :  { %v1848_v63 = vrot.slane %v1842_v43, 4  ;;  %v1823_v46 = vadd.f32 %v1818_v52, %v1791_v11  ;;  %v7281_v5 = vrot.slane %v6093_v39, 4  ;;  %v1858_v28 = vmul.f32 %v6099_v54, %v4386_v45 }
 0x272   :  { %v1834_v22 = vsel %vm570_vm10, %v1832_v3, %v7282_v14  ;;  %v6112_v6 = vmul.f32 %v6099_v54, %v7324_v30  ;;  %v1874_v60 = vmul.f32 %v6102_v55, %v4350_v50  ;;  %v6118_v10 = vmul.f32 %v6102_v55, %v4347_v47 }
 0x273   :  { %v1839_v1 = vadd.f32 %v1834_v22, %v1807_v16  ;;  %v1850_v61 = vsel %vm603_vm11, %v1848_v63, %v7281_v5  ;;  %v1864_v7 = vrot.slane %v1858_v28, 4  ;;  %v6124_v31 = vstv %s6058_s23  ;;  %s6887_s23 = sld [smem:[#allocation5 + $0x2a]] }
 0x274   :  { %v6127_v49 = vstv %s6056_s22  ;;  %v1855_v25 = vadd.f32 %v1850_v61, %v1823_v46  ;;  %v7280_v19 = vrot.slane %v6112_v6, 4  ;;  %v1880_v23 = vrot.slane %v1874_v60, 5  ;;  %s6877_s22 = sld [smem:[#allocation5 + $0x54]] }
 0x275   :  { %v7279_v29 = vrot.slane %v6118_v10, 5  ;;  %v1890_v40 = vmul.f32 %v6124_v31, %v4386_v45  ;;  %v6135_v32 = vmul.f32 %v6124_v31, %v7324_v30  ;;  %v1906_v59 = vmul.f32 %v6127_v49, %v4350_v50 }
 0x276   :  { %v6141_v11 = vmul.f32 %v6127_v49, %v4347_v47  ;;  %v1866_v12 = vsel %vm603_vm11, %v1864_v7, %v7280_v19  ;;  %v6150_v26 = vstv %s6082_s27  ;;  %v1741_v43 = vmul.f32 %v5975_v13, %v4347_v47  ;;  %s6915_s27 = sld [smem:[#allocation5 + $0x5b]] }
 0x277   :  { %v1882_v2 = vsel %vm256_vm1, %v1880_v23, %v7279_v29  ;;  %v1871_v16 = vadd.f32 %v1866_v12, %v1839_v1  ;;  %v1896_v52 = vrot.slane %v1890_v40, 5  ;;  %v1897_v63 = vrot.slane %v6135_v32, 5 }
 0x278   :  { %v1887_v3 = vadd.f32 %v1882_v2, %v1855_v25  ;;  %v1912_v46 = vrot.slane %v1906_v59, 6  ;;  %v1913_v22 = vrot.slane %v6141_v11, 6  ;;  %v1922_v28 = vmul.f32 %v6150_v26, %v4386_v45 }
 0x279   :  { %v1923_v60 = vmul.f32 %v6150_v26, %v7324_v30  ;;  %v1898_v61 = vsel %vm256_vm1, %v1896_v52, %v1897_v63  ;;  %v1744_v7 = vmul.f32 %v5997_v42, %v7324_v30  ;;  %v1748_v1 = vmul.f32 %v6000_v53, %v4389_v48 }
 0x27a   :  { %v1764_v25 = vmul.f32 %v6003_v58, %v4409_v21  ;;  %v1903_v23 = vadd.f32 %v1898_v61, %v1871_v16  ;;  %v1914_v40 = vsel %vm245_vm3, %v1912_v46, %v1913_v22  ;;  %v1928_v32 = vrot.slane %v1922_v28, 6 }
 0x27b   :  { %v1929_v59 = vrot.slane %v1923_v60, 6  ;;  %v1919_v11 = vadd.f32 %v1914_v40, %v1887_v3  ;;  %v1755_v12 = vrot.slane %v1748_v1, 1  ;;  %v1780_v52 = vmul.f32 %v6022_v51, %v4389_v48 }
 0x27c   :  { %v1771_v2 = vrot.slane %v1764_v25, 1  ;;  %v1796_v19 = vmul.f32 %v6037_v27, %v4409_v21  ;;  %v1812_v5 = vmul.f32 %v6053_v62, %v4389_v48  ;;  %v1828_v16 = vmul.f32 %v6071_v44, %v4409_v21 }
 0x27d   :  { %v1930_v29 = vsel %vm245_vm3, %v1928_v32, %v1929_v59  ;;  %v1756_v3 = vsel %vm504_vm8, %v1753_v24, %v1755_v12  ;;  %v1787_v60 = vrot.slane %v1780_v52, 2  ;;  %v1844_v0 = vmul.f32 %v6080_v4, %v4389_v48 }
 0x27e   :  { %v1935_v46 = vadd.f32 %v1930_v29, %v1903_v23  ;;  %v1772_v28 = vsel %vm504_vm8, %v1769_v56, %v1771_v2  ;;  %v1760_v61 = vadd.f32 %v1756_v3, %v1741_v43  ;;  %v1803_v25 = vrot.slane %v1796_v19, 2 }
 0x27f   :  { %v1776_v1 = vadd.f32 %v1772_v28, %v1744_v7  ;;  %v1819_v40 = vrot.slane %v1812_v5, 3  ;;  %v1788_v14 = vsel %vm537_vm9, %v1785_v38, %v1787_v60  ;;  %v1835_v33 = vrot.slane %v1828_v16, 3 }
 0x280   :  { %v1937_v32 = vadd.f32 %v1935_v46, %v1919_v11  ;;  %v1792_v29 = vadd.f32 %v1788_v14, %v1760_v61  ;;  %v1804_v8 = vsel %vm537_vm9, %v1801_v41, %v1803_v25  ;;  %v7351_v24 = vrot.slane %v6068_v20, 3 }
 0x281   :  { %v1860_v5 = vmul.f32 %v6099_v54, %v4409_v21  ;;  %v1808_v35 = vadd.f32 %v1804_v8, %v1776_v1  ;;  %v7352_v38 = vrot.slane %v6077_v9, 3  ;;  %v1851_v14 = vrot.slane %v1844_v0, 4 }
 0x282   :  { %v1820_v56 = vsel %vm570_vm10, %v7351_v24, %v1819_v40  ;;  %1941 = vrot.lane.b32.xlu0 %v1937_v32, %s3798_s0  ;;  %v1876_v15 = vmul.f32 %v6102_v55, %v4389_v48  ;;  %v1892_v20 = vmul.f32 %v6124_v31, %v4409_v21  ;;  %v1908_v7 = vmul.f32 %v6127_v49, %v4389_v48 }
 0x283   :  { %v1836_v19 = vsel %vm570_vm10, %v7352_v38, %v1835_v33  ;;  %v1824_v41 = vadd.f32 %v1820_v56, %v1792_v29  ;;  %v1867_v43 = vrot.slane %v1860_v5, 4  ;;  %v7353_v11 = vrot.slane %v6093_v39, 4 }
 0x284   :  { %v1840_v23 = vadd.f32 %v1836_v19, %v1808_v35  ;;  %v1883_v9 = vrot.slane %v1876_v15, 5  ;;  %v1924_v33 = vmul.f32 %v6150_v26, %v4409_v21  ;;  %v7354_v52 = vrot.slane %v6112_v6, 4 }
 0x285   :  { %v1852_v12 = vsel %vm603_vm11, %v7353_v11, %v1851_v14  ;;  %v1899_v46 = vrot.slane %v1892_v20, 5  ;;  %v1915_v3 = vrot.slane %v1908_v7, 6  ;;  %v7355_v60 = vrot.slane %v6118_v10, 5 }
 0x286   :  { %v1856_v2 = vadd.f32 %v1852_v12, %v1824_v41  ;;  %v1868_v16 = vsel %vm603_vm11, %v7354_v52, %v1867_v43  ;;  %v1931_v1 = vrot.slane %v1924_v33, 6  ;;  %v3376_v39 = vmul.f32 %v4449_v37, %v5975_v13 }
 0x287   :  { %v1872_v28 = vadd.f32 %v1868_v16, %v1840_v23  ;;  %v1884_v61 = vsel %vm256_vm1, %v7355_v60, %v1883_v9  ;;  %v1900_v40 = vsel %vm256_vm1, %v1897_v63, %v1899_v46  ;;  %v1916_v32 = vsel %vm245_vm3, %v1913_v22, %v1915_v3 }
 0x288   :  { %v1888_v25 = vadd.f32 %v1884_v61, %v1856_v2  ;;  %v3378_v6 = vmul.f32 %v4482_v57, %v5997_v42  ;;  %v1932_v29 = vsel %vm245_vm3, %v1929_v59, %v1931_v1  ;;  %v3380_v10 = vmul.f32 %v4449_v37, %v6000_v53 }
 0x289   :  { %v1904_v0 = vadd.f32 %v1900_v40, %v1872_v28  ;;  %v6228_v8 = vmul.f32 %v4445_v36, %v6000_v53  ;;  %v3395_v56 = vmul.f32 %v4482_v57, %v6003_v58  ;;  %v6234_v63 = vmul.f32 %v4514_v34, %v6003_v58 }
 0x28a   :  { %v1920_v24 = vadd.f32 %v1916_v32, %v1888_v25  ;;  %v3410_v22 = vmul.f32 %v4449_v37, %v6022_v51  ;;  %v3386_v59 = vrot.slane %v3380_v10, 1  ;;  %v6241_v38 = vmul.f32 %v4445_v36, %v6022_v51 }
 0x28b   :  { %v1936_v5 = vadd.f32 %v1932_v29, %v1904_v0  ;;  %v3387_v35 = vrot.slane %v6228_v8, 1  ;;  %v3401_v19 = vrot.slane %v3395_v56, 1  ;;  %v3402_v14 = vrot.slane %v6234_v63, 1 }
 0x28c   :  { %v3416_v15 = vrot.slane %v3410_v22, 2  ;;  %v3425_v41 = vmul.f32 %v4482_v57, %v6037_v27  ;;  %v3417_v7 = vrot.slane %v6241_v38, 2  ;;  %v6252_v23 = vmul.f32 %v4514_v34, %v6037_v27 }
 0x28d   :  { %v1938_v43 = vadd.f32 %v1936_v5, %v1920_v24  ;;  %v3388_v20 = vsel %vm504_vm8, %v3386_v59, %v3387_v35  ;;  %v3403_v12 = vsel %vm504_vm8, %v3401_v19, %v3402_v14  ;;  %v3440_v33 = vmul.f32 %v4449_v37, %v6053_v62 }
 0x28e   :  { %v3393_v11 = vadd.f32 %v3388_v20, %v3376_v39  ;;  %v3431_v9 = vrot.slane %v3425_v41, 2  ;;  %v3408_v2 = vadd.f32 %v3403_v12, %v3378_v6  ;;  %v3418_v52 = vsel %vm537_vm9, %v3416_v15, %v3417_v7 }
 0x28f   :  { %1943 = vrot.lane.b32.xlu1 %v1938_v43, %s3798_s0  ;;  %v3432_v16 = vrot.slane %v6252_v23, 2  ;;  %v6266_v46 = vmul.f32 %v4445_v36, %v6053_v62  ;;  %v3446_v28 = vrot.slane %v3440_v33, 3  ;;  %v3455_v60 = vmul.f32 %v4482_v57, %v6071_v44 }
 0x290   :  { %v3423_v3 = vadd.f32 %v3418_v52, %v3393_v11  ;;  %v6272_v61 = vmul.f32 %v4514_v34, %v6071_v44  ;;  %v3470_v25 = vmul.f32 %v4449_v37, %v6080_v4  ;;  %v6282_v40 = vmul.f32 %v4445_v36, %v6080_v4 }
 0x291   :  { %v3433_v1 = vsel %vm537_vm9, %v3431_v9, %v3432_v16  ;;  %v3447_v39 = vrot.slane %v6266_v46, 3  ;;  %v3461_v6 = vrot.slane %v3455_v60, 3  ;;  %v3485_v29 = vmul.f32 %v4482_v57, %v6099_v54 }
 0x292   :  { %v3438_v32 = vadd.f32 %v3433_v1, %v3408_v2  ;;  %v3462_v0 = vrot.slane %v6272_v61, 3  ;;  %v3476_v24 = vrot.slane %v3470_v25, 4  ;;  %v3477_v56 = vrot.slane %v6282_v40, 4 }
 0x293   :  { %v3448_v10 = vsel %vm570_vm10, %v3446_v28, %v3447_v39  ;;  %v6293_v22 = vmul.f32 %v4514_v34, %v6099_v54  ;;  %v3491_v19 = vrot.slane %v3485_v29, 4  ;;  %v3500_v15 = vmul.f32 %v4449_v37, %v6102_v55 }
 0x294   :  { %v3453_v5 = vadd.f32 %v3448_v10, %v3423_v3  ;;  %v3463_v59 = vsel %vm570_vm10, %v3461_v6, %v3462_v0  ;;  %v3478_v43 = vsel %vm603_vm11, %v3476_v24, %v3477_v56  ;;  %v6306_v11 = vmul.f32 %v4445_v36, %v6102_v55 }
 0x295   :  { %v3468_v41 = vadd.f32 %v3463_v59, %v3438_v32  ;;  %v3492_v20 = vrot.slane %v6293_v22, 4  ;;  %v3506_v9 = vrot.slane %v3500_v15, 5  ;;  %v3515_v33 = vmul.f32 %v4482_v57, %v6124_v31 }
 0x296   :  { %v3483_v12 = vadd.f32 %v3478_v43, %v3453_v5  ;;  %v6312_v2 = vmul.f32 %v4514_v34, %v6124_v31  ;;  %v3507_v3 = vrot.slane %v6306_v11, 5  ;;  %v3530_v28 = vmul.f32 %v4449_v37, %v6127_v49 }
 0x297   :  { %v3493_v52 = vsel %vm603_vm11, %v3491_v19, %v3492_v20  ;;  %v6322_v60 = vmul.f32 %v4445_v36, %v6127_v49  ;;  %v3521_v25 = vrot.slane %v3515_v33, 5  ;;  %v3545_v6 = vmul.f32 %v4482_v57, %v6150_v26 }
 0x298   :  { %v3498_v1 = vadd.f32 %v3493_v52, %v3468_v41  ;;  %v3522_v32 = vrot.slane %v6312_v2, 5  ;;  %v3508_v29 = vsel %vm256_vm1, %v3506_v9, %v3507_v3  ;;  %v3536_v10 = vrot.slane %v3530_v28, 6 }
 0x299   :  { %v3537_v24 = vrot.slane %v6322_v60, 6  ;;  %v6333_v5 = vmul.f32 %v4514_v34, %v6150_v26  ;;  %v3513_v59 = vadd.f32 %v3508_v29, %v3483_v12  ;;  %v3551_v15 = vrot.slane %v3545_v6, 6 }
 0x29a   :  { %v3523_v19 = vsel %vm256_vm1, %v3521_v25, %v3522_v32  ;;  %v3377_v41 = vmul.f32 %v4445_v36, %v5975_v13  ;;  %v3379_v52 = vmul.f32 %v4514_v34, %v5997_v42  ;;  %v3382_v12 = vmul.f32 %v4486_v18, %v6000_v53 }
 0x29b   :  { %v3528_v43 = vadd.f32 %v3523_v19, %v3498_v1  ;;  %v3538_v9 = vsel %vm245_vm3, %v3536_v10, %v3537_v24  ;;  %v3552_v33 = vrot.slane %v6333_v5, 6  ;;  %v3397_v25 = vmul.f32 %v4510_v17, %v6003_v58 }
 0x29c   :  { %v3543_v28 = vadd.f32 %v3538_v9, %v3513_v59  ;;  %v3412_v13 = vmul.f32 %v4486_v18, %v6022_v51  ;;  %v3427_v6 = vmul.f32 %v4510_v17, %v6037_v27  ;;  %v3442_v29 = vmul.f32 %v4486_v18, %v6053_v62 }
 0x29d   :  { %v3553_v1 = vsel %vm245_vm3, %v3551_v15, %v3552_v33  ;;  %v3457_v42 = vmul.f32 %v4510_v17, %v6071_v44  ;;  %v3389_v5 = vrot.slane %v3382_v12, 1  ;;  %v3404_v53 = vrot.slane %v3397_v25, 1 }
 0x29e   :  { %v3558_v10 = vadd.f32 %v3553_v1, %v3528_v43  ;;  %v3419_v59 = vrot.slane %v3412_v13, 2  ;;  %v3434_v58 = vrot.slane %v3427_v6, 2  ;;  %v3449_v19 = vrot.slane %v3442_v29, 3 }
 0x29f   :  { %v3464_v51 = vrot.slane %v3457_v42, 3  ;;  %v3472_v15 = vmul.f32 %v4486_v18, %v6080_v4  ;;  %v3390_v27 = vsel %vm504_vm8, %v3387_v35, %v3389_v5  ;;  %v3405_v62 = vsel %vm504_vm8, %v3402_v14, %v3404_v53 }
 0x2a0   :  { %v3560_v9 = vadd.f32 %v3558_v10, %v3543_v28  ;;  %v3420_v44 = vsel %vm537_vm9, %v3417_v7, %v3419_v59  ;;  %v3394_v43 = vadd.f32 %v3390_v27, %v3377_v41  ;;  %v3409_v12 = vadd.f32 %v3405_v62, %v3379_v52 }
 0x2a1   :  { %v3435_v4 = vsel %vm537_vm9, %v3432_v16, %v3434_v58  ;;  %v3450_v8 = vsel %vm570_vm10, %v3447_v39, %v3449_v19  ;;  %v3465_v63 = vsel %vm570_vm10, %v3462_v0, %v3464_v51  ;;  %v3479_v35 = vrot.slane %v3472_v15, 4 }
 0x2a2   :  { %3564 = vrot.lane.b32.xlu0 %v3560_v9, %s3798_s0  ;;  %v3487_v38 = vmul.f32 %v4510_v17, %v6099_v54  ;;  %v3502_v14 = vmul.f32 %v4486_v18, %v6102_v55  ;;  %v3424_v7 = vadd.f32 %v3420_v44, %v3394_v43  ;;  %v3439_v23 = vadd.f32 %v3435_v4, %v3409_v12 }
 0x2a3   :  { %v3517_v16 = vmul.f32 %v4510_v17, %v6124_v31  ;;  %v3532_v46 = vmul.f32 %v4486_v18, %v6127_v49  ;;  %v3480_v54 = vsel %vm603_vm11, %v3477_v56, %v3479_v35  ;;  %v3547_v55 = vmul.f32 %v4510_v17, %v6150_v26 }
 0x2a4   :  { %v3494_v61 = vrot.slane %v3487_v38, 4  ;;  %v3509_v39 = vrot.slane %v3502_v14, 5  ;;  %v3454_v0 = vadd.f32 %v3450_v8, %v3424_v7  ;;  %v3469_v41 = vadd.f32 %v3465_v63, %v3439_v23 }
 0x2a5   :  { %v3524_v52 = vrot.slane %v3517_v16, 5  ;;  %v3539_v28 = vrot.slane %v3532_v46, 6  ;;  %v3554_v40 = vrot.slane %v3547_v55, 6  ;;  %v6414_v56 = vstv %s6359_s24 }
 0x2a6   :  { %v3495_v31 = vsel %vm603_vm11, %v3492_v20, %v3494_v61  ;;  %v3510_v49 = vsel %vm256_vm1, %v3507_v3, %v3509_v39  ;;  %v3484_v25 = vadd.f32 %v3480_v54, %v3454_v0  ;;  %v699_v11 = vmul.f32 %v6414_v56, %v4347_v47 }
 0x2a7   :  { %v3499_v13 = vadd.f32 %v3495_v31, %v3469_v41  ;;  %v3525_v26 = vsel %vm256_vm1, %v3522_v32, %v3524_v52  ;;  %v3540_v22 = vsel %vm245_vm3, %v3537_v24, %v3539_v28  ;;  %v3555_v20 = vsel %vm245_vm3, %v3552_v33, %v3554_v40 }
 0x2a8   :  { %v6432_v2 = vstv %s6374_s28  ;;  %v6435_v3 = vstv %s6372_s25  ;;  %v3514_v60 = vadd.f32 %v3510_v49, %v3484_v25  ;;  %v6448_v1 = vstv %s6394_s30 }
 0x2a9   :  { %v3529_v32 = vadd.f32 %v3525_v26, %v3499_v13  ;;  %v6439_v24 = vmul.f32 %v6435_v3, %v4347_v47  ;;  %v706_v33 = vmul.f32 %v6435_v3, %v4389_v48  ;;  %v6451_v6 = vstv %s6382_s29 }
 0x2aa   :  { %v6454_v29 = vstv %s6396_s4  ;;  %v6457_v42 = vstv %s6384_s2  ;;  %v3544_v10 = vadd.f32 %v3540_v22, %v3514_v60  ;;  %v6464_v58 = vmul.f32 %v6448_v1, %v4409_v21 }
 0x2ab   :  { %v3559_v5 = vadd.f32 %v3555_v20, %v3529_v32  ;;  %v711_v53 = vrot.slane %v6439_v24, 1  ;;  %v713_v59 = vrot.slane %v706_v33, 1  ;;  %v6468_v19 = vmul.f32 %v6451_v6, %v4347_v47 }
 0x2ac   :  { %v738_v51 = vmul.f32 %v6451_v6, %v4389_v48  ;;  %v6474_v15 = vmul.f32 %v6454_v29, %v4409_v21  ;;  %v6481_v62 = vmul.f32 %v6457_v42, %v4347_v47  ;;  %v770_v44 = vmul.f32 %v6457_v42, %v4389_v48 }
 0x2ad   :  { %v3561_v9 = vadd.f32 %v3559_v5, %v3544_v10  ;;  %v714_v27 = vsel %vm504_vm8, %v711_v53, %v713_v59  ;;  %v729_v12 = vrot.slane %v6464_v58, 1  ;;  %v743_v4 = vrot.slane %v6468_v19, 2 }
 0x2ae   :  { %v718_v43 = vadd.f32 %v714_v27, %v699_v11  ;;  %v745_v8 = vrot.slane %v738_v51, 2  ;;  %v761_v63 = vrot.slane %v6474_v15, 2  ;;  %v7287_v35 = vrot.slane %v6481_v62, 3 }
 0x2af   :  { %3566 = vrot.lane.b32.xlu1 %v3561_v9, %s3798_s0  ;;  %v777_v38 = vrot.slane %v770_v44, 3  ;;  %v6493_v14 = vstv %s6422_s5  ;;  %v6501_v16 = vstv %s6425_s7  ;;  %v6504_v46 = vstv %s6427_s8 }
 0x2b0   :  { %v746_v7 = vsel %vm537_vm9, %v743_v4, %v745_v8  ;;  %v786_v23 = vmul.f32 %v6493_v14, %v4409_v21  ;;  %v6511_v39 = vmul.f32 %v6501_v16, %v4347_v47  ;;  %v802_v55 = vmul.f32 %v6501_v16, %v4389_v48 }
 0x2b1   :  { %v750_v54 = vadd.f32 %v746_v7, %v718_v43  ;;  %v778_v61 = vsel %vm570_vm10, %v7287_v35, %v777_v38  ;;  %v818_v41 = vmul.f32 %v6504_v46, %v4409_v21  ;;  %v6518_v52 = vstv %s6443_s9 }
 0x2b2   :  { %v793_v0 = vrot.slane %v786_v23, 3  ;;  %v6521_v28 = vstv %s6445_s10  ;;  %v7286_v49 = vrot.slane %v6511_v39, 4  ;;  %v809_v40 = vrot.slane %v802_v55, 4 }
 0x2b3   :  { %v782_v31 = vadd.f32 %v778_v61, %v750_v54  ;;  %v6526_v25 = vmul.f32 %v6518_v52, %v4347_v47  ;;  %v825_v13 = vrot.slane %v818_v41, 4  ;;  %v834_v26 = vmul.f32 %v6518_v52, %v4389_v48 }
 0x2b4   :  { %v850_v22 = vmul.f32 %v6521_v28, %v4409_v21  ;;  %v6533_v20 = vstv %s6460_s11  ;;  %v810_v11 = vsel %vm603_vm11, %v7286_v49, %v809_v40  ;;  %v6546_v58 = vstv %s6485_s12 }
 0x2b5   :  { %v7285_v60 = vrot.slane %v6526_v25, 5  ;;  %v6541_v32 = vmul.f32 %v6533_v20, %v4347_v47  ;;  %v866_v33 = vmul.f32 %v6533_v20, %v4389_v48  ;;  %v814_v10 = vadd.f32 %v810_v11, %v782_v31 }
 0x2b6   :  { %v841_v5 = vrot.slane %v834_v26, 5  ;;  %v857_v59 = vrot.slane %v850_v22, 5  ;;  %v882_v9 = vmul.f32 %v6546_v58, %v4409_v21  ;;  %v702_v27 = vmul.f32 %v6432_v2, %v7324_v30 }
 0x2b7   :  { %v7284_v51 = vrot.slane %v6541_v32, 6  ;;  %v873_v15 = vrot.slane %v866_v33, 6  ;;  %v721_v43 = vmul.f32 %v6448_v1, %v7324_v30  ;;  %v753_v8 = vmul.f32 %v6454_v29, %v7324_v30 }
 0x2b8   :  { %v842_v44 = vsel %vm256_vm1, %v7285_v60, %v841_v5  ;;  %v785_v38 = vmul.f32 %v6493_v14, %v7324_v30  ;;  %v889_v54 = vrot.slane %v882_v9, 6  ;;  %v817_v61 = vmul.f32 %v6504_v46, %v7324_v30 }
 0x2b9   :  { %v846_v7 = vadd.f32 %v842_v44, %v814_v10  ;;  %v874_v23 = vsel %vm245_vm3, %v7284_v51, %v873_v15  ;;  %v727_v55 = vrot.slane %v721_v43, 1  ;;  %v759_v41 = vrot.slane %v753_v8, 2 }
 0x2ba   :  { %v791_v31 = vrot.slane %v785_v38, 3  ;;  %v6569_v40 = vmul.f32 %v6521_v28, %v7324_v30  ;;  %v823_v22 = vrot.slane %v817_v61, 4  ;;  %v6573_v11 = vmul.f32 %v6546_v58, %v7324_v30 }
 0x2bb   :  { %v878_v26 = vadd.f32 %v874_v23, %v846_v7  ;;  %v698_v33 = vmul.f32 %v6414_v56, %v4350_v50  ;;  %v730_v10 = vsel %vm504_vm8, %v727_v55, %v729_v12  ;;  %v762_v5 = vsel %vm537_vm9, %v759_v41, %v761_v63 }
 0x2bc   :  { %v794_v15 = vsel %vm570_vm10, %v791_v31, %v793_v0  ;;  %v855_v9 = vrot.slane %v6569_v40, 5  ;;  %v734_v44 = vadd.f32 %v730_v10, %v702_v27  ;;  %v826_v43 = vsel %vm603_vm11, %v823_v22, %v825_v13 }
 0x2bd   :  { %v887_v8 = vrot.slane %v6573_v11, 6  ;;  %v701_v38 = vmul.f32 %v6432_v2, %v4386_v45  ;;  %v704_v23 = vmul.f32 %v6435_v3, %v4350_v50  ;;  %v720_v12 = vmul.f32 %v6448_v1, %v4386_v45 }
 0x2be   :  { %v858_v7 = vsel %vm256_vm1, %v855_v9, %v857_v59  ;;  %v736_v63 = vmul.f32 %v6451_v6, %v4350_v50  ;;  %v766_v0 = vadd.f32 %v762_v5, %v734_v44  ;;  %v752_v13 = vmul.f32 %v6454_v29, %v4386_v45 }
 0x2bf   :  { %v890_v27 = vsel %vm245_vm3, %v887_v8, %v889_v54  ;;  %v768_v61 = vmul.f32 %v6457_v42, %v4350_v50  ;;  %v710_v40 = vrot.slane %v704_v23, 1  ;;  %v726_v59 = vrot.slane %v720_v12, 1 }
 0x2c0   :  { %v742_v11 = vrot.slane %v736_v63, 2  ;;  %v784_v10 = vmul.f32 %v6493_v14, %v4386_v45  ;;  %v798_v51 = vadd.f32 %v794_v15, %v766_v0  ;;  %v758_v60 = vrot.slane %v752_v13, 2 }
 0x2c1   :  { %v774_v49 = vrot.slane %v768_v61, 3  ;;  %v800_v5 = vmul.f32 %v6501_v16, %v4350_v50  ;;  %v712_v54 = vsel %vm504_vm8, %v710_v40, %v711_v53  ;;  %v728_v44 = vsel %vm504_vm8, %v726_v59, %v727_v55 }
 0x2c2   :  { %v744_v23 = vsel %vm537_vm9, %v742_v11, %v743_v4  ;;  %v790_v12 = vrot.slane %v784_v10, 3  ;;  %v830_v63 = vadd.f32 %v826_v43, %v798_v51  ;;  %v717_v35 = vadd.f32 %v712_v54, %v698_v33 }
 0x2c3   :  { %v733_v21 = vadd.f32 %v728_v44, %v701_v38  ;;  %v760_v15 = vsel %vm537_vm9, %v758_v60, %v759_v41  ;;  %v7356_v0 = vrot.slane %v6481_v62, 3  ;;  %v806_v61 = vrot.slane %v800_v5, 4  ;;  %v1314_v5 = vpop.permute.xlu1 %1313 }
 0x2c4   :  { %v792_v24 = vsel %vm570_vm10, %v790_v12, %v791_v31  ;;  %v816_v53 = vmul.f32 %v6504_v46, %v4386_v45  ;;  %v862_v55 = vadd.f32 %v858_v7, %v830_v63  ;;  %v749_v19 = vadd.f32 %v744_v23, %v717_v35 }
 0x2c5   :  { %v776_v13 = vsel %vm570_vm10, %v774_v49, %v7356_v0  ;;  %v765_v40 = vadd.f32 %v760_v15, %v733_v21  ;;  %v832_v4 = vmul.f32 %v6518_v52, %v4350_v50  ;;  %v7357_v51 = vrot.slane %v6511_v39, 4 }
 0x2c6   :  { %v822_v41 = vrot.slane %v816_v53, 4  ;;  %v848_v62 = vmul.f32 %v6521_v28, %v4386_v45  ;;  %v864_v49 = vmul.f32 %v6533_v20, %v4350_v50  ;;  %v894_v31 = vadd.f32 %v890_v27, %v862_v55 }
 0x2c7   :  { %v808_v60 = vsel %vm603_vm11, %v806_v61, %v7357_v51  ;;  %v781_v33 = vadd.f32 %v776_v13, %v749_v19  ;;  %v797_v43 = vadd.f32 %v792_v24, %v765_v40  ;;  %v838_v38 = vrot.slane %v832_v4, 5 }
 0x2c8   :  { %v824_v21 = vsel %vm603_vm11, %v822_v41, %v823_v22  ;;  %v854_v35 = vrot.slane %v848_v62, 5  ;;  %v870_v7 = vrot.slane %v864_v49, 6  ;;  %v880_v39 = vmul.f32 %v6546_v58, %v4386_v45 }
 0x2c9   :  { %v896_v59 = vadd.f32 %v894_v31, %v878_v26  ;;  %v813_v11 = vadd.f32 %v808_v60, %v781_v33  ;;  %v829_v10 = vadd.f32 %v824_v21, %v797_v43  ;;  %v7358_v54 = vrot.slane %v6526_v25, 5 }
 0x2ca   :  { %v856_v27 = vsel %vm256_vm1, %v854_v35, %v855_v9  ;;  %v7359_v23 = vrot.slane %v6541_v32, 6  ;;  %v886_v22 = vrot.slane %v880_v39, 6  ;;  %v2405_v0 = vmul.f32 %v4445_v36, %v6414_v56 }
 0x2cb   :  { %v840_v44 = vsel %vm256_vm1, %v838_v38, %v7358_v54  ;;  %v861_v15 = vadd.f32 %v856_v27, %v829_v10  ;;  %v6638_v26 = vmul.f32 %v4445_v36, %v6435_v3  ;;  %v2410_v13 = vmul.f32 %v4486_v18, %v6435_v3 }
 0x2cc   :  { %v872_v12 = vsel %vm245_vm3, %v870_v7, %v7359_v23  ;;  %v845_v63 = vadd.f32 %v840_v44, %v813_v11  ;;  %v888_v25 = vsel %vm245_vm3, %v886_v22, %v887_v8  ;;  %v6645_v32 = vmul.f32 %v4510_v17, %v6448_v1 }
 0x2cd   :  { %v6649_v9 = vmul.f32 %v4445_v36, %v6451_v6  ;;  %v6651_v24 = vadd.f32 %v1314_v5, %v896_v59  ;;  %v893_v53 = vadd.f32 %v888_v25, %v861_v15  ;;  %v2440_v55 = vmul.f32 %v4486_v18, %v6451_v6 }
 0x2ce   :  { %v877_v61 = vadd.f32 %v872_v12, %v845_v63  ;;  %v2415_v8 = vrot.slane %v6638_v26, 1  ;;  %v2417_v19 = vrot.slane %v2410_v13, 1  ;;  %v2432_v40 = vrot.slane %v6645_v32, 1 }
 0x2cf   :  { %v2455_v4 = vmul.f32 %v4510_v17, %v6454_v29  ;;  %v2445_v51 = vrot.slane %v6649_v9, 2  ;;  %v2447_v60 = vrot.slane %v2440_v55, 2  ;;  %v6662_v41 = vmul.f32 %v4445_v36, %v6457_v42 }
 0x2d0   :  { %v2470_v62 = vmul.f32 %v4486_v18, %v6457_v42  ;;  %v6666_v49 = vadd.f32 %v893_v53, %v877_v61  ;;  %v2418_v31 = vsel %vm504_vm8, %v2415_v8, %v2417_v19  ;;  %v2485_v33 = vmul.f32 %v4510_v17, %v6493_v14 }
 0x2d1   :  { %v6675_v43 = vmul.f32 %v4445_v36, %v6501_v16  ;;  %v2422_v38 = vadd.f32 %v2418_v31, %v2405_v0  ;;  %v2448_v21 = vsel %vm537_vm9, %v2445_v51, %v2447_v60  ;;  %v2462_v35 = vrot.slane %v2455_v4, 2 }
 0x2d2   :  { %v2475_v7 = vrot.slane %v6662_v41, 3  ;;  %v2477_v39 = vrot.slane %v2470_v62, 3  ;;  %v2492_v59 = vrot.slane %v2485_v33, 3  ;;  %v2500_v11 = vmul.f32 %v4486_v18, %v6501_v16 }
 0x2d3   :  { %v2505_v10 = vrot.slane %v6675_v43, 4  ;;  %v2452_v5 = vadd.f32 %v2448_v21, %v2422_v38  ;;  %v2515_v54 = vmul.f32 %v4510_v17, %v6504_v46  ;;  %v6688_v44 = vmul.f32 %v4445_v36, %v6518_v52 }
 0x2d4   :  { %v2530_v27 = vmul.f32 %v4486_v18, %v6518_v52  ;;  %v2478_v23 = vsel %vm570_vm10, %v2475_v7, %v2477_v39  ;;  %v2507_v12 = vrot.slane %v2500_v11, 4  ;;  %v2545_v22 = vmul.f32 %v4510_v17, %v6521_v28 }
 0x2d5   :  { %v6699_v63 = vmul.f32 %v4445_v36, %v6533_v20  ;;  %v2482_v15 = vadd.f32 %v2478_v23, %v2452_v5  ;;  %v2522_v0 = vrot.slane %v2515_v54, 4  ;;  %v7292_v25 = vrot.slane %v6688_v44, 5 }
 0x2d6   :  { %v2537_v13 = vrot.slane %v2530_v27, 5  ;;  %v2508_v32 = vsel %vm603_vm11, %v2505_v10, %v2507_v12  ;;  %v2552_v61 = vrot.slane %v2545_v22, 5  ;;  %v2560_v53 = vmul.f32 %v4486_v18, %v6533_v20 }
 0x2d7   :  { %v7290_v55 = vrot.slane %v6699_v63, 6  ;;  %v2512_v19 = vadd.f32 %v2508_v32, %v2482_v15  ;;  %v2575_v60 = vmul.f32 %v4510_v17, %v6546_v58  ;;  %v2407_v62 = vmul.f32 %v4514_v34, %v6432_v2 }
 0x2d8   :  { %v2538_v4 = vsel %vm256_vm1, %v7292_v25, %v2537_v13  ;;  %v2567_v31 = vrot.slane %v2560_v53, 6  ;;  %v2424_v33 = vmul.f32 %v4514_v34, %v6448_v1  ;;  %v2454_v38 = vmul.f32 %v4514_v34, %v6454_v29 }
 0x2d9   :  { %v2484_v21 = vmul.f32 %v4514_v34, %v6493_v14  ;;  %v2542_v39 = vadd.f32 %v2538_v4, %v2512_v19  ;;  %v2582_v11 = vrot.slane %v2575_v60, 6  ;;  %v6723_v5 = vmul.f32 %v4514_v34, %v6504_v46 }
 0x2da   :  { %v6727_v54 = vmul.f32 %v4514_v34, %v6521_v28  ;;  %v2568_v27 = vsel %vm245_vm3, %v7290_v55, %v2567_v31  ;;  %v2430_v23 = vrot.slane %v2424_v33, 1  ;;  %v2460_v12 = vrot.slane %v2454_v38, 2 }
 0x2db   :  { %v2490_v22 = vrot.slane %v2484_v21, 3  ;;  %v2572_v15 = vadd.f32 %v2568_v27, %v2542_v39  ;;  %v2520_v13 = vrot.slane %v6723_v5, 4  ;;  %v6736_v53 = vmul.f32 %v4514_v34, %v6546_v58  ;;  %v1312_v5 = vpop.permute.xlu0 %1311  ;;  %v2979_v27 = vpop.permute.xlu1 %2978 }
 0x2dc   :  { %v7291_v32 = vrot.slane %v6727_v54, 5  ;;  %v2433_v19 = vsel %vm504_vm8, %v2430_v23, %v2432_v40  ;;  %v2463_v4 = vsel %vm537_vm9, %v2460_v12, %v2462_v35  ;;  %v2404_v31 = vmul.f32 %v4449_v37, %v6414_v56 }
 0x2dd   :  { %v2493_v60 = vsel %vm570_vm10, %v2490_v22, %v2492_v59  ;;  %v2437_v33 = vadd.f32 %v2433_v19, %v2407_v62  ;;  %v2523_v38 = vsel %vm603_vm11, %v2520_v13, %v2522_v0  ;;  %v2580_v39 = vrot.slane %v6736_v53, 6 }
 0x2de   :  { %v2553_v21 = vsel %vm256_vm1, %v7291_v32, %v2552_v61  ;;  %v2406_v40 = vmul.f32 %v4482_v57, %v6432_v2  ;;  %v2408_v35 = vmul.f32 %v4449_v37, %v6435_v3  ;;  %v2423_v56 = vmul.f32 %v4482_v57, %v6448_v1 }
 0x2df   :  { %v2438_v59 = vmul.f32 %v4449_v37, %v6451_v6  ;;  %v2467_v0 = vadd.f32 %v2463_v4, %v2437_v33  ;;  %v2583_v61 = vsel %vm245_vm3, %v2580_v39, %v2582_v11  ;;  %v2453_v62 = vmul.f32 %v4482_v57, %v6454_v29  ;;  %v1734_v9 = vpop.permute.xlu1 %1733 }
 0x2e0   :  { %v2468_v2 = vmul.f32 %v4449_v37, %v6457_v42  ;;  %v2414_v19 = vrot.slane %v2408_v35, 1  ;;  %v2429_v55 = vrot.slane %v2423_v56, 1  ;;  %v2483_v1 = vmul.f32 %v4482_v57, %v6493_v14  ;;  %v2977_v35 = vpop.permute.xlu0 %2976 }
 0x2e1   :  { %v2444_v3 = vrot.slane %v2438_v59, 2  ;;  %v2497_v32 = vadd.f32 %v2493_v60, %v2467_v0  ;;  %v2459_v25 = vrot.slane %v2453_v62, 2  ;;  %v2498_v4 = vmul.f32 %v4449_v37, %v6501_v16 }
 0x2e2   :  { %v2474_v6 = vrot.slane %v2468_v2, 3  ;;  %v2416_v11 = vsel %vm504_vm8, %v2414_v19, %v2415_v8  ;;  %v2431_v29 = vsel %vm504_vm8, %v2429_v55, %v2430_v23  ;;  %v2489_v33 = vrot.slane %v2483_v1, 3 }
 0x2e3   :  { %v2446_v42 = vsel %vm537_vm9, %v2444_v3, %v2445_v51  ;;  %v2527_v56 = vadd.f32 %v2523_v38, %v2497_v32  ;;  %v2421_v14 = vadd.f32 %v2416_v11, %v2404_v31  ;;  %v2436_v60 = vadd.f32 %v2431_v29, %v2406_v40 }
 0x2e4   :  { %v2461_v59 = vsel %vm537_vm9, %v2459_v25, %v2460_v12  ;;  %v2476_v16 = vsel %vm570_vm10, %v2474_v6, %v2475_v7  ;;  %v2491_v26 = vsel %vm570_vm10, %v2489_v33, %v2490_v22  ;;  %v2504_v8 = vrot.slane %v2498_v4, 4  ;;  %v1732_v43 = vpop.permute.xlu0 %1731  ;;  %v3371_v4 = vpop.permute.xlu1 %3370 }
 0x2e5   :  { %v2513_v55 = vmul.f32 %v4482_v57, %v6504_v46  ;;  %v2557_v23 = vadd.f32 %v2553_v21, %v2527_v56  ;;  %v2451_v51 = vadd.f32 %v2446_v42, %v2421_v14  ;;  %v2466_v0 = vadd.f32 %v2461_v59, %v2436_v60  ;;  %v7363_v59 = vld [vmem:[#allocation28_spill] sm:$0xff] }
 0x2e6   :  { %v2528_v32 = vmul.f32 %v4449_v37, %v6518_v52  ;;  %v2506_v25 = vsel %vm603_vm11, %v2504_v8, %v2505_v10  ;;  %v2543_v7 = vmul.f32 %v4482_v57, %v6521_v28  ;;  %v2558_v12 = vmul.f32 %v4449_v37, %v6533_v20 }
 0x2e7   :  { %v2519_v41 = vrot.slane %v2513_v55, 4  ;;  %v2587_v22 = vadd.f32 %v2583_v61, %v2557_v23  ;;  %v2481_v46 = vadd.f32 %v2476_v16, %v2451_v51  ;;  %v2496_v31 = vadd.f32 %v2491_v26, %v2466_v0 }
 0x2e8   :  { %v2534_v38 = vrot.slane %v2528_v32, 5  ;;  %v2549_v40 = vrot.slane %v2543_v7, 5  ;;  %v2564_v62 = vrot.slane %v2558_v12, 6  ;;  %v2573_v52 = vmul.f32 %v4482_v57, %v6546_v58 }
 0x2e9   :  { %v2521_v21 = vsel %vm603_vm11, %v2519_v41, %v2520_v13  ;;  %v1317_v10 = vadd.f32 %v1312_v5, %v6666_v49  ;;  %v2589_v2 = vadd.f32 %v2587_v22, %v2572_v15  ;;  %v2511_v19 = vadd.f32 %v2506_v25, %v2481_v46 }
 0x2ea   :  { %v2526_v28 = vadd.f32 %v2521_v21, %v2496_v31  ;;  %v7360_v3 = vrot.slane %v6688_v44, 5  ;;  %v7361_v61 = vrot.slane %v6727_v54, 5  ;;  %v2579_v13 = vrot.slane %v2573_v52, 6 }
 0x2eb   :  { %v1738_v6 = vadd.f32 %v1734_v9, %v6651_v24  ;;  %v2983_v11 = vadd.f32 %v2979_v27, %v2589_v2  ;;  %v1737_v42 = vadd.f32 %v1732_v43, %v1317_v10  ;;  %v7362_v49 = vrot.slane %v6699_v63, 6  ;;  %v3369_v27 = vpop.permute.xlu0 %3368 }
 0x2ec   :  { %v2536_v20 = vsel %vm256_vm1, %v2534_v38, %v7360_v3  ;;  %v2551_v1 = vsel %vm256_vm1, %v2549_v40, %v7361_v61  ;;  %v2581_v44 = vsel %vm245_vm3, %v2579_v13, %v2580_v39  ;;  %v6811_v63 = vstv %s3611_s26 }
 0x2ed   :  { %v2541_v58 = vadd.f32 %v2536_v20, %v2511_v19  ;;  %v2556_v29 = vadd.f32 %v2551_v1, %v2526_v28  ;;  %v2566_v15 = vsel %vm245_vm3, %v2564_v62, %v7362_v49  ;;  %1953 = vrot.lane.b32.xlu1 %v1738_v6, %s3792_s6  ;;  %1951 = vrot.lane.b32.xlu0 %v1737_v42, %s3792_s6  ;;  %v6827_v26 = vstv %s3618_s14 }
 0x2ee   :  { %v3375_v24 = vadd.f32 %v3371_v4, %v2983_v11  ;;  %v500_v53 = vmul.f32 %v6811_v63, %v4389_v48  ;;  %v6817_v39 = vmul.f32 %v6811_v63, %v4347_v47  ;;  %v6831_v55 = vstv %s133_s15 }
 0x2ef   :  { %v2571_v54 = vadd.f32 %v2566_v15, %v2541_v58  ;;  %v2586_v5 = vadd.f32 %v2581_v44, %v2556_v29  ;;  %v6836_v23 = vmul.f32 %v6827_v26, %v4347_v47  ;;  %v533_v32 = vmul.f32 %v6827_v26, %v4389_v48 }
 0x2f0   :  { %v508_v8 = vrot.slane %v500_v53, 1  ;;  %v506_v9 = vrot.slane %v6817_v39, 1  ;;  %v6841_v25 = vstv %s3667_s16  ;;  %v6849_v7 = vstv %s3653_s18 }
 0x2f1   :  { %v2588_v33 = vadd.f32 %v2586_v5, %v2571_v54  ;;  %3576 = vrot.lane.b32.xlu1 %v3375_v24, %s3792_s6  ;;  %v6847_v41 = vmul.f32 %v6841_v25, %v7324_v30  ;;  %v550_v22 = vmul.f32 %v6841_v25, %v7363_v59  ;;  %v6856_v46 = vstv %s3625_s17 }
 0x2f2   :  { %v509_v12 = vsel %vm504_vm8, %v506_v9, %v508_v8  ;;  %v493_v31 = vmul.f32 %v6831_v55, %v4347_v47  ;;  %v496_v38 = vmul.f32 %v6849_v7, %v7324_v30  ;;  %v566_v21 = vmul.f32 %v6856_v46, %v4389_v48 }
 0x2f3   :  { %v2982_v56 = vadd.f32 %v2977_v35, %v2588_v33  ;;  %v6819_v35 = vstv %s3660_s13  ;;  %v539_v62 = vrot.slane %v6836_v23, 2  ;;  %v541_v52 = vrot.slane %v533_v32, 2 }
 0x2f4   :  { %v6823_v60 = vmul.f32 %v6819_v35, %v7324_v30  ;;  %v517_v16 = vmul.f32 %v6819_v35, %v7363_v59  ;;  %v6868_v43 = vstv %s3632_s19  ;;  %v513_v10 = vadd.f32 %v509_v12, %v493_v31 }
 0x2f5   :  { %v3374_v14 = vadd.f32 %v3369_v27, %v2982_v56  ;;  %v555_v2 = vrot.slane %v6847_v41, 2  ;;  %v6873_v19 = vmul.f32 %v6856_v46, %v4347_v47  ;;  %v557_v3 = vrot.slane %v550_v22, 2 }
 0x2f6   :  { %v522_v51 = vrot.slane %v6823_v60, 1  ;;  %v524_v0 = vrot.slane %v517_v16, 1  ;;  %v599_v1 = vmul.f32 %v6868_v43, %v4389_v48  ;;  %v574_v6 = vrot.slane %v566_v21, 3 }
 0x2f7   :  { %3574 = vrot.lane.b32.xlu0 %v3374_v14, %s3792_s6  ;;  %s3674_s6 = sld [smem:[#allocation5 + $0x46]]  ;;  %v6891_v4 = vmul.f32 %v6868_v43, %v4347_v47  ;;  %v6894_v11 = vstv %s6829_s20  ;;  %v542_v58 = vsel %vm537_vm9, %v539_v62, %v541_v52  ;;  %v498_v49 = vmul.f32 %v6811_v63, %v4350_v50 }
 0x2f8   :  { %v525_v40 = vsel %vm504_vm8, %v522_v51, %v524_v0  ;;  %v6901_v29 = vmul.f32 %v6894_v11, %v7324_v30  ;;  %v616_v42 = vmul.f32 %v6894_v11, %v7363_v59  ;;  %v546_v15 = vadd.f32 %v542_v58, %v513_v10 }
 0x2f9   :  { %v529_v13 = vadd.f32 %v525_v40, %v496_v38  ;;  %v572_v44 = vrot.slane %v6873_v19, 3  ;;  %v6909_v54 = vstv %s6843_s21  ;;  %v558_v5 = vsel %vm537_vm9, %v555_v2, %v557_v3 }
 0x2fa   :  { %v607_v27 = vrot.slane %v599_v1, 4  ;;  %v605_v53 = vrot.slane %v6891_v4, 4  ;;  %v515_v16 = vmul.f32 %v6819_v35, %v4386_v45  ;;  %v7293_v8 = vrot.slane %v6901_v29, 4 }
 0x2fb   :  { %v562_v56 = vadd.f32 %v558_v5, %v529_v13  ;;  %v575_v14 = vsel %vm570_vm10, %v572_v44, %v574_v6  ;;  %v623_v0 = vrot.slane %v616_v42, 4  ;;  %v6926_v32 = vmul.f32 %v6909_v54, %v4347_v47 }
 0x2fc   :  { %v505_v12 = vrot.slane %v498_v49, 1  ;;  %v579_v22 = vadd.f32 %v575_v14, %v546_v15  ;;  %v632_v31 = vmul.f32 %v6909_v54, %v4389_v48  ;;  %v608_v21 = vsel %vm603_vm11, %v605_v53, %v607_v27 }
 0x2fd   :  { %v6875_v28 = vstv %s3674_s6  ;;  %v6937_v40 = vstv %s6877_s22  ;;  %v531_v52 = vmul.f32 %v6827_v26, %v4350_v50  ;;  %v521_v1 = vrot.slane %v515_v16, 1 }
 0x2fe   :  { %v6881_v20 = vmul.f32 %v6875_v28, %v7324_v30  ;;  %v583_v61 = vmul.f32 %v6875_v28, %v7363_v59  ;;  %v6943_v3 = vmul.f32 %v6937_v40, %v7324_v30  ;;  %v624_v13 = vsel %vm603_vm11, %v7293_v8, %v623_v0 }
 0x2ff   :  { %v637_v6 = vrot.slane %v6926_v32, 5  ;;  %v648_v58 = vmul.f32 %v6937_v40, %v7363_v59  ;;  %v507_v42 = vsel %vm504_vm8, %v505_v12, %v506_v9  ;;  %v639_v49 = vrot.slane %v632_v31, 5 }
 0x300   :  { %v588_v24 = vrot.slane %v6881_v20, 3  ;;  %v590_v33 = vrot.slane %v583_v61, 3  ;;  %v6946_v61 = vstv %s6887_s23  ;;  %v492_v15 = vmul.f32 %v6831_v55, %v4350_v50 }
 0x301   :  { %v523_v5 = vsel %vm504_vm8, %v521_v1, %v522_v51  ;;  %v6966_v27 = vmul.f32 %v6946_v61, %v4347_v47  ;;  %v495_v39 = vmul.f32 %v6849_v7, %v4386_v45  ;;  %v564_v9 = vmul.f32 %v6856_v46, %v4350_v50 }
 0x302   :  { %v591_v38 = vsel %vm570_vm10, %v588_v24, %v590_v33  ;;  %v548_v33 = vmul.f32 %v6841_v25, %v4386_v45  ;;  %v653_v14 = vrot.slane %v6943_v3, 5  ;;  %v664_v60 = vmul.f32 %v6946_v61, %v4389_v48 }
 0x303   :  { %v595_v10 = vadd.f32 %v591_v38, %v562_v56  ;;  %v538_v56 = vrot.slane %v531_v52, 2  ;;  %v6976_v51 = vstv %s6915_s27  ;;  %v512_v16 = vadd.f32 %v507_v42, %v492_v15 }
 0x304   :  { %v655_v0 = vrot.slane %v648_v58, 5  ;;  %v6980_v47 = vmul.f32 %v6976_v51, %v7324_v30  ;;  %v680_v12 = vmul.f32 %v6976_v51, %v7363_v59  ;;  %v528_v31 = vadd.f32 %v523_v5, %v495_v39 }
 0x305   :  { %v612_v38 = vadd.f32 %v608_v21, %v579_v22  ;;  %v628_v52 = vadd.f32 %v624_v13, %v595_v10  ;;  %v554_v1 = vrot.slane %v548_v33, 2  ;;  %v581_v8 = vmul.f32 %v6875_v28, %v4386_v45 }
 0x306   :  { %v640_v48 = vsel %vm256_vm1, %v637_v6, %v639_v49  ;;  %v540_v58 = vsel %vm537_vm9, %v538_v56, %v539_v62  ;;  %v571_v30 = vrot.slane %v564_v9, 3  ;;  %v597_v42 = vmul.f32 %v6868_v43, %v4350_v50 }
 0x307   :  { %v669_v59 = vrot.slane %v6966_v27, 6  ;;  %v671_v22 = vrot.slane %v664_v60, 6  ;;  %v545_v21 = vadd.f32 %v540_v58, %v512_v16  ;;  %v556_v10 = vsel %vm537_vm9, %v554_v1, %v555_v2 }
 0x308   :  { %v656_v13 = vsel %vm256_vm1, %v653_v14, %v655_v0  ;;  %v685_v23 = vrot.slane %v6980_v47, 6  ;;  %v687_v49 = vrot.slane %v680_v12, 6  ;;  %v561_v62 = vadd.f32 %v556_v10, %v528_v31 }
 0x309   :  { %v644_v15 = vadd.f32 %v640_v48, %v612_v38  ;;  %v660_v5 = vadd.f32 %v656_v13, %v628_v52  ;;  %v587_v33 = vrot.slane %v581_v8, 3  ;;  %v614_v27 = vmul.f32 %v6894_v11, %v4386_v45 }
 0x30a   :  { %v573_v41 = vsel %vm570_vm10, %v571_v30, %v572_v44  ;;  %v604_v39 = vrot.slane %v597_v42, 4  ;;  %v630_v2 = vmul.f32 %v6909_v54, %v4350_v50  ;;  %v2222_v56 = vmul.f32 %v4486_v18, %v6811_v63 }
 0x30b   :  { %v672_v9 = vsel %vm245_vm3, %v669_v59, %v671_v22  ;;  %v578_v60 = vadd.f32 %v573_v41, %v545_v21  ;;  %v589_v8 = vsel %vm570_vm10, %v587_v33, %v588_v24  ;;  %v688_v19 = vsel %vm245_vm3, %v685_v23, %v687_v49  ;;  %v7053_v33 = vpop.permute.xlu1 %1103 }
 0x30c   :  { %v594_v16 = vadd.f32 %v589_v8, %v561_v62  ;;  %v662_v44 = vmul.f32 %v6946_v61, %v4350_v50  ;;  %v7022_v0 = vmul.f32 %v4445_v36, %v6811_v63  ;;  %v676_v12 = vadd.f32 %v672_v9, %v644_v15 }
 0x30d   :  { %v692_v31 = vadd.f32 %v688_v19, %v660_v5  ;;  %v620_v38 = vrot.slane %v614_v27, 4  ;;  %v646_v20 = vmul.f32 %v6937_v40, %v4386_v45  ;;  %v606_v24 = vsel %vm603_vm11, %v604_v39, %v605_v53 }
 0x30e   :  { %v636_v52 = vrot.slane %v630_v2, 5  ;;  %v678_v1 = vmul.f32 %v6976_v51, %v4386_v45  ;;  %v2229_v48 = vrot.slane %v2222_v56, 1  ;;  %v611_v50 = vadd.f32 %v606_v24, %v578_v60 }
 0x30f   :  { %v7364_v58 = vrot.slane %v6901_v29, 4  ;;  %v2237_v42 = vmul.f32 %v4510_v17, %v6819_v35  ;;  %v2236_v22 = vmul.f32 %v4514_v34, %v6819_v35  ;;  %v668_v4 = vrot.slane %v662_v44, 6 }
 0x310   :  { %v2227_v53 = vrot.slane %v7022_v0, 1  ;;  %v2252_v10 = vmul.f32 %v4486_v18, %v6827_v26  ;;  %v7041_v45 = vadd.f32 %v692_v31, %v676_v12  ;;  %v652_v13 = vrot.slane %v646_v20, 5 }
 0x311   :  { %v622_v30 = vsel %vm603_vm11, %v620_v38, %v7364_v58  ;;  %v7045_v29 = vmul.f32 %v4445_v36, %v6827_v26  ;;  %v638_v49 = vsel %vm256_vm1, %v636_v52, %v637_v6  ;;  %v684_v62 = vrot.slane %v678_v1, 6  ;;  %v7065_v6 = vpop.permute.xlu0 %1101 }
 0x312   :  { %v627_v21 = vadd.f32 %v622_v30, %v594_v16  ;;  %v2217_v15 = vmul.f32 %v4445_v36, %v6831_v55  ;;  %v2230_v5 = vsel %vm504_vm8, %v2227_v53, %v2229_v48  ;;  %v7055_v27 = vadd.f32 %v638_v49, %v611_v50  ;;  %v7106_v50 = vpop.permute.xlu1 %2782 }
 0x313   :  { %v654_v41 = vsel %vm256_vm1, %v652_v13, %v653_v14  ;;  %v2244_v39 = vrot.slane %v2237_v42, 1  ;;  %v2242_v2 = vrot.slane %v2236_v22, 1  ;;  %v7063_v32 = vsel %vm245_vm3, %v668_v4, %v669_v59 }
 0x314   :  { %v7060_v56 = vadd.f32 %v654_v41, %v627_v21  ;;  %v2259_v9 = vrot.slane %v2252_v10, 2  ;;  %v2267_v60 = vmul.f32 %v4510_v17, %v6841_v25  ;;  %v2234_v8 = vadd.f32 %v2230_v5, %v2217_v15 }
 0x315   :  { %v2257_v19 = vrot.slane %v7045_v29, 2  ;;  %v7072_v3 = vmul.f32 %v4445_v36, %v6856_v46  ;;  %v2266_v14 = vmul.f32 %v4514_v34, %v6841_v25  ;;  %v2282_v59 = vmul.f32 %v4486_v18, %v6856_v46  ;;  %v7110_v21 = vpop.permute.xlu0 %2780 }
 0x316   :  { %v2297_v16 = vmul.f32 %v4510_v17, %v6875_v28  ;;  %v2220_v44 = vmul.f32 %v4449_v37, %v6811_v63  ;;  %v2235_v0 = vmul.f32 %v4482_v57, %v6819_v35  ;;  %v7086_v12 = vmul.f32 %v4445_v36, %v6868_v43 }
 0x317   :  { %v7090_v31 = vmul.f32 %v4486_v18, %v6868_v43  ;;  %v2327_v38 = vmul.f32 %v4510_v17, %v6894_v11  ;;  %v2245_v20 = vsel %vm504_vm8, %v2242_v2, %v2244_v39  ;;  %v7098_v63 = vsel %vm245_vm3, %v684_v62, %v685_v23 }
 0x318   :  { %v2260_v35 = vsel %vm537_vm9, %v2257_v19, %v2259_v9  ;;  %v2274_v24 = vrot.slane %v2267_v60, 2  ;;  %v2219_v52 = vmul.f32 %v4514_v34, %v6849_v7  ;;  %v2287_v48 = vrot.slane %v7072_v3, 3 }
 0x319   :  { %v2264_v1 = vadd.f32 %v2260_v35, %v2234_v8  ;;  %v2272_v58 = vrot.slane %v2266_v14, 2  ;;  %v2296_v47 = vmul.f32 %v4514_v34, %v6875_v28  ;;  %v2289_v30 = vrot.slane %v2282_v59, 3  ;;  %v7148_v35 = vpop.permute.xlu0 %1521 }
 0x31a   :  { %v2249_v23 = vadd.f32 %v2245_v20, %v2219_v52  ;;  %v2226_v42 = vrot.slane %v2220_v44, 1  ;;  %v2241_v22 = vrot.slane %v2235_v0, 1  ;;  %v2304_v4 = vrot.slane %v2297_v16, 3  ;;  %v7140_v0 = vpop.permute.xlu1 %1523 }
 0x31b   :  { %v2317_v10 = vrot.slane %v7086_v12, 4  ;;  %v2319_v13 = vrot.slane %v7090_v31, 4  ;;  %v2334_v49 = vrot.slane %v2327_v38, 4  ;;  %v7116_v62 = vmul.f32 %v4445_v36, %v6909_v54 }
 0x31c   :  { %v2243_v15 = vsel %vm504_vm8, %v2241_v22, %v2242_v2  ;;  %v2250_v5 = vmul.f32 %v4449_v37, %v6827_v26  ;;  %v2265_v41 = vmul.f32 %v4482_v57, %v6841_v25  ;;  %v2275_v39 = vsel %vm537_vm9, %v2272_v58, %v2274_v24 }
 0x31d   :  { %v2302_v9 = vrot.slane %v2296_v47, 3  ;;  %v2326_v60 = vmul.f32 %v4514_v34, %v6894_v11  ;;  %v2218_v8 = vmul.f32 %v4482_v57, %v6849_v7  ;;  %v2290_v14 = vsel %vm570_vm10, %v2287_v48, %v2289_v30 }
 0x31e   :  { %v2342_v2 = vmul.f32 %v4486_v18, %v6909_v54  ;;  %v2279_v26 = vadd.f32 %v2275_v39, %v2249_v23  ;;  %v2228_v59 = vsel %vm504_vm8, %v2226_v42, %v2227_v53  ;;  %v2357_v25 = vmul.f32 %v4510_v17, %v6937_v40 }
 0x31f   :  { %v2216_v16 = vmul.f32 %v4449_v37, %v6831_v55  ;;  %v2248_v44 = vadd.f32 %v2243_v15, %v2218_v8  ;;  %v2280_v7 = vmul.f32 %v4449_v37, %v6856_v46  ;;  %v7144_v31 = vmul.f32 %v4445_v36, %v6946_v61 }
 0x320   :  { %v2256_v38 = vrot.slane %v2250_v5, 2  ;;  %v2271_v20 = vrot.slane %v2265_v41, 2  ;;  %v2295_v53 = vmul.f32 %v4482_v57, %v6875_v28  ;;  %v2305_v24 = vsel %vm570_vm10, %v2302_v9, %v2304_v4 }
 0x321   :  { %v2332_v55 = vrot.slane %v2326_v60, 4  ;;  %v2356_v52 = vmul.f32 %v4514_v34, %v6937_v40  ;;  %v2233_v46 = vadd.f32 %v2228_v59, %v2216_v16  ;;  %v2294_v47 = vadd.f32 %v2290_v14, %v2264_v1  ;;  %v3175_v60 = vpop.permute.xlu1 %3174 }
 0x322   :  { %v2372_v30 = vmul.f32 %v4486_v18, %v6946_v61  ;;  %v2309_v36 = vadd.f32 %v2305_v24, %v2279_v26  ;;  %v2273_v23 = vsel %vm537_vm9, %v2271_v20, %v2272_v58  ;;  %v2364_v42 = vrot.slane %v2357_v25, 5 }
 0x323   :  { %v2387_v28 = vmul.f32 %v4510_v17, %v6976_v51  ;;  %v2278_v22 = vadd.f32 %v2273_v23, %v2248_v44  ;;  %v2286_v15 = vrot.slane %v2280_v7, 3  ;;  %v2258_v4 = vsel %vm537_vm9, %v2256_v38, %v2257_v19 }
 0x324   :  { %v2301_v5 = vrot.slane %v2295_v53, 3  ;;  %v2310_v1 = vmul.f32 %v4449_v37, %v6868_v43  ;;  %v2325_v18 = vmul.f32 %v4482_v57, %v6894_v11  ;;  %v2335_v41 = vsel %vm603_vm11, %v2332_v55, %v2334_v49  ;;  %v7172_v43 = vpop.permute.xlu0 %3172 }
 0x325   :  { %v2362_v58 = vrot.slane %v2356_v52, 5  ;;  %v2386_v39 = vmul.f32 %v4514_v34, %v6976_v51  ;;  %v2263_v17 = vadd.f32 %v2258_v4, %v2233_v46  ;;  %v2320_v29 = vsel %vm603_vm11, %v2317_v10, %v2319_v13 }
 0x326   :  { %v2349_v19 = vrot.slane %v2342_v2, 5  ;;  %v2339_v8 = vadd.f32 %v2335_v41, %v2309_v36  ;;  %v2303_v14 = vsel %vm570_vm10, %v2301_v5, %v2302_v9  ;;  %v2324_v26 = vadd.f32 %v2320_v29, %v2294_v47 }
 0x327   :  { %v2347_v11 = vrot.slane %v7116_v62, 5  ;;  %v2288_v49 = vsel %vm570_vm10, %v2286_v15, %v2287_v48  ;;  %v2308_v34 = vadd.f32 %v2303_v14, %v2278_v22  ;;  %v2316_v59 = vrot.slane %v2310_v1, 4 }
 0x328   :  { %v2331_v25 = vrot.slane %v2325_v18, 4  ;;  %v2340_v16 = vmul.f32 %v4449_v37, %v6909_v54  ;;  %v2355_v13 = vmul.f32 %v4482_v57, %v6937_v40  ;;  %v2394_v2 = vrot.slane %v2387_v28, 6  ;;  %v1944_v40 = vpop.permute.xlu1 %1943 }
 0x329   :  { %v2365_v9 = vsel %vm256_vm1, %v2362_v58, %v2364_v42  ;;  %v2392_v44 = vrot.slane %v2386_v39, 6  ;;  %v2293_v7 = vadd.f32 %v2288_v49, %v2263_v17  ;;  %v691_v62 = vadd.f32 %v7098_v63, %v7060_v56  ;;  %v1942_v63 = vpop.permute.xlu0 %1941 }
 0x32a   :  { %v2350_v3 = vsel %vm256_vm1, %v2347_v11, %v2349_v19  ;;  %v2369_v48 = vadd.f32 %v2365_v9, %v2339_v8  ;;  %v2333_v38 = vsel %vm603_vm11, %v2331_v25, %v2332_v55  ;;  %v2379_v53 = vrot.slane %v2372_v30, 6 }
 0x32b   :  { %v2354_v20 = vadd.f32 %v2350_v3, %v2324_v26  ;;  %v2338_v24 = vadd.f32 %v2333_v38, %v2308_v34  ;;  %v2370_v54 = vmul.f32 %v4449_v37, %v6946_v61  ;;  %v2318_v52 = vsel %vm603_vm11, %v2316_v59, %v2317_v10 }
 0x32c   :  { %v2346_v46 = vrot.slane %v2340_v16, 5  ;;  %v2361_v47 = vrot.slane %v2355_v13, 5  ;;  %v2385_v56 = vmul.f32 %v4482_v57, %v6976_v51  ;;  %v675_v55 = vadd.f32 %v7063_v32, %v7055_v27  ;;  %v3567_v15 = vpop.permute.xlu1 %3566 }
 0x32d   :  { %v2377_v30 = vrot.slane %v7144_v31, 6  ;;  %v2395_v36 = vsel %vm245_vm3, %v2392_v44, %v2394_v2  ;;  %v2323_v23 = vadd.f32 %v2318_v52, %v2293_v7  ;;  %v1108_v12 = vadd.f32 %v7053_v33, %v7041_v45  ;;  %v3565_v18 = vpop.permute.xlu0 %3564 }
 0x32e   :  { %v2399_v37 = vadd.f32 %v2395_v36, %v2369_v48  ;;  %v2363_v61 = vsel %vm256_vm1, %v2361_v47, %v2362_v58  ;;  %v693_v10 = vadd.f32 %v691_v62, %v675_v55  ;;  %v2348_v51 = vsel %vm256_vm1, %v2346_v46, %v2347_v11 }
 0x32f   :  { %v2380_v42 = vsel %vm245_vm3, %v2377_v30, %v2379_v53  ;;  %v2368_v28 = vadd.f32 %v2363_v61, %v2338_v24  ;;  %v2376_v22 = vrot.slane %v2370_v54, 6  ;;  %v2391_v27 = vrot.slane %v2385_v56, 6 }
 0x330   :  { %v2384_v57 = vadd.f32 %v2380_v42, %v2354_v20  ;;  %v1107_v32 = vadd.f32 %v7065_v6, %v693_v10  ;;  %v2353_v31 = vadd.f32 %v2348_v51, %v2323_v23  ;;  %v1528_v1 = vadd.f32 %v7140_v0, %v1108_v12 }
 0x331   :  { %v2393_v5 = vsel %vm245_vm3, %v2391_v27, %v2392_v44  ;;  %v2378_v58 = vsel %vm245_vm3, %v2376_v22, %v2377_v30  ;;  %v1959_v6 = vstv %s7234_s1  ;;  %s3799_s1 = smov [#allocation10]  }
 0x332   :  { %v2401_v4 = vadd.f32 %v2399_v37, %v2384_v57  ;;  %v2398_v45 = vadd.f32 %v2393_v5, %v2368_v28  ;;  %v1527_v33 = vadd.f32 %v7148_v35, %v1107_v32  ;;  %v1948_v39 = vadd.f32 %v1944_v40, %v1528_v1  ;;  %s3592_s25 = sshll.u32 %s3799_s1, 4  ;;  %s3593_s25 = int_to_ptr.vmem [resolvable:$true] %s3592_s25 }
 0x333   :  { %v2383_v17 = vadd.f32 %v2378_v58, %v2353_v31  ;;  %s3754_s28 = scalar_lea.vmem %s3593_s25, 512  ;;  %p3759_p0 = scmp.lt.s32.totalorder %s3593_s25, %s3593_s25 }
 0x334   :  { %v2787_v41 = vadd.f32 %v7106_v50, %v2401_v4  ;;  %v1947_v29 = vadd.f32 %v1942_v63, %v1527_v33  ;;  %p3755_p13 = scmp.ne.s32.totalorder %s3593_s25, %s3754_s28  ;;  %p3760_p1 = scmp.lt.s32.totalorder %s3754_s28, %s3754_s28 }
 0x335   :  { %v2400_v0 = vadd.f32 %v2398_v45, %v2383_v17 }
 0x336   :  { %v3179_v8 = vadd.f32 %v3175_v60, %v2787_v41  ;;  %p3761_p2 = por %p3760_p1, %p3759_p0 }
 0x337   :  { %v2786_v35 = vadd.f32 %v7110_v21, %v2400_v0 }
 0x338   :  { %v3571_v49 = vadd.f32 %v3567_v15, %v3179_v8  ;;  %p3762_p3 = pnand %p3761_p2, %p3755_p13 }
 0x339   :  { %v3178_v16 = vadd.f32 %v7172_v43, %v2786_v35 }
 0x33b   :  { %v3570_v2 = vadd.f32 %v3565_v18, %v3178_v16 }
 0x35f   :  { %v1954_v19 = vpop.permute.xlu1 %1953  ;;  %v1952_v26 = vpop.permute.xlu0 %1951 }
 0x360   :  { %v1958_v14 = vadd.f32 %v1954_v19, %v1948_v39  ;;  %v1957_v11 = vadd.f32 %v1952_v26, %v1947_v29 }
 0x362   :  { %v1961_v34 = vadd.f32 %v1959_v6, %v1958_v14  ;;  %v1960_v50 = vadd.f32 %v1959_v6, %v1957_v11 }
 0x363   :  { %v3577_v59 = vpop.permute.xlu1 %3576 }
 0x364   :  { %1963 = vst.msk [vmem:[#allocation10 + $0x8] sm:$0xff] %vm47_vm0, %v1961_v34  ;;  %v3581_v25 = vadd.f32 %v3577_v59, %v3571_v49  ;;  %1962 = vst.msk [vmem:[#allocation10] sm:$0xff] %vm47_vm0, %v1960_v50 }
 0x366   :  { %v3583_v13 = vadd.f32 %v3581_v25, %v1959_v6 }
 0x368   :  { %3586 = vst.msk [vmem:[#allocation10 + $0x18] sm:$0xff] %vm47_vm0, %v3583_v13 }
 0x369   :  { %v3575_v60 = vpop.permute.xlu0 %3574 }
 0x36a   :  { %v3580_v9 = vadd.f32 %v3575_v60, %v3570_v2 }
 0x36c   :  { %v3582_v44 = vadd.f32 %v3580_v9, %v1959_v6 }
 0x36e   :  { %3585 = vst.msk [vmem:[#allocation10 + $0x10] sm:$0xff] %vm47_vm0, %v3582_v44 }
 0x36f   :  { %3765 = shalt.err (!%p3762_p3)
}
 0x370   :  { %s3766_s30 = scalar_lea.hbm %s7236_s3, 512 }
 0x371   :  { %p3767_p4 = scmp.ne.s32.totalorder %s7236_s3, %s3766_s30  ;;  %p3770_p5 = scmp.lt.u32.totalorder %s3766_s30, %s7236_s3 }
 0x373   :  { %p3772_p6 = pnand %p3770_p5, %p3767_p4 }
 0x375   :  { %3775 = shalt.err (!%p3772_p6)
}
 0x376   :  { %s7365_s9 = smov 8   ;;  %s7366_s10 = smov 128  }
 0x377   :  { %3598 = dma.vmem_to_hbm [thread:$0]  %s3593_s25, 512, %s7236_s3, [#allocation7], %s7366_s10, %s7366_s10, %s7365_s9  }
 0x378   :  { %3780 = dma.done.wait [#allocation7], 512  }
 0x379   :  { %3781 = vsyncadd [#allocation7], 4294966784 }
 0x37a   :  { %3602 = vsyncpa [#allocation6], 1 }
 0x37b   :  { %3603 = vsyncpa [#allocation7], 1 }
 0x37c   :  { %3604 = vsyncpa [#allocation8], 1 }

</bundles_post_ra>
